<compile_context>
chip_gen: v7x
topology: tpu7x:2x2x1
jax: 0.10.0
libtpu: 0.0.40
codegen_flags: <defaults>
</compile_context>

<pallas_src>
import functools

import jax
import jax.numpy as jnp
from jax import lax
from jax.experimental import pallas as pl
from jax.experimental.pallas import tpu as pltpu

# ----------------------------- config (small, synthetic) -----------------------------
B = 2
IN_CHANNELS = 1
IMG = 16                         # img_size = (16, 16, 16)
ENCODER_CHANNELS = (4, 8, 16)    # config.encoder_channels
DOWN_NUM = 2                     # config.down_num
DOWN_FACTOR = 2                  # config.down_factor (conv stride)
PATCH = 2                        # config.patches['size']
HIDDEN_SIZE = 32                 # config.hidden_size
N_PATCHES = int(IMG / 2 ** DOWN_NUM // PATCH) ** 3   # = 8


# ----------------------------------- Pallas kernels -----------------------------------
def _conv_fused_kernel(fuse_norm, has_res, x_ref, w_ref, b_ref, *refs):
    """One batch's Conv3d(k=3, p=1[, stride]) as a single K=27*Cin GEMM with a fused
    bias + InstanceNorm3d(affine=False, eps=1e-5) + LeakyReLU(0.01) [+ residual] epilogue.

      x_ref : (1, K, M)   bf16 im2col slab for this batch (K = Cin*27, M = Do*Ho*Wo)
      w_ref : (Cout, K)   bf16 weights (PyTorch (Cout,Cin,3,3,3) flattened)
      b_ref : (Cout, 1)   f32 conv bias (broadcast over the lane-dense M axis)
      refs  : ([r_ref (1, Cout, M) f32], o_ref (1, Cout, M) f32)
    """
    if has_res:
        r_ref, o_ref = refs
    else:
        (o_ref,) = refs

    # Single MXU GEMM (K fills the contraction depth instead of 27 tap steps);
    # the output block doubles as the f32 accumulator -- no VMEM scratch.
    y = jnp.dot(w_ref[...], x_ref[0], preferred_element_type=jnp.float32)
    y = y + b_ref[...]                                     # conv bias

    if fuse_norm:
        # InstanceNorm3d: stats per (batch, channel) over the FULL spatial row.
        # NOTE: relies on the whole spatial axis M being in one block (never tile M).
        mean = jnp.mean(y, axis=-1, keepdims=True)
        yc = y - mean
        var = jnp.mean(yc * yc, axis=-1, keepdims=True)    # two-pass, numerically stable
        y = yc * lax.rsqrt(var + 1e-5)                     # rsqrt -> EUP slot
        y = jnp.where(y >= 0.0, y, 0.01 * y)               # LeakyReLU(0.01)
    if has_res:
        y = y + r_ref[0]                                   # ConsecutiveConv_res skip
    o_ref[0] = y


def _patch_embed_kernel(nb, x_ref, w_ref, b_ref, pos_ref, o_ref):
    """(B*n_patches, K) @ (K, hidden) + bias + position embeddings in one GEMM.
    pos arrives un-broadcast as (n_patches, hidden) and is tiled across batches here."""
    y = jnp.dot(x_ref[...], w_ref[...], preferred_element_type=jnp.float32)
    pos = jnp.concatenate([pos_ref[...]] * nb, axis=0)     # rows ordered (batch, patch)
    o_ref[...] = y + b_ref[...] + pos


# ------------------------------------- wrappers ---------------------------------------
def conv3d_fused(x_bcm, spatial, w, b, *, stride=1, fuse_norm=True, residual=None):
    """Conv3d kernel=3, padding=1, given stride, on channel-major (B, C, M) activations,
    with optional fused InstanceNorm+LeakyReLU(+residual) epilogue.

    x_bcm    : (B, Cin, M) f32, M = D*H*W (lane-dense spatial axis)
    w        : (Cout, Cin, 3, 3, 3) f32  (PyTorch Conv3d layout)
    b        : (Cout,) f32
    residual : optional (B, Cout, Mo) f32 added after the norm (ConsecutiveConv_res)
    returns  : (B, Cout, Mo) f32, (Do, Ho, Wo)
    """
    Bx, Cin, _ = x_bcm.shape
    D, H, W = spatial
    Cout = w.shape[0]
    s = stride
    Do, Ho, Wo = (D - 1) // s + 1, (H - 1) // s + 1, (W - 1) // s + 1
    Mo = Do * Ho * Wo
    K = Cin * 27

    # im2col in XLA (thin glue): pad once, take the 27 shifted/strided tap views and
    # lay K out as (cin, kd, kh, kw) so w.reshape(Cout, K) matches with no transpose.
    # Cast to bf16 up front so the amplified copy moves half the HBM bytes.
    # TODO(synk): move this im2col into VMEM in-kernel to avoid the HBM materialization.
    x5 = x_bcm.astype(jnp.bfloat16).reshape(Bx, Cin, D, H, W)
    xp = jnp.pad(x5, ((0, 0), (0, 0), (1, 1), (1, 1), (1, 1)))
    taps = []
    for kd in range(3):
        for kh in range(3):
            for kw in range(3):
                taps.append(xp[:, :, kd:kd + (Do - 1) * s + 1:s,
                                     kh:kh + (Ho - 1) * s + 1:s,
                                     kw:kw + (Wo - 1) * s + 1:s])
    xt = jnp.stack(taps, axis=2).reshape(Bx, K, Mo)          # (B, Cin*27, Mo)

    wk = w.reshape(Cout, K).astype(jnp.bfloat16)              # (Cout, Cin*27)

    has_res = residual is not None
    kernel = functools.partial(_conv_fused_kernel, fuse_norm, has_res)

    in_specs = [
        pl.BlockSpec((1, K, Mo), lambda bb: (bb, 0, 0)),      # im2col slab (this batch)
        pl.BlockSpec((Cout, K), lambda bb: (0, 0)),           # weights
        pl.BlockSpec((Cout, 1), lambda bb: (0, 0)),           # bias
    ]
    args = [xt, wk, b.reshape(Cout, 1)]
    if has_res:
        in_specs.append(pl.BlockSpec((1, Cout, Mo), lambda bb: (bb, 0, 0)))
        args.append(residual)

    out = pl.pallas_call(
        kernel,
        out_shape=jax.ShapeDtypeStruct((Bx, Cout, Mo), jnp.float32),
        grid=(Bx,),
        in_specs=in_specs,
        out_specs=pl.BlockSpec((1, Cout, Mo), lambda bb: (bb, 0, 0)),
        compiler_params=pltpu.CompilerParams(
            dimension_semantics=("parallel",)),   # one batch per TensorCore on dual-TC chips
    )(*args)
    return out, (Do, Ho, Wo)


def patch_embed(x_bcm, spatial, w, b, pos, patch):
    """Conv3d(kernel=stride=patch) == patchify + one GEMM, fused with bias + pos-emb.
    w is PyTorch layout (hidden, C, p, p, p).  Returns (B, n_patches, hidden) -- already
    in flatten(2).transpose(-1,-2) order."""
    Bx, C, _ = x_bcm.shape
    D, H, W = spatial
    p = patch
    Do, Ho, Wo = D // p, H // p, W // p
    n_patches = Do * Ho * Wo
    K = C * p ** 3
    N = w.shape[0]

    x5 = x_bcm.astype(jnp.bfloat16).reshape(Bx, C, Do, p, Ho, p, Wo, p)
    xr = jnp.transpose(x5, (0, 2, 4, 6, 1, 3, 5, 7)).reshape(Bx * n_patches, K)
    wm = jnp.transpose(w, (1, 2, 3, 4, 0)).reshape(K, N).astype(jnp.bfloat16)

    out = pl.pallas_call(
        functools.partial(_patch_embed_kernel, Bx),
        out_shape=jax.ShapeDtypeStruct((Bx * n_patches, N), jnp.float32),
    )(xr, wm, b.reshape(1, N), pos.reshape(n_patches, N))
    return out.reshape(Bx, n_patches, N)


# ----------------------------------- parameters ---------------------------------------
def init_params(key):
    enc = ENCODER_CHANNELS
    keys = iter(jax.random.split(key, 32))

    def conv_p(cin, cout):
        # PyTorch Conv3d layout: (Cout, Cin, 3, 3, 3)
        w = jax.random.normal(next(keys), (cout, cin, 3, 3, 3), jnp.float32) * 0.05
        b = jax.random.normal(next(keys), (cout,), jnp.float32) * 0.05
        return w, b

    params = {}
    params['inc_w1'], params['inc_b1'] = conv_p(IN_CHANNELS, enc[0])
    params['inc_w2'], params['inc_b2'] = conv_p(enc[0], enc[0])
    blocks = []
    for i in range(DOWN_NUM):
        cin, cout = enc[i], enc[i + 1]
        dw, db = conv_p(cin, cout)       # strided down-conv (no norm/act after it)
        w1, b1 = conv_p(cout, cout)      # ConsecutiveConv_res conv #1
        w2, b2 = conv_p(cout, cout)      # ConsecutiveConv_res conv #2
        blocks.append(dict(dw=dw, db=db, w1=w1, b1=b1, w2=w2, b2=b2))
    params['blocks'] = blocks
    # patch-embedding Conv3d weight, PyTorch layout (hidden, Cin, p, p, p)
    params['pe_w'] = jax.random.normal(
        next(keys), (HIDDEN_SIZE, enc[-1], PATCH, PATCH, PATCH), jnp.float32) * 0.05
    params['pe_b'] = jax.random.normal(next(keys), (HIDDEN_SIZE,), jnp.float32) * 0.05
    # position_embeddings initialized to zeros, exactly like nn.Parameter(torch.zeros(...))
    params['pos'] = jnp.zeros((1, N_PATCHES, HIDDEN_SIZE), jnp.float32)
    return params


# ------------------------------------- forward ----------------------------------------
def embeddings_forward(x_ncdhw, params):
    Bx, Cin, D, H, W = x_ncdhw.shape
    # NCDHW flattened to (B, C, D*H*W): channel-major, spatial-last (lane-dense).
    x = x_ncdhw.reshape(Bx, Cin, D * H * W)
    spatial = (D, H, W)
    features = []

    # CNNEncoder_stride.inc : ConsecutiveConv = (conv -> IN -> LeakyReLU) x2, fused
    y, spatial = conv3d_fused(x, spatial, params['inc_w1'], params['inc_b1'])
    y, spatial = conv3d_fused(y, spatial, params['inc_w2'], params['inc_b2'])
    features.append((y, spatial))

    # CNNEncoderBlock_stride x down_num : strided conv + ConsecutiveConv_res
    for blk in params['blocks']:
        # strided down-conv: bias only (PyTorch block has no norm/act here)
        y, spatial = conv3d_fused(y, spatial, blk['dw'], blk['db'],
                                  stride=DOWN_FACTOR, fuse_norm=False)
        skip = y
        z, spatial = conv3d_fused(y, spatial, blk['w1'], blk['b1'])
        y, spatial = conv3d_fused(z, spatial, blk['w2'], blk['b2'], residual=skip)
        features.append((y, spatial))

    # patch_embeddings + flatten(2).transpose(-1,-2) + position embeddings (one GEMM)
    emb = patch_embed(y, spatial, params['pe_w'], params['pe_b'], params['pos'], PATCH)
    # TODO(synk): nn.Dropout applied as identity (inference/eval semantics).

    # features[::-1][1:], back to PyTorch NCDHW layout (free: layout already C-major)
    feats_out = [f.reshape(Bx, f.shape[1], *sp) for f, sp in features[::-1][1:]]
    return emb, feats_out


# --------------------------------------- main -----------------------------------------
if __name__ == "__main__":
    key = jax.random.PRNGKey(0)
    kp, kx = jax.random.split(key)
    params = init_params(kp)
    x = jax.random.normal(kx, (B, IN_CHANNELS, IMG, IMG, IMG), jnp.float32)

    fwd = jax.jit(embeddings_forward)
    emb, feats = fwd(x, params)
    emb = jax.block_until_ready(emb)
    feats = [jax.block_until_ready(f) for f in feats]

    assert emb.shape == (B, N_PATCHES, HIDDEN_SIZE)
    assert feats[0].shape == (B, ENCODER_CHANNELS[1], IMG // 2, IMG // 2, IMG // 2)
    assert feats[1].shape == (B, ENCODER_CHANNELS[0], IMG, IMG, IMG)
    assert bool(jnp.isfinite(emb).all())
    assert all(bool(jnp.isfinite(f).all()) for f in feats)
    print("KERNEL_OK")
</pallas_src>

<mosaic_0001>
module attributes {stable_mosaic.version = 11 : i64} {
  func.func @_conv_fused_kernel(%arg0: i32, %arg1: memref<1x27x4096xbf16, #tpu.memory_space<vmem>>, %arg2: memref<4x27xbf16, #tpu.memory_space<vmem>>, %arg3: memref<4x1xf32, #tpu.memory_space<vmem>>, %arg4: memref<1x4x4096xf32, #tpu.memory_space<vmem>>) attributes {dimension_semantics = [#tpu.dimension_semantics<parallel>], iteration_bounds = array<i64: 2>, scalar_prefetch = 0 : i64, scratch_operands = 0 : i64, tpu.core_type = #tpu.core_type<tc>, window_params = [{transform_indices = @transform_0, window_bounds = array<i64: 1, 27, 4096>}, {pipeline_mode = #tpu.pipeline_mode<synchronous>, transform_indices = @transform_1, window_bounds = array<i64: 4, 27>}, {pipeline_mode = #tpu.pipeline_mode<synchronous>, transform_indices = @transform_2, window_bounds = array<i64: 4, 1>}, {transform_indices = @transform_3, window_bounds = array<i64: 1, 4, 4096>}]} {
    %c0 = arith.constant 0 : index
    %c0_0 = arith.constant 0 : index
    %0 = vector.load %arg2[%c0, %c0_0] : memref<4x27xbf16, #tpu.memory_space<vmem>>, vector<4x27xbf16>
    %c0_1 = arith.constant 0 : index
    %c0_2 = arith.constant 0 : index
    %c0_3 = arith.constant 0 : index
    %1 = vector.load %arg1[%c0_1, %c0_2, %c0_3] : memref<1x27x4096xbf16, #tpu.memory_space<vmem>>, vector<1x27x4096xbf16>
    %2 = vector.shape_cast %1 : vector<1x27x4096xbf16> to vector<27x4096xbf16>
    %cst = arith.constant dense<0.000000e+00> : vector<4x4096xf32>
    %3 = tpu.matmul %0, %2, %cst {dimension_numbers = #tpu.dot_dimension_numbers<[1], [0], [0], [1], [0, 0, 1, 1], [], []>} : vector<4x27xbf16>, vector<27x4096xbf16>, vector<4x4096xf32> -> vector<4x4096xf32>
    %c0_4 = arith.constant 0 : index
    %c0_5 = arith.constant 0 : index
    %4 = vector.load %arg3[%c0_4, %c0_5] : memref<4x1xf32, #tpu.memory_space<vmem>>, vector<4x1xf32>
    %5 = vector.broadcast %4 : vector<4x1xf32> to vector<4x4096xf32>
    %6 = arith.addf %3, %5 : vector<4x4096xf32>
    %cst_6 = arith.constant dense<0.000000e+00> : vector<4xf32>
    %7 = vector.multi_reduction <add>, %6, %cst_6 [1] : vector<4x4096xf32> to vector<4xf32>
    %8 = vector.shape_cast %7 : vector<4xf32> to vector<4x1xf32>
    %cst_7 = arith.constant 4.096000e+03 : f32
    %9 = vector.broadcast %cst_7 : f32 to vector<4x1xf32>
    %10 = arith.divf %8, %9 : vector<4x1xf32>
    %11 = vector.broadcast %10 : vector<4x1xf32> to vector<4x4096xf32>
    %12 = arith.subf %6, %11 : vector<4x4096xf32>
    %13 = arith.mulf %12, %12 : vector<4x4096xf32>
    %cst_8 = arith.constant dense<0.000000e+00> : vector<4xf32>
    %14 = vector.multi_reduction <add>, %13, %cst_8 [1] : vector<4x4096xf32> to vector<4xf32>
    %15 = vector.shape_cast %14 : vector<4xf32> to vector<4x1xf32>
    %cst_9 = arith.constant 4.096000e+03 : f32
    %16 = vector.broadcast %cst_9 : f32 to vector<4x1xf32>
    %17 = arith.divf %15, %16 : vector<4x1xf32>
    %cst_10 = arith.constant 9.99999974E-6 : f32
    %18 = vector.broadcast %cst_10 : f32 to vector<4x1xf32>
    %19 = arith.addf %17, %18 : vector<4x1xf32>
    %20 = math.rsqrt %19 : vector<4x1xf32>
    %21 = vector.broadcast %20 : vector<4x1xf32> to vector<4x4096xf32>
    %22 = arith.mulf %12, %21 : vector<4x4096xf32>
    %cst_11 = arith.constant 0.000000e+00 : f32
    %23 = vector.broadcast %cst_11 : f32 to vector<4x4096xf32>
    %24 = arith.cmpf oge, %22, %23 : vector<4x4096xf32>
    %cst_12 = arith.constant 0.00999999977 : f32
    %25 = vector.broadcast %cst_12 : f32 to vector<4x4096xf32>
    %26 = arith.mulf %25, %22 : vector<4x4096xf32>
    %27 = arith.select %24, %22, %26 : vector<4x4096xi1>, vector<4x4096xf32>
    %c0_13 = arith.constant 0 : index
    %c0_14 = arith.constant 0 : index
    %c0_15 = arith.constant 0 : index
    %28 = vector.load %arg4[%c0_13, %c0_14, %c0_15] : memref<1x4x4096xf32, #tpu.memory_space<vmem>>, vector<1x4x4096xf32>
    %29 = vector.shape_cast %28 : vector<1x4x4096xf32> to vector<4x4096xf32>
    %30 = vector.shape_cast %27 : vector<4x4096xf32> to vector<1x4x4096xf32>
    tpu.vector_store %arg4[%c0_13, %c0_14, %c0_15], %30 {strides = array<i32>} : memref<1x4x4096xf32, #tpu.memory_space<vmem>>, vector<1x4x4096xf32>,
    return
  }
  func.func @transform_0(%arg0: i32) -> (i32, i32, i32) {
    %c0_i32 = arith.constant 0 : i32
    %c0_i32_0 = arith.constant 0 : i32
    %c0_i32_1 = arith.constant 0 : i32
    return %arg0, %c0_i32, %c0_i32_0 : i32, i32, i32
  }
  func.func @transform_1(%arg0: i32) -> (i32, i32) {
    %c0_i32 = arith.constant 0 : i32
    %c0_i32_0 = arith.constant 0 : i32
    %c0_i32_1 = arith.constant 0 : i32
    return %c0_i32, %c0_i32_0 : i32, i32
  }
  func.func @transform_2(%arg0: i32) -> (i32, i32) {
    %c0_i32 = arith.constant 0 : i32
    %c0_i32_0 = arith.constant 0 : i32
    %c0_i32_1 = arith.constant 0 : i32
    return %c0_i32, %c0_i32_0 : i32, i32
  }
  func.func @transform_3(%arg0: i32) -> (i32, i32, i32) {
    %c0_i32 = arith.constant 0 : i32
    %c0_i32_0 = arith.constant 0 : i32
    %c0_i32_1 = arith.constant 0 : i32
    return %arg0, %c0_i32, %c0_i32_0 : i32, i32, i32
  }
}

module attributes {stable_mosaic.version = 11 : i64} {
  func.func @_conv_fused_kernel(%arg0: i32, %arg1: memref<1x108x4096xbf16, #tpu.memory_space<vmem>>, %arg2: memref<4x108xbf16, #tpu.memory_space<vmem>>, %arg3: memref<4x1xf32, #tpu.memory_space<vmem>>, %arg4: memref<1x4x4096xf32, #tpu.memory_space<vmem>>) attributes {dimension_semantics = [#tpu.dimension_semantics<parallel>], iteration_bounds = array<i64: 2>, scalar_prefetch = 0 : i64, scratch_operands = 0 : i64, tpu.core_type = #tpu.core_type<tc>, window_params = [{transform_indices = @transform_0, window_bounds = array<i64: 1, 108, 4096>}, {pipeline_mode = #tpu.pipeline_mode<synchronous>, transform_indices = @transform_1, window_bounds = array<i64: 4, 108>}, {pipeline_mode = #tpu.pipeline_mode<synchronous>, transform_indices = @transform_2, window_bounds = array<i64: 4, 1>}, {transform_indices = @transform_3, window_bounds = array<i64: 1, 4, 4096>}]} {
    %c0 = arith.constant 0 : index
    %c0_0 = arith.constant 0 : index
    %0 = vector.load %arg2[%c0, %c0_0] : memref<4x108xbf16, #tpu.memory_space<vmem>>, vector<4x108xbf16>
    %c0_1 = arith.constant 0 : index
    %c0_2 = arith.constant 0 : index
    %c0_3 = arith.constant 0 : index
    %1 = vector.load %arg1[%c0_1, %c0_2, %c0_3] : memref<1x108x4096xbf16, #tpu.memory_space<vmem>>, vector<1x108x4096xbf16>
    %2 = vector.shape_cast %1 : vector<1x108x4096xbf16> to vector<108x4096xbf16>
    %cst = arith.constant dense<0.000000e+00> : vector<4x4096xf32>
    %3 = tpu.matmul %0, %2, %cst {dimension_numbers = #tpu.dot_dimension_numbers<[1], [0], [0], [1], [0, 0, 1, 1], [], []>} : vector<4x108xbf16>, vector<108x4096xbf16>, vector<4x4096xf32> -> vector<4x4096xf32>
    %c0_4 = arith.constant 0 : index
    %c0_5 = arith.constant 0 : index
    %4 = vector.load %arg3[%c0_4, %c0_5] : memref<4x1xf32, #tpu.memory_space<vmem>>, vector<4x1xf32>
    %5 = vector.broadcast %4 : vector<4x1xf32> to vector<4x4096xf32>
    %6 = arith.addf %3, %5 : vector<4x4096xf32>
    %cst_6 = arith.constant dense<0.000000e+00> : vector<4xf32>
    %7 = vector.multi_reduction <add>, %6, %cst_6 [1] : vector<4x4096xf32> to vector<4xf32>
    %8 = vector.shape_cast %7 : vector<4xf32> to vector<4x1xf32>
    %cst_7 = arith.constant 4.096000e+03 : f32
    %9 = vector.broadcast %cst_7 : f32 to vector<4x1xf32>
    %10 = arith.divf %8, %9 : vector<4x1xf32>
    %11 = vector.broadcast %10 : vector<4x1xf32> to vector<4x4096xf32>
    %12 = arith.subf %6, %11 : vector<4x4096xf32>
    %13 = arith.mulf %12, %12 : vector<4x4096xf32>
    %cst_8 = arith.constant dense<0.000000e+00> : vector<4xf32>
    %14 = vector.multi_reduction <add>, %13, %cst_8 [1] : vector<4x4096xf32> to vector<4xf32>
    %15 = vector.shape_cast %14 : vector<4xf32> to vector<4x1xf32>
    %cst_9 = arith.constant 4.096000e+03 : f32
    %16 = vector.broadcast %cst_9 : f32 to vector<4x1xf32>
    %17 = arith.divf %15, %16 : vector<4x1xf32>
    %cst_10 = arith.constant 9.99999974E-6 : f32
    %18 = vector.broadcast %cst_10 : f32 to vector<4x1xf32>
    %19 = arith.addf %17, %18 : vector<4x1xf32>
    %20 = math.rsqrt %19 : vector<4x1xf32>
    %21 = vector.broadcast %20 : vector<4x1xf32> to vector<4x4096xf32>
    %22 = arith.mulf %12, %21 : vector<4x4096xf32>
    %cst_11 = arith.constant 0.000000e+00 : f32
    %23 = vector.broadcast %cst_11 : f32 to vector<4x4096xf32>
    %24 = arith.cmpf oge, %22, %23 : vector<4x4096xf32>
    %cst_12 = arith.constant 0.00999999977 : f32
    %25 = vector.broadcast %cst_12 : f32 to vector<4x4096xf32>
    %26 = arith.mulf %25, %22 : vector<4x4096xf32>
    %27 = arith.select %24, %22, %26 : vector<4x4096xi1>, vector<4x4096xf32>
    %c0_13 = arith.constant 0 : index
    %c0_14 = arith.constant 0 : index
    %c0_15 = arith.constant 0 : index
    %28 = vector.load %arg4[%c0_13, %c0_14, %c0_15] : memref<1x4x4096xf32, #tpu.memory_space<vmem>>, vector<1x4x4096xf32>
    %29 = vector.shape_cast %28 : vector<1x4x4096xf32> to vector<4x4096xf32>
    %30 = vector.shape_cast %27 : vector<4x4096xf32> to vector<1x4x4096xf32>
    tpu.vector_store %arg4[%c0_13, %c0_14, %c0_15], %30 {strides = array<i32>} : memref<1x4x4096xf32, #tpu.memory_space<vmem>>, vector<1x4x4096xf32>,
    return
  }
  func.func @transform_0(%arg0: i32) -> (i32, i32, i32) {
    %c0_i32 = arith.constant 0 : i32
    %c0_i32_0 = arith.constant 0 : i32
    %c0_i32_1 = arith.constant 0 : i32
    return %arg0, %c0_i32, %c0_i32_0 : i32, i32, i32
  }
  func.func @transform_1(%arg0: i32) -> (i32, i32) {
    %c0_i32 = arith.constant 0 : i32
    %c0_i32_0 = arith.constant 0 : i32
    %c0_i32_1 = arith.constant 0 : i32
    return %c0_i32, %c0_i32_0 : i32, i32
  }
  func.func @transform_2(%arg0: i32) -> (i32, i32) {
    %c0_i32 = arith.constant 0 : i32
    %c0_i32_0 = arith.constant 0 : i32
    %c0_i32_1 = arith.constant 0 : i32
    return %c0_i32, %c0_i32_0 : i32, i32
  }
  func.func @transform_3(%arg0: i32) -> (i32, i32, i32) {
    %c0_i32 = arith.constant 0 : i32
    %c0_i32_0 = arith.constant 0 : i32
    %c0_i32_1 = arith.constant 0 : i32
    return %arg0, %c0_i32, %c0_i32_0 : i32, i32, i32
  }
}

module attributes {stable_mosaic.version = 11 : i64} {
  func.func @_conv_fused_kernel(%arg0: i32, %arg1: memref<1x108x512xbf16, #tpu.memory_space<vmem>>, %arg2: memref<8x108xbf16, #tpu.memory_space<vmem>>, %arg3: memref<8x1xf32, #tpu.memory_space<vmem>>, %arg4: memref<1x8x512xf32, #tpu.memory_space<vmem>>) attributes {dimension_semantics = [#tpu.dimension_semantics<parallel>], iteration_bounds = array<i64: 2>, scalar_prefetch = 0 : i64, scratch_operands = 0 : i64, tpu.core_type = #tpu.core_type<tc>, window_params = [{transform_indices = @transform_0, window_bounds = array<i64: 1, 108, 512>}, {pipeline_mode = #tpu.pipeline_mode<synchronous>, transform_indices = @transform_1, window_bounds = array<i64: 8, 108>}, {pipeline_mode = #tpu.pipeline_mode<synchronous>, transform_indices = @transform_2, window_bounds = array<i64: 8, 1>}, {transform_indices = @transform_3, window_bounds = array<i64: 1, 8, 512>}]} {
    %c0 = arith.constant 0 : index
    %c0_0 = arith.constant 0 : index
    %0 = vector.load %arg2[%c0, %c0_0] : memref<8x108xbf16, #tpu.memory_space<vmem>>, vector<8x108xbf16>
    %c0_1 = arith.constant 0 : index
    %c0_2 = arith.constant 0 : index
    %c0_3 = arith.constant 0 : index
    %1 = vector.load %arg1[%c0_1, %c0_2, %c0_3] : memref<1x108x512xbf16, #tpu.memory_space<vmem>>, vector<1x108x512xbf16>
    %2 = vector.shape_cast %1 : vector<1x108x512xbf16> to vector<108x512xbf16>
    %cst = arith.constant dense<0.000000e+00> : vector<8x512xf32>
    %3 = tpu.matmul %0, %2, %cst {dimension_numbers = #tpu.dot_dimension_numbers<[1], [0], [0], [1], [0, 0, 1, 1], [], []>} : vector<8x108xbf16>, vector<108x512xbf16>, vector<8x512xf32> -> vector<8x512xf32>
    %c0_4 = arith.constant 0 : index
    %c0_5 = arith.constant 0 : index
    %4 = vector.load %arg3[%c0_4, %c0_5] : memref<8x1xf32, #tpu.memory_space<vmem>>, vector<8x1xf32>
    %5 = vector.broadcast %4 : vector<8x1xf32> to vector<8x512xf32>
    %6 = arith.addf %3, %5 : vector<8x512xf32>
    %c0_6 = arith.constant 0 : index
    %c0_7 = arith.constant 0 : index
    %c0_8 = arith.constant 0 : index
    %7 = vector.load %arg4[%c0_6, %c0_7, %c0_8] : memref<1x8x512xf32, #tpu.memory_space<vmem>>, vector<1x8x512xf32>
    %8 = vector.shape_cast %7 : vector<1x8x512xf32> to vector<8x512xf32>
    %9 = vector.shape_cast %6 : vector<8x512xf32> to vector<1x8x512xf32>
    tpu.vector_store %arg4[%c0_6, %c0_7, %c0_8], %9 {strides = array<i32>} : memref<1x8x512xf32, #tpu.memory_space<vmem>>, vector<1x8x512xf32>,
    return
  }
  func.func @transform_0(%arg0: i32) -> (i32, i32, i32) {
    %c0_i32 = arith.constant 0 : i32
    %c0_i32_0 = arith.constant 0 : i32
    %c0_i32_1 = arith.constant 0 : i32
    return %arg0, %c0_i32, %c0_i32_0 : i32, i32, i32
  }
  func.func @transform_1(%arg0: i32) -> (i32, i32) {
    %c0_i32 = arith.constant 0 : i32
    %c0_i32_0 = arith.constant 0 : i32
    %c0_i32_1 = arith.constant 0 : i32
    return %c0_i32, %c0_i32_0 : i32, i32
  }
  func.func @transform_2(%arg0: i32) -> (i32, i32) {
    %c0_i32 = arith.constant 0 : i32
    %c0_i32_0 = arith.constant 0 : i32
    %c0_i32_1 = arith.constant 0 : i32
    return %c0_i32, %c0_i32_0 : i32, i32
  }
  func.func @transform_3(%arg0: i32) -> (i32, i32, i32) {
    %c0_i32 = arith.constant 0 : i32
    %c0_i32_0 = arith.constant 0 : i32
    %c0_i32_1 = arith.constant 0 : i32
    return %arg0, %c0_i32, %c0_i32_0 : i32, i32, i32
  }
}

module attributes {stable_mosaic.version = 11 : i64} {
  func.func @_conv_fused_kernel(%arg0: i32, %arg1: memref<1x216x512xbf16, #tpu.memory_space<vmem>>, %arg2: memref<8x216xbf16, #tpu.memory_space<vmem>>, %arg3: memref<8x1xf32, #tpu.memory_space<vmem>>, %arg4: memref<1x8x512xf32, #tpu.memory_space<vmem>>) attributes {dimension_semantics = [#tpu.dimension_semantics<parallel>], iteration_bounds = array<i64: 2>, scalar_prefetch = 0 : i64, scratch_operands = 0 : i64, tpu.core_type = #tpu.core_type<tc>, window_params = [{transform_indices = @transform_0, window_bounds = array<i64: 1, 216, 512>}, {pipeline_mode = #tpu.pipeline_mode<synchronous>, transform_indices = @transform_1, window_bounds = array<i64: 8, 216>}, {pipeline_mode = #tpu.pipeline_mode<synchronous>, transform_indices = @transform_2, window_bounds = array<i64: 8, 1>}, {transform_indices = @transform_3, window_bounds = array<i64: 1, 8, 512>}]} {
    %c0 = arith.constant 0 : index
    %c0_0 = arith.constant 0 : index
    %0 = vector.load %arg2[%c0, %c0_0] : memref<8x216xbf16, #tpu.memory_space<vmem>>, vector<8x216xbf16>
    %c0_1 = arith.constant 0 : index
    %c0_2 = arith.constant 0 : index
    %c0_3 = arith.constant 0 : index
    %1 = vector.load %arg1[%c0_1, %c0_2, %c0_3] : memref<1x216x512xbf16, #tpu.memory_space<vmem>>, vector<1x216x512xbf16>
    %2 = vector.shape_cast %1 : vector<1x216x512xbf16> to vector<216x512xbf16>
    %cst = arith.constant dense<0.000000e+00> : vector<8x512xf32>
    %3 = tpu.matmul %0, %2, %cst {dimension_numbers = #tpu.dot_dimension_numbers<[1], [0], [0], [1], [0, 0, 1, 1], [], []>} : vector<8x216xbf16>, vector<216x512xbf16>, vector<8x512xf32> -> vector<8x512xf32>
    %c0_4 = arith.constant 0 : index
    %c0_5 = arith.constant 0 : index
    %4 = vector.load %arg3[%c0_4, %c0_5] : memref<8x1xf32, #tpu.memory_space<vmem>>, vector<8x1xf32>
    %5 = vector.broadcast %4 : vector<8x1xf32> to vector<8x512xf32>
    %6 = arith.addf %3, %5 : vector<8x512xf32>
    %cst_6 = arith.constant dense<0.000000e+00> : vector<8xf32>
    %7 = vector.multi_reduction <add>, %6, %cst_6 [1] : vector<8x512xf32> to vector<8xf32>
    %8 = vector.shape_cast %7 : vector<8xf32> to vector<8x1xf32>
    %cst_7 = arith.constant 5.120000e+02 : f32
    %9 = vector.broadcast %cst_7 : f32 to vector<8x1xf32>
    %10 = arith.divf %8, %9 : vector<8x1xf32>
    %11 = vector.broadcast %10 : vector<8x1xf32> to vector<8x512xf32>
    %12 = arith.subf %6, %11 : vector<8x512xf32>
    %13 = arith.mulf %12, %12 : vector<8x512xf32>
    %cst_8 = arith.constant dense<0.000000e+00> : vector<8xf32>
    %14 = vector.multi_reduction <add>, %13, %cst_8 [1] : vector<8x512xf32> to vector<8xf32>
    %15 = vector.shape_cast %14 : vector<8xf32> to vector<8x1xf32>
    %cst_9 = arith.constant 5.120000e+02 : f32
    %16 = vector.broadcast %cst_9 : f32 to vector<8x1xf32>
    %17 = arith.divf %15, %16 : vector<8x1xf32>
    %cst_10 = arith.constant 9.99999974E-6 : f32
    %18 = vector.broadcast %cst_10 : f32 to vector<8x1xf32>
    %19 = arith.addf %17, %18 : vector<8x1xf32>
    %20 = math.rsqrt %19 : vector<8x1xf32>
    %21 = vector.broadcast %20 : vector<8x1xf32> to vector<8x512xf32>
    %22 = arith.mulf %12, %21 : vector<8x512xf32>
    %cst_11 = arith.constant 0.000000e+00 : f32
    %23 = vector.broadcast %cst_11 : f32 to vector<8x512xf32>
    %24 = arith.cmpf oge, %22, %23 : vector<8x512xf32>
    %cst_12 = arith.constant 0.00999999977 : f32
    %25 = vector.broadcast %cst_12 : f32 to vector<8x512xf32>
    %26 = arith.mulf %25, %22 : vector<8x512xf32>
    %27 = arith.select %24, %22, %26 : vector<8x512xi1>, vector<8x512xf32>
    %c0_13 = arith.constant 0 : index
    %c0_14 = arith.constant 0 : index
    %c0_15 = arith.constant 0 : index
    %28 = vector.load %arg4[%c0_13, %c0_14, %c0_15] : memref<1x8x512xf32, #tpu.memory_space<vmem>>, vector<1x8x512xf32>
    %29 = vector.shape_cast %28 : vector<1x8x512xf32> to vector<8x512xf32>
    %30 = vector.shape_cast %27 : vector<8x512xf32> to vector<1x8x512xf32>
    tpu.vector_store %arg4[%c0_13, %c0_14, %c0_15], %30 {strides = array<i32>} : memref<1x8x512xf32, #tpu.memory_space<vmem>>, vector<1x8x512xf32>,
    return
  }
  func.func @transform_0(%arg0: i32) -> (i32, i32, i32) {
    %c0_i32 = arith.constant 0 : i32
    %c0_i32_0 = arith.constant 0 : i32
    %c0_i32_1 = arith.constant 0 : i32
    return %arg0, %c0_i32, %c0_i32_0 : i32, i32, i32
  }
  func.func @transform_1(%arg0: i32) -> (i32, i32) {
    %c0_i32 = arith.constant 0 : i32
    %c0_i32_0 = arith.constant 0 : i32
    %c0_i32_1 = arith.constant 0 : i32
    return %c0_i32, %c0_i32_0 : i32, i32
  }
  func.func @transform_2(%arg0: i32) -> (i32, i32) {
    %c0_i32 = arith.constant 0 : i32
    %c0_i32_0 = arith.constant 0 : i32
    %c0_i32_1 = arith.constant 0 : i32
    return %c0_i32, %c0_i32_0 : i32, i32
  }
  func.func @transform_3(%arg0: i32) -> (i32, i32, i32) {
    %c0_i32 = arith.constant 0 : i32
    %c0_i32_0 = arith.constant 0 : i32
    %c0_i32_1 = arith.constant 0 : i32
    return %arg0, %c0_i32, %c0_i32_0 : i32, i32, i32
  }
}

module attributes {stable_mosaic.version = 11 : i64} {
  func.func @_conv_fused_kernel(%arg0: i32, %arg1: memref<1x216x512xbf16, #tpu.memory_space<vmem>>, %arg2: memref<8x216xbf16, #tpu.memory_space<vmem>>, %arg3: memref<8x1xf32, #tpu.memory_space<vmem>>, %arg4: memref<1x8x512xf32, #tpu.memory_space<vmem>>, %arg5: memref<1x8x512xf32, #tpu.memory_space<vmem>>) attributes {dimension_semantics = [#tpu.dimension_semantics<parallel>], iteration_bounds = array<i64: 2>, scalar_prefetch = 0 : i64, scratch_operands = 0 : i64, tpu.core_type = #tpu.core_type<tc>, window_params = [{transform_indices = @transform_0, window_bounds = array<i64: 1, 216, 512>}, {pipeline_mode = #tpu.pipeline_mode<synchronous>, transform_indices = @transform_1, window_bounds = array<i64: 8, 216>}, {pipeline_mode = #tpu.pipeline_mode<synchronous>, transform_indices = @transform_2, window_bounds = array<i64: 8, 1>}, {transform_indices = @transform_3, window_bounds = array<i64: 1, 8, 512>}, {transform_indices = @transform_4, window_bounds = array<i64: 1, 8, 512>}]} {
    %c0 = arith.constant 0 : index
    %c0_0 = arith.constant 0 : index
    %0 = vector.load %arg2[%c0, %c0_0] : memref<8x216xbf16, #tpu.memory_space<vmem>>, vector<8x216xbf16>
    %c0_1 = arith.constant 0 : index
    %c0_2 = arith.constant 0 : index
    %c0_3 = arith.constant 0 : index
    %1 = vector.load %arg1[%c0_1, %c0_2, %c0_3] : memref<1x216x512xbf16, #tpu.memory_space<vmem>>, vector<1x216x512xbf16>
    %2 = vector.shape_cast %1 : vector<1x216x512xbf16> to vector<216x512xbf16>
    %cst = arith.constant dense<0.000000e+00> : vector<8x512xf32>
    %3 = tpu.matmul %0, %2, %cst {dimension_numbers = #tpu.dot_dimension_numbers<[1], [0], [0], [1], [0, 0, 1, 1], [], []>} : vector<8x216xbf16>, vector<216x512xbf16>, vector<8x512xf32> -> vector<8x512xf32>
    %c0_4 = arith.constant 0 : index
    %c0_5 = arith.constant 0 : index
    %4 = vector.load %arg3[%c0_4, %c0_5] : memref<8x1xf32, #tpu.memory_space<vmem>>, vector<8x1xf32>
    %5 = vector.broadcast %4 : vector<8x1xf32> to vector<8x512xf32>
    %6 = arith.addf %3, %5 : vector<8x512xf32>
    %cst_6 = arith.constant dense<0.000000e+00> : vector<8xf32>
    %7 = vector.multi_reduction <add>, %6, %cst_6 [1] : vector<8x512xf32> to vector<8xf32>
    %8 = vector.shape_cast %7 : vector<8xf32> to vector<8x1xf32>
    %cst_7 = arith.constant 5.120000e+02 : f32
    %9 = vector.broadcast %cst_7 : f32 to vector<8x1xf32>
    %10 = arith.divf %8, %9 : vector<8x1xf32>
    %11 = vector.broadcast %10 : vector<8x1xf32> to vector<8x512xf32>
    %12 = arith.subf %6, %11 : vector<8x512xf32>
    %13 = arith.mulf %12, %12 : vector<8x512xf32>
    %cst_8 = arith.constant dense<0.000000e+00> : vector<8xf32>
    %14 = vector.multi_reduction <add>, %13, %cst_8 [1] : vector<8x512xf32> to vector<8xf32>
    %15 = vector.shape_cast %14 : vector<8xf32> to vector<8x1xf32>
    %cst_9 = arith.constant 5.120000e+02 : f32
    %16 = vector.broadcast %cst_9 : f32 to vector<8x1xf32>
    %17 = arith.divf %15, %16 : vector<8x1xf32>
    %cst_10 = arith.constant 9.99999974E-6 : f32
    %18 = vector.broadcast %cst_10 : f32 to vector<8x1xf32>
    %19 = arith.addf %17, %18 : vector<8x1xf32>
    %20 = math.rsqrt %19 : vector<8x1xf32>
    %21 = vector.broadcast %20 : vector<8x1xf32> to vector<8x512xf32>
    %22 = arith.mulf %12, %21 : vector<8x512xf32>
    %cst_11 = arith.constant 0.000000e+00 : f32
    %23 = vector.broadcast %cst_11 : f32 to vector<8x512xf32>
    %24 = arith.cmpf oge, %22, %23 : vector<8x512xf32>
    %cst_12 = arith.constant 0.00999999977 : f32
    %25 = vector.broadcast %cst_12 : f32 to vector<8x512xf32>
    %26 = arith.mulf %25, %22 : vector<8x512xf32>
    %27 = arith.select %24, %22, %26 : vector<8x512xi1>, vector<8x512xf32>
    %c0_13 = arith.constant 0 : index
    %c0_14 = arith.constant 0 : index
    %c0_15 = arith.constant 0 : index
    %28 = vector.load %arg4[%c0_13, %c0_14, %c0_15] : memref<1x8x512xf32, #tpu.memory_space<vmem>>, vector<1x8x512xf32>
    %29 = vector.shape_cast %28 : vector<1x8x512xf32> to vector<8x512xf32>
    %30 = arith.addf %27, %29 : vector<8x512xf32>
    %c0_16 = arith.constant 0 : index
    %c0_17 = arith.constant 0 : index
    %c0_18 = arith.constant 0 : index
    %31 = vector.load %arg5[%c0_16, %c0_17, %c0_18] : memref<1x8x512xf32, #tpu.memory_space<vmem>>, vector<1x8x512xf32>
    %32 = vector.shape_cast %31 : vector<1x8x512xf32> to vector<8x512xf32>
    %33 = vector.shape_cast %30 : vector<8x512xf32> to vector<1x8x512xf32>
    tpu.vector_store %arg5[%c0_16, %c0_17, %c0_18], %33 {strides = array<i32>} : memref<1x8x512xf32, #tpu.memory_space<vmem>>, vector<1x8x512xf32>,
    return
  }
  func.func @transform_0(%arg0: i32) -> (i32, i32, i32) {
    %c0_i32 = arith.constant 0 : i32
    %c0_i32_0 = arith.constant 0 : i32
    %c0_i32_1 = arith.constant 0 : i32
    return %arg0, %c0_i32, %c0_i32_0 : i32, i32, i32
  }
  func.func @transform_1(%arg0: i32) -> (i32, i32) {
    %c0_i32 = arith.constant 0 : i32
    %c0_i32_0 = arith.constant 0 : i32
    %c0_i32_1 = arith.constant 0 : i32
    return %c0_i32, %c0_i32_0 : i32, i32
  }
  func.func @transform_2(%arg0: i32) -> (i32, i32) {
    %c0_i32 = arith.constant 0 : i32
    %c0_i32_0 = arith.constant 0 : i32
    %c0_i32_1 = arith.constant 0 : i32
    return %c0_i32, %c0_i32_0 : i32, i32
  }
  func.func @transform_3(%arg0: i32) -> (i32, i32, i32) {
    %c0_i32 = arith.constant 0 : i32
    %c0_i32_0 = arith.constant 0 : i32
    %c0_i32_1 = arith.constant 0 : i32
    return %arg0, %c0_i32, %c0_i32_0 : i32, i32, i32
  }
  func.func @transform_4(%arg0: i32) -> (i32, i32, i32) {
    %c0_i32 = arith.constant 0 : i32
    %c0_i32_0 = arith.constant 0 : i32
    %c0_i32_1 = arith.constant 0 : i32
    return %arg0, %c0_i32, %c0_i32_0 : i32, i32, i32
  }
}

module attributes {stable_mosaic.version = 11 : i64} {
  func.func @_conv_fused_kernel(%arg0: i32, %arg1: memref<1x216x64xbf16, #tpu.memory_space<vmem>>, %arg2: memref<16x216xbf16, #tpu.memory_space<vmem>>, %arg3: memref<16x1xf32, #tpu.memory_space<vmem>>, %arg4: memref<1x16x64xf32, #tpu.memory_space<vmem>>) attributes {dimension_semantics = [#tpu.dimension_semantics<parallel>], iteration_bounds = array<i64: 2>, scalar_prefetch = 0 : i64, scratch_operands = 0 : i64, tpu.core_type = #tpu.core_type<tc>, window_params = [{transform_indices = @transform_0, window_bounds = array<i64: 1, 216, 64>}, {pipeline_mode = #tpu.pipeline_mode<synchronous>, transform_indices = @transform_1, window_bounds = array<i64: 16, 216>}, {pipeline_mode = #tpu.pipeline_mode<synchronous>, transform_indices = @transform_2, window_bounds = array<i64: 16, 1>}, {transform_indices = @transform_3, window_bounds = array<i64: 1, 16, 64>}]} {
    %c0 = arith.constant 0 : index
    %c0_0 = arith.constant 0 : index
    %0 = vector.load %arg2[%c0, %c0_0] : memref<16x216xbf16, #tpu.memory_space<vmem>>, vector<16x216xbf16>
    %c0_1 = arith.constant 0 : index
    %c0_2 = arith.constant 0 : index
    %c0_3 = arith.constant 0 : index
    %1 = vector.load %arg1[%c0_1, %c0_2, %c0_3] : memref<1x216x64xbf16, #tpu.memory_space<vmem>>, vector<1x216x64xbf16>
    %2 = vector.shape_cast %1 : vector<1x216x64xbf16> to vector<216x64xbf16>
    %cst = arith.constant dense<0.000000e+00> : vector<16x64xf32>
    %3 = tpu.matmul %0, %2, %cst {dimension_numbers = #tpu.dot_dimension_numbers<[1], [0], [0], [1], [0, 0, 1, 1], [], []>} : vector<16x216xbf16>, vector<216x64xbf16>, vector<16x64xf32> -> vector<16x64xf32>
    %c0_4 = arith.constant 0 : index
    %c0_5 = arith.constant 0 : index
    %4 = vector.load %arg3[%c0_4, %c0_5] : memref<16x1xf32, #tpu.memory_space<vmem>>, vector<16x1xf32>
    %5 = vector.broadcast %4 : vector<16x1xf32> to vector<16x64xf32>
    %6 = arith.addf %3, %5 : vector<16x64xf32>
    %c0_6 = arith.constant 0 : index
    %c0_7 = arith.constant 0 : index
    %c0_8 = arith.constant 0 : index
    %7 = vector.load %arg4[%c0_6, %c0_7, %c0_8] : memref<1x16x64xf32, #tpu.memory_space<vmem>>, vector<1x16x64xf32>
    %8 = vector.shape_cast %7 : vector<1x16x64xf32> to vector<16x64xf32>
    %9 = vector.shape_cast %6 : vector<16x64xf32> to vector<1x16x64xf32>
    tpu.vector_store %arg4[%c0_6, %c0_7, %c0_8], %9 {strides = array<i32>} : memref<1x16x64xf32, #tpu.memory_space<vmem>>, vector<1x16x64xf32>,
    return
  }
  func.func @transform_0(%arg0: i32) -> (i32, i32, i32) {
    %c0_i32 = arith.constant 0 : i32
    %c0_i32_0 = arith.constant 0 : i32
    %c0_i32_1 = arith.constant 0 : i32
    return %arg0, %c0_i32, %c0_i32_0 : i32, i32, i32
  }
  func.func @transform_1(%arg0: i32) -> (i32, i32) {
    %c0_i32 = arith.constant 0 : i32
    %c0_i32_0 = arith.constant 0 : i32
    %c0_i32_1 = arith.constant 0 : i32
    return %c0_i32, %c0_i32_0 : i32, i32
  }
  func.func @transform_2(%arg0: i32) -> (i32, i32) {
    %c0_i32 = arith.constant 0 : i32
    %c0_i32_0 = arith.constant 0 : i32
    %c0_i32_1 = arith.constant 0 : i32
    return %c0_i32, %c0_i32_0 : i32, i32
  }
  func.func @transform_3(%arg0: i32) -> (i32, i32, i32) {
    %c0_i32 = arith.constant 0 : i32
    %c0_i32_0 = arith.constant 0 : i32
    %c0_i32_1 = arith.constant 0 : i32
    return %arg0, %c0_i32, %c0_i32_0 : i32, i32, i32
  }
}

module attributes {stable_mosaic.version = 11 : i64} {
  func.func @_conv_fused_kernel(%arg0: i32, %arg1: memref<1x432x64xbf16, #tpu.memory_space<vmem>>, %arg2: memref<16x432xbf16, #tpu.memory_space<vmem>>, %arg3: memref<16x1xf32, #tpu.memory_space<vmem>>, %arg4: memref<1x16x64xf32, #tpu.memory_space<vmem>>) attributes {dimension_semantics = [#tpu.dimension_semantics<parallel>], iteration_bounds = array<i64: 2>, scalar_prefetch = 0 : i64, scratch_operands = 0 : i64, tpu.core_type = #tpu.core_type<tc>, window_params = [{transform_indices = @transform_0, window_bounds = array<i64: 1, 432, 64>}, {pipeline_mode = #tpu.pipeline_mode<synchronous>, transform_indices = @transform_1, window_bounds = array<i64: 16, 432>}, {pipeline_mode = #tpu.pipeline_mode<synchronous>, transform_indices = @transform_2, window_bounds = array<i64: 16, 1>}, {transform_indices = @transform_3, window_bounds = array<i64: 1, 16, 64>}]} {
    %c0 = arith.constant 0 : index
    %c0_0 = arith.constant 0 : index
    %0 = vector.load %arg2[%c0, %c0_0] : memref<16x432xbf16, #tpu.memory_space<vmem>>, vector<16x432xbf16>
    %c0_1 = arith.constant 0 : index
    %c0_2 = arith.constant 0 : index
    %c0_3 = arith.constant 0 : index
    %1 = vector.load %arg1[%c0_1, %c0_2, %c0_3] : memref<1x432x64xbf16, #tpu.memory_space<vmem>>, vector<1x432x64xbf16>
    %2 = vector.shape_cast %1 : vector<1x432x64xbf16> to vector<432x64xbf16>
    %cst = arith.constant dense<0.000000e+00> : vector<16x64xf32>
    %3 = tpu.matmul %0, %2, %cst {dimension_numbers = #tpu.dot_dimension_numbers<[1], [0], [0], [1], [0, 0, 1, 1], [], []>} : vector<16x432xbf16>, vector<432x64xbf16>, vector<16x64xf32> -> vector<16x64xf32>
    %c0_4 = arith.constant 0 : index
    %c0_5 = arith.constant 0 : index
    %4 = vector.load %arg3[%c0_4, %c0_5] : memref<16x1xf32, #tpu.memory_space<vmem>>, vector<16x1xf32>
    %5 = vector.broadcast %4 : vector<16x1xf32> to vector<16x64xf32>
    %6 = arith.addf %3, %5 : vector<16x64xf32>
    %cst_6 = arith.constant dense<0.000000e+00> : vector<16xf32>
    %7 = vector.multi_reduction <add>, %6, %cst_6 [1] : vector<16x64xf32> to vector<16xf32>
    %8 = vector.shape_cast %7 : vector<16xf32> to vector<16x1xf32>
    %cst_7 = arith.constant 6.400000e+01 : f32
    %9 = vector.broadcast %cst_7 : f32 to vector<16x1xf32>
    %10 = arith.divf %8, %9 : vector<16x1xf32>
    %11 = vector.broadcast %10 : vector<16x1xf32> to vector<16x64xf32>
    %12 = arith.subf %6, %11 : vector<16x64xf32>
    %13 = arith.mulf %12, %12 : vector<16x64xf32>
    %cst_8 = arith.constant dense<0.000000e+00> : vector<16xf32>
    %14 = vector.multi_reduction <add>, %13, %cst_8 [1] : vector<16x64xf32> to vector<16xf32>
    %15 = vector.shape_cast %14 : vector<16xf32> to vector<16x1xf32>
    %cst_9 = arith.constant 6.400000e+01 : f32
    %16 = vector.broadcast %cst_9 : f32 to vector<16x1xf32>
    %17 = arith.divf %15, %16 : vector<16x1xf32>
    %cst_10 = arith.constant 9.99999974E-6 : f32
    %18 = vector.broadcast %cst_10 : f32 to vector<16x1xf32>
    %19 = arith.addf %17, %18 : vector<16x1xf32>
    %20 = math.rsqrt %19 : vector<16x1xf32>
    %21 = vector.broadcast %20 : vector<16x1xf32> to vector<16x64xf32>
    %22 = arith.mulf %12, %21 : vector<16x64xf32>
    %cst_11 = arith.constant 0.000000e+00 : f32
    %23 = vector.broadcast %cst_11 : f32 to vector<16x64xf32>
    %24 = arith.cmpf oge, %22, %23 : vector<16x64xf32>
    %cst_12 = arith.constant 0.00999999977 : f32
    %25 = vector.broadcast %cst_12 : f32 to vector<16x64xf32>
    %26 = arith.mulf %25, %22 : vector<16x64xf32>
    %27 = arith.select %24, %22, %26 : vector<16x64xi1>, vector<16x64xf32>
    %c0_13 = arith.constant 0 : index
    %c0_14 = arith.constant 0 : index
    %c0_15 = arith.constant 0 : index
    %28 = vector.load %arg4[%c0_13, %c0_14, %c0_15] : memref<1x16x64xf32, #tpu.memory_space<vmem>>, vector<1x16x64xf32>
    %29 = vector.shape_cast %28 : vector<1x16x64xf32> to vector<16x64xf32>
    %30 = vector.shape_cast %27 : vector<16x64xf32> to vector<1x16x64xf32>
    tpu.vector_store %arg4[%c0_13, %c0_14, %c0_15], %30 {strides = array<i32>} : memref<1x16x64xf32, #tpu.memory_space<vmem>>, vector<1x16x64xf32>,
    return
  }
  func.func @transform_0(%arg0: i32) -> (i32, i32, i32) {
    %c0_i32 = arith.constant 0 : i32
    %c0_i32_0 = arith.constant 0 : i32
    %c0_i32_1 = arith.constant 0 : i32
    return %arg0, %c0_i32, %c0_i32_0 : i32, i32, i32
  }
  func.func @transform_1(%arg0: i32) -> (i32, i32) {
    %c0_i32 = arith.constant 0 : i32
    %c0_i32_0 = arith.constant 0 : i32
    %c0_i32_1 = arith.constant 0 : i32
    return %c0_i32, %c0_i32_0 : i32, i32
  }
  func.func @transform_2(%arg0: i32) -> (i32, i32) {
    %c0_i32 = arith.constant 0 : i32
    %c0_i32_0 = arith.constant 0 : i32
    %c0_i32_1 = arith.constant 0 : i32
    return %c0_i32, %c0_i32_0 : i32, i32
  }
  func.func @transform_3(%arg0: i32) -> (i32, i32, i32) {
    %c0_i32 = arith.constant 0 : i32
    %c0_i32_0 = arith.constant 0 : i32
    %c0_i32_1 = arith.constant 0 : i32
    return %arg0, %c0_i32, %c0_i32_0 : i32, i32, i32
  }
}

module attributes {stable_mosaic.version = 11 : i64} {
  func.func @_conv_fused_kernel(%arg0: i32, %arg1: memref<1x432x64xbf16, #tpu.memory_space<vmem>>, %arg2: memref<16x432xbf16, #tpu.memory_space<vmem>>, %arg3: memref<16x1xf32, #tpu.memory_space<vmem>>, %arg4: memref<1x16x64xf32, #tpu.memory_space<vmem>>, %arg5: memref<1x16x64xf32, #tpu.memory_space<vmem>>) attributes {dimension_semantics = [#tpu.dimension_semantics<parallel>], iteration_bounds = array<i64: 2>, scalar_prefetch = 0 : i64, scratch_operands = 0 : i64, tpu.core_type = #tpu.core_type<tc>, window_params = [{transform_indices = @transform_0, window_bounds = array<i64: 1, 432, 64>}, {pipeline_mode = #tpu.pipeline_mode<synchronous>, transform_indices = @transform_1, window_bounds = array<i64: 16, 432>}, {pipeline_mode = #tpu.pipeline_mode<synchronous>, transform_indices = @transform_2, window_bounds = array<i64: 16, 1>}, {transform_indices = @transform_3, window_bounds = array<i64: 1, 16, 64>}, {transform_indices = @transform_4, window_bounds = array<i64: 1, 16, 64>}]} {
    %c0 = arith.constant 0 : index
    %c0_0 = arith.constant 0 : index
    %0 = vector.load %arg2[%c0, %c0_0] : memref<16x432xbf16, #tpu.memory_space<vmem>>, vector<16x432xbf16>
    %c0_1 = arith.constant 0 : index
    %c0_2 = arith.constant 0 : index
    %c0_3 = arith.constant 0 : index
    %1 = vector.load %arg1[%c0_1, %c0_2, %c0_3] : memref<1x432x64xbf16, #tpu.memory_space<vmem>>, vector<1x432x64xbf16>
    %2 = vector.shape_cast %1 : vector<1x432x64xbf16> to vector<432x64xbf16>
    %cst = arith.constant dense<0.000000e+00> : vector<16x64xf32>
    %3 = tpu.matmul %0, %2, %cst {dimension_numbers = #tpu.dot_dimension_numbers<[1], [0], [0], [1], [0, 0, 1, 1], [], []>} : vector<16x432xbf16>, vector<432x64xbf16>, vector<16x64xf32> -> vector<16x64xf32>
    %c0_4 = arith.constant 0 : index
    %c0_5 = arith.constant 0 : index
    %4 = vector.load %arg3[%c0_4, %c0_5] : memref<16x1xf32, #tpu.memory_space<vmem>>, vector<16x1xf32>
    %5 = vector.broadcast %4 : vector<16x1xf32> to vector<16x64xf32>
    %6 = arith.addf %3, %5 : vector<16x64xf32>
    %cst_6 = arith.constant dense<0.000000e+00> : vector<16xf32>
    %7 = vector.multi_reduction <add>, %6, %cst_6 [1] : vector<16x64xf32> to vector<16xf32>
    %8 = vector.shape_cast %7 : vector<16xf32> to vector<16x1xf32>
    %cst_7 = arith.constant 6.400000e+01 : f32
    %9 = vector.broadcast %cst_7 : f32 to vector<16x1xf32>
    %10 = arith.divf %8, %9 : vector<16x1xf32>
    %11 = vector.broadcast %10 : vector<16x1xf32> to vector<16x64xf32>
    %12 = arith.subf %6, %11 : vector<16x64xf32>
    %13 = arith.mulf %12, %12 : vector<16x64xf32>
    %cst_8 = arith.constant dense<0.000000e+00> : vector<16xf32>
    %14 = vector.multi_reduction <add>, %13, %cst_8 [1] : vector<16x64xf32> to vector<16xf32>
    %15 = vector.shape_cast %14 : vector<16xf32> to vector<16x1xf32>
    %cst_9 = arith.constant 6.400000e+01 : f32
    %16 = vector.broadcast %cst_9 : f32 to vector<16x1xf32>
    %17 = arith.divf %15, %16 : vector<16x1xf32>
    %cst_10 = arith.constant 9.99999974E-6 : f32
    %18 = vector.broadcast %cst_10 : f32 to vector<16x1xf32>
    %19 = arith.addf %17, %18 : vector<16x1xf32>
    %20 = math.rsqrt %19 : vector<16x1xf32>
    %21 = vector.broadcast %20 : vector<16x1xf32> to vector<16x64xf32>
    %22 = arith.mulf %12, %21 : vector<16x64xf32>
    %cst_11 = arith.constant 0.000000e+00 : f32
    %23 = vector.broadcast %cst_11 : f32 to vector<16x64xf32>
    %24 = arith.cmpf oge, %22, %23 : vector<16x64xf32>
    %cst_12 = arith.constant 0.00999999977 : f32
    %25 = vector.broadcast %cst_12 : f32 to vector<16x64xf32>
    %26 = arith.mulf %25, %22 : vector<16x64xf32>
    %27 = arith.select %24, %22, %26 : vector<16x64xi1>, vector<16x64xf32>
    %c0_13 = arith.constant 0 : index
    %c0_14 = arith.constant 0 : index
    %c0_15 = arith.constant 0 : index
    %28 = vector.load %arg4[%c0_13, %c0_14, %c0_15] : memref<1x16x64xf32, #tpu.memory_space<vmem>>, vector<1x16x64xf32>
    %29 = vector.shape_cast %28 : vector<1x16x64xf32> to vector<16x64xf32>
    %30 = arith.addf %27, %29 : vector<16x64xf32>
    %c0_16 = arith.constant 0 : index
    %c0_17 = arith.constant 0 : index
    %c0_18 = arith.constant 0 : index
    %31 = vector.load %arg5[%c0_16, %c0_17, %c0_18] : memref<1x16x64xf32, #tpu.memory_space<vmem>>, vector<1x16x64xf32>
    %32 = vector.shape_cast %31 : vector<1x16x64xf32> to vector<16x64xf32>
    %33 = vector.shape_cast %30 : vector<16x64xf32> to vector<1x16x64xf32>
    tpu.vector_store %arg5[%c0_16, %c0_17, %c0_18], %33 {strides = array<i32>} : memref<1x16x64xf32, #tpu.memory_space<vmem>>, vector<1x16x64xf32>,
    return
  }
  func.func @transform_0(%arg0: i32) -> (i32, i32, i32) {
    %c0_i32 = arith.constant 0 : i32
    %c0_i32_0 = arith.constant 0 : i32
    %c0_i32_1 = arith.constant 0 : i32
    return %arg0, %c0_i32, %c0_i32_0 : i32, i32, i32
  }
  func.func @transform_1(%arg0: i32) -> (i32, i32) {
    %c0_i32 = arith.constant 0 : i32
    %c0_i32_0 = arith.constant 0 : i32
    %c0_i32_1 = arith.constant 0 : i32
    return %c0_i32, %c0_i32_0 : i32, i32
  }
  func.func @transform_2(%arg0: i32) -> (i32, i32) {
    %c0_i32 = arith.constant 0 : i32
    %c0_i32_0 = arith.constant 0 : i32
    %c0_i32_1 = arith.constant 0 : i32
    return %c0_i32, %c0_i32_0 : i32, i32
  }
  func.func @transform_3(%arg0: i32) -> (i32, i32, i32) {
    %c0_i32 = arith.constant 0 : i32
    %c0_i32_0 = arith.constant 0 : i32
    %c0_i32_1 = arith.constant 0 : i32
    return %arg0, %c0_i32, %c0_i32_0 : i32, i32, i32
  }
  func.func @transform_4(%arg0: i32) -> (i32, i32, i32) {
    %c0_i32 = arith.constant 0 : i32
    %c0_i32_0 = arith.constant 0 : i32
    %c0_i32_1 = arith.constant 0 : i32
    return %arg0, %c0_i32, %c0_i32_0 : i32, i32, i32
  }
}

module attributes {stable_mosaic.version = 11 : i64} {
  func.func @_patch_embed_kernel(%arg0: memref<16x128xbf16, #tpu.memory_space<vmem>>, %arg1: memref<128x32xbf16, #tpu.memory_space<vmem>>, %arg2: memref<1x32xf32, #tpu.memory_space<vmem>>, %arg3: memref<8x32xf32, #tpu.memory_space<vmem>>, %arg4: memref<16x32xf32, #tpu.memory_space<vmem>>) attributes {dimension_semantics = [], scalar_prefetch = 0 : i64, scratch_operands = 0 : i64, tpu.core_type = #tpu.core_type<tc>} {
    %c0 = arith.constant 0 : index
    %c0_0 = arith.constant 0 : index
    %0 = vector.load %arg0[%c0, %c0_0] : memref<16x128xbf16, #tpu.memory_space<vmem>>, vector<16x128xbf16>
    %c0_1 = arith.constant 0 : index
    %c0_2 = arith.constant 0 : index
    %1 = vector.load %arg1[%c0_1, %c0_2] : memref<128x32xbf16, #tpu.memory_space<vmem>>, vector<128x32xbf16>
    %cst = arith.constant dense<0.000000e+00> : vector<16x32xf32>
    %2 = tpu.matmul %0, %1, %cst {dimension_numbers = #tpu.dot_dimension_numbers<[1], [0], [0], [1], [0, 0, 1, 1], [], []>} : vector<16x128xbf16>, vector<128x32xbf16>, vector<16x32xf32> -> vector<16x32xf32>
    %c0_3 = arith.constant 0 : index
    %c0_4 = arith.constant 0 : index
    %3 = vector.load %arg3[%c0_3, %c0_4] : memref<8x32xf32, #tpu.memory_space<vmem>>, vector<8x32xf32>
    %4 = tpu.concatenate %3, %3 in 0 : vector<8x32xf32>, vector<8x32xf32> -> vector<16x32xf32>
    %c0_5 = arith.constant 0 : index
    %c0_6 = arith.constant 0 : index
    %5 = vector.load %arg2[%c0_5, %c0_6] : memref<1x32xf32, #tpu.memory_space<vmem>>, vector<1x32xf32>
    %6 = vector.broadcast %5 : vector<1x32xf32> to vector<16x32xf32>
    %7 = arith.addf %2, %6 : vector<16x32xf32>
    %8 = arith.addf %7, %4 : vector<16x32xf32>
    %c0_7 = arith.constant 0 : index
    %c0_8 = arith.constant 0 : index
    %9 = vector.load %arg4[%c0_7, %c0_8] : memref<16x32xf32, #tpu.memory_space<vmem>>, vector<16x32xf32>
    tpu.vector_store %arg4[%c0_7, %c0_8], %8 {strides = array<i32>} : memref<16x32xf32, #tpu.memory_space<vmem>>, vector<16x32xf32>,
    return
  }
}

</mosaic_0001>

<bundles_post_ra>
// kernel: embeddings_forward.9
= control target key start
LH: loop header
LB: loop body
LE: loop exit
PB: predicated region body
PF: predicated region fallthrough
CT: control target
= control target key end

     0   :  { %s1890_s12 = smov 0   ;;  %s2726_s0 = inlined_call_operand.vmem [shape: bf16[2,27,4096], index: 0, kind: input, shape index: {}]   ;;  %s2727_s1 = inlined_call_operand.vmem [shape: bf16[4,27], index: 1, kind: input, shape index: {}]   ;;  %s2728_s2 = inlined_call_operand.vmem [shape: f32[4,1], index: 2, kind: input, shape index: {}]   ;;  %s2729_s3 = inlined_call_operand.vmem [shape: f32[2,4,4096], index: 3, kind: output, shape index: {}]  }
   0x1 LB: > { %s1754_s13 = sadd.s32 4294967295, %s1866_s12   ;;  %p1758_p0 = scmp.ge.s32.totalorder %s1866_s12, 1  ;;  %s1866_s12 = sphi %s1890_s12, %s13_s12  }
   0x2   : > { %p137_p1 = scmp.lt.s32.totalorder %s1866_s12, 3 }
   0x4   : > { %p138_p2 = pnand %p1758_p0, %p137_p1 }
   0x5   : > { %p161_p3 = scmp.lt.s32.totalorder (!%p138_p2), %s1754_s13, 1  ;;  %vm535_vm0 = vcmask (!%p138_p2), 1044480   ;;  %v1868_v0 = vmov (!%p138_p2), 0   ;;  %v237_v1 = vld [vmem:[%s2728_s2] sm:$0xf] (!%p138_p2)  ;;  %vm536_vm1 = vcmask (!%p138_p2), 1045504  }
   0x6   : > { %141 = sbr.rel (%p138_p2) target bundleno = 717 (0x2cd), region = 32  ;;  %667 = vmatprep.mubr.bf16.mxu0 (!%p138_p2), %v1868_v0  ;;  %708 = vmatprep.mubr.bf16.mxu1 (!%p138_p2), %v1868_v0  ;;  %v1869_v2 = vmov (!%p138_p2), 65535   ;;  %v1937_v37 = vld [vmem:[%s2727_s1] sm:$0x3] (!%p138_p2)  ;;  %vm531_vm2 = vcmask (!%p138_p2), 220160   ;;  %vm1291_vm3 = vcmask (!%p138_p2), 1043456  }
   0x7   : > { %1857 = vset.pattern.permute.xlu0 (!%p138_p2), %v1868_v0  ;;  %v537_v3 = vsel (!%p138_p2), %vm535_vm0, 4294967295, %v1869_v2 }
   0x8   : > { %240 = vperm.xlu0 (!%p138_p2), %1857, %v237_v1   ;;  %v1918_v12 = vsel (!%p138_p2), %vm536_vm1, %v537_v3, 0 }
   0xd   : > { %s2745_s13 = smov (!%p161_p3, %s1754_s13), 1 }
   0xe   : > { %s1845_s16 = sshll.u32 %s2745_s13, 9  ;;  %s1846_s22 = sshll.u32 %s2745_s13, 7 }
   0xf   : > { %s1910_s19 = scalar_lea.vmem %s2726_s0, %s1845_s16  ;;  %s2685_s25 = scalar_lea.vmem %s2729_s3, %s1846_s22 }
  0x10   : > { %v173_v4 = vld [vmem:[%s1910_s19] sm:$0xff]  ;;  %v174_v6 = vld [vmem:[%s1910_s19 + $0x8] sm:$0xff]  ;;  %v175_v19 = vld [vmem:[%s1910_s19 + $0x10] sm:$0xff] }
  0x11   : > { %v189_v5 = vld [vmem:[%s1910_s19 + $0x80] sm:$0xff]  ;;  %v190_v8 = vld [vmem:[%s1910_s19 + $0x88] sm:$0xff]  ;;  %v191_v22 = vld [vmem:[%s1910_s19 + $0x90] sm:$0xff] }
  0x12   : > { %v1764_v7 = vcombine.high %v173_v4, %v189_v5  ;;  %v1763_v9 = vcombine.low %v173_v4, %v189_v5  ;;  %v205_v10 = vld [vmem:[%s1910_s19 + $0x100] sm:$0xff]  ;;  %v1766_v13 = vcombine.high %v174_v6, %v190_v8  ;;  %v1765_v14 = vcombine.low %v174_v6, %v190_v8  ;;  %v206_v16 = vld [vmem:[%s1910_s19 + $0x108] sm:$0xff]  ;;  %v176_v23 = vld [vmem:[%s1910_s19 + $0x18] sm:$0xff] }
  0x13   : > { %v221_v11 = vld [vmem:[%s1910_s19 + $0x180] sm:$0x33]  ;;  %v222_v17 = vld [vmem:[%s1910_s19 + $0x188] sm:$0x33]  ;;  %v192_v24 = vld [vmem:[%s1910_s19 + $0x98] sm:$0xff]  ;;  %v1768_v32 = vcombine.high %v175_v19, %v191_v22  ;;  %v1767_v38 = vcombine.low %v175_v19, %v191_v22 }
  0x14   : > { %v1796_v15 = vcombine.high %v205_v10, %v221_v11  ;;  %v1795_v18 = vcombine.low %v205_v10, %v221_v11  ;;  %635 = vmatprep.subr.bf16.mxu0 %v1764_v7  ;;  %v1798_v20 = vcombine.high %v206_v16, %v222_v17  ;;  %v1797_v21 = vcombine.low %v206_v16, %v222_v17  ;;  %v207_v27 = vld [vmem:[%s1910_s19 + $0x110] sm:$0xff]  ;;  %v208_v29 = vld [vmem:[%s1910_s19 + $0x118] sm:$0xff]  ;;  %v177_v43 = vld [vmem:[%s1910_s19 + $0x20] sm:$0xff] }
  0x15   : > { %676 = vmatprep.subr.bf16.mxu1 %v1766_v13  ;;  %636 = vmatpush1.bf16.msra.mxu0 %v1763_v9  ;;  %v223_v28 = vld [vmem:[%s1910_s19 + $0x190] sm:$0x33]  ;;  %v224_v33 = vld [vmem:[%s1910_s19 + $0x198] sm:$0x33]  ;;  %v1770_v34 = vcombine.high %v176_v23, %v192_v24  ;;  %v1769_v40 = vcombine.low %v176_v23, %v192_v24  ;;  %v193_v44 = vld [vmem:[%s1910_s19 + $0xa0] sm:$0xff] }
  0x16   : > { %v543_v25 = vand.u32 %v1796_v15, %v1918_v12  ;;  %v540_v26 = vand.u32 %v1795_v18, %v1918_v12  ;;  %677 = vmatpush1.bf16.msra.mxu1 %v1765_v14  ;;  %v549_v30 = vand.u32 %v1798_v20, %v1918_v12  ;;  %v546_v31 = vand.u32 %v1797_v21, %v1918_v12  ;;  %v178_v46 = vld [vmem:[%s1910_s19 + $0x28] sm:$0xff]  ;;  %v209_v47 = vld [vmem:[%s1910_s19 + $0x120] sm:$0xff]  ;;  %v179_v63 = vld [vmem:[%s1910_s19 + $0x30] sm:$0xff] }
  0x17   : > { %v1800_v35 = vcombine.high %v207_v27, %v223_v28  ;;  %v1802_v36 = vcombine.high %v208_v29, %v224_v33  ;;  %v1799_v39 = vcombine.low %v207_v27, %v223_v28  ;;  %v1801_v42 = vcombine.low %v208_v29, %v224_v33  ;;  %v225_v48 = vld [vmem:[%s1910_s19 + $0x1a0] sm:$0x33]  ;;  %v194_v49 = vld [vmem:[%s1910_s19 + $0xa8] sm:$0xff]  ;;  %v195_v1 = vld [vmem:[%s1910_s19 + $0xb0] sm:$0xff] }
  0x18   : > { %637 = vmatprep.subr.bf16.mxu0 %v543_v25  ;;  %678 = vmatprep.subr.bf16.mxu1 %v549_v30  ;;  %v210_v50 = vld [vmem:[%s1910_s19 + $0x128] sm:$0xff]  ;;  %v1772_v54 = vcombine.high %v177_v43, %v193_v44  ;;  %v1804_v55 = vcombine.high %v209_v47, %v225_v48  ;;  %v1774_v56 = vcombine.high %v178_v46, %v194_v49  ;;  %v180_v3 = vld [vmem:[%s1910_s19 + $0x38] sm:$0xff]  ;;  %v211_v4 = vld [vmem:[%s1910_s19 + $0x130] sm:$0xff] }
  0x19   : > { %638 = vmatpush1.bf16.msra.mxu0 %v540_v26  ;;  %v555_v41 = vand.u32 %v1800_v35, %v1918_v12  ;;  %v561_v45 = vand.u32 %v1802_v36, %v1918_v12  ;;  %v226_v51 = vld [vmem:[%s1910_s19 + $0x1a8] sm:$0x33]  ;;  %v552_v52 = vand.u32 %v1799_v39, %v1918_v12  ;;  %v558_v53 = vand.u32 %v1801_v42, %v1918_v12  ;;  %v227_v5 = vld [vmem:[%s1910_s19 + $0x1b0] sm:$0x33]  ;;  %v196_v6 = vld [vmem:[%s1910_s19 + $0xb8] sm:$0xff] }
  0x1a   : > { %679 = vmatpush1.bf16.msra.mxu1 %v546_v31  ;;  %717 = vmatprep.subr.bf16.mxu0 %v1768_v32  ;;  %v1806_v57 = vcombine.high %v210_v50, %v226_v51  ;;  %v1771_v58 = vcombine.low %v177_v43, %v193_v44  ;;  %v1803_v59 = vcombine.low %v209_v47, %v225_v48  ;;  %v212_v7 = vld [vmem:[%s1910_s19 + $0x138] sm:$0xff]  ;;  %v181_v21 = vld [vmem:[%s1910_s19 + $0x40] sm:$0xff]  ;;  %v182_v24 = vld [vmem:[%s1910_s19 + $0x48] sm:$0xff] }
  0x1b   : > { %758 = vmatprep.subr.bf16.mxu1 %v1770_v34  ;;  %v1773_v60 = vcombine.low %v178_v46, %v194_v49  ;;  %v567_v61 = vand.u32 %v1804_v55, %v1918_v12  ;;  %v1805_v62 = vcombine.low %v210_v50, %v226_v51  ;;  %v228_v8 = vld [vmem:[%s1910_s19 + $0x1b8] sm:$0x33]  ;;  %v1776_v11 = vcombine.high %v179_v63, %v195_v1  ;;  %v197_v22 = vld [vmem:[%s1910_s19 + $0xc0] sm:$0xff]  ;;  %v198_v27 = vld [vmem:[%s1910_s19 + $0xc8] sm:$0xff] }
  0x1c   : > { %1827 = vmatmul.mubr.msk.bf16.vlgmr.msra.gmra.mrb[0].mxu0 %vm531_vm2, %v1937_v37  ;;  %v573_v2 = vand.u32 %v1806_v57, %v1918_v12  ;;  %v564_v9 = vand.u32 %v1803_v59, %v1918_v12  ;;  %v1808_v13 = vcombine.high %v211_v4, %v227_v5  ;;  %v1778_v14 = vcombine.high %v180_v3, %v196_v6  ;;  %v213_v25 = vld [vmem:[%s1910_s19 + $0x140] sm:$0xff]  ;;  %v214_v28 = vld [vmem:[%s1910_s19 + $0x148] sm:$0xff]  ;;  %v183_v42 = vld [vmem:[%s1910_s19 + $0x50] sm:$0xff] }
  0x1d   : > { %1828 = vmatmul.mubr.msk.bf16.vlgmr.msra.gmra.mrb[0].mxu1 %vm531_vm2, %v1937_v37  ;;  %718 = vmatpush1.bf16.msra.mxu0 %v1767_v38  ;;  %v570_v10 = vand.u32 %v1805_v62, %v1918_v12  ;;  %v1810_v15 = vcombine.high %v212_v7, %v228_v8  ;;  %v1775_v16 = vcombine.low %v179_v63, %v195_v1  ;;  %v229_v26 = vld [vmem:[%s1910_s19 + $0x1c0] sm:$0x33]  ;;  %v230_v29 = vld [vmem:[%s1910_s19 + $0x1c8] sm:$0x33]  ;;  %v199_v43 = vld [vmem:[%s1910_s19 + $0xd0] sm:$0xff] }
  0x1e   : > { %759 = vmatpush1.bf16.msra.mxu1 %v1769_v40  ;;  %719 = vmatprep.subr.bf16.mxu0 %v555_v41  ;;  %v1807_v17 = vcombine.low %v211_v4, %v227_v5  ;;  %v1777_v18 = vcombine.low %v180_v3, %v196_v6  ;;  %v579_v19 = vand.u32 %v1808_v13, %v1918_v12  ;;  %v215_v46 = vld [vmem:[%s1910_s19 + $0x150] sm:$0xff]  ;;  %v200_v48 = vld [vmem:[%s1910_s19 + $0xd8] sm:$0xff]  ;;  %v185_v62 = vld [vmem:[%s1910_s19 + $0x60] sm:$0xff] }
  0x1f   : > { %760 = vmatprep.subr.bf16.mxu1 %v561_v45  ;;  %749 = vmatprep.mubr.bf16.mxu0 %v1868_v0  ;;  %v1809_v20 = vcombine.low %v212_v7, %v228_v8  ;;  %v585_v23 = vand.u32 %v1810_v15, %v1918_v12  ;;  %v1780_v32 = vcombine.high %v181_v21, %v197_v22  ;;  %v184_v45 = vld [vmem:[%s1910_s19 + $0x58] sm:$0xff]  ;;  %v231_v47 = vld [vmem:[%s1910_s19 + $0x1d0] sm:$0x33]  ;;  %v201_v63 = vld [vmem:[%s1910_s19 + $0xe0] sm:$0xff] }
  0x20   : > { %790 = vmatprep.mubr.bf16.mxu1 %v1868_v0  ;;  %v576_v30 = vand.u32 %v1807_v17, %v1918_v12  ;;  %v1812_v33 = vcombine.high %v213_v25, %v229_v26  ;;  %v1782_v34 = vcombine.high %v182_v24, %v198_v27  ;;  %v1814_v35 = vcombine.high %v214_v28, %v230_v29  ;;  %v216_v49 = vld [vmem:[%s1910_s19 + $0x158] sm:$0xff]  ;;  %v217_v3 = vld [vmem:[%s1910_s19 + $0x160] sm:$0xff]  ;;  %v202_v5 = vld [vmem:[%s1910_s19 + $0xe8] sm:$0xff] }
  0x21   : > { %720 = vmatpush1.bf16.msra.mxu0 %v552_v52  ;;  %v582_v31 = vand.u32 %v1809_v20, %v1918_v12  ;;  %v1779_v36 = vcombine.low %v181_v21, %v197_v22  ;;  %v1811_v38 = vcombine.low %v213_v25, %v229_v26  ;;  %v1781_v39 = vcombine.low %v182_v24, %v198_v27  ;;  %v232_v50 = vld [vmem:[%s1910_s19 + $0x1d8] sm:$0x33]  ;;  %v233_v4 = vld [vmem:[%s1910_s19 + $0x1e0] sm:$0x33]  ;;  %v218_v6 = vld [vmem:[%s1910_s19 + $0x168] sm:$0xff] }
  0x22   : > { %761 = vmatpush1.bf16.msra.mxu1 %v558_v53  ;;  %799 = vmatprep.subr.bf16.mxu0 %v1772_v54  ;;  %v591_v40 = vand.u32 %v1812_v33, %v1918_v12  ;;  %v1813_v41 = vcombine.low %v214_v28, %v230_v29  ;;  %v597_v44 = vand.u32 %v1814_v35, %v1918_v12  ;;  %v234_v7 = vld [vmem:[%s1910_s19 + $0x1e8] sm:$0x33]  ;;  %v187_v20 = vld [vmem:[%s1910_s19 + $0x70] sm:$0xff]  ;;  %v204_v26 = vld [vmem:[%s1910_s19 + $0xf8] sm:$0xff] }
  0x23   : > { %840 = vmatprep.subr.bf16.mxu1 %v1774_v56  ;;  %v588_v51 = vand.u32 %v1811_v38, %v1918_v12  ;;  %v1784_v53 = vcombine.high %v183_v42, %v199_v43  ;;  %v1816_v54 = vcombine.high %v215_v46, %v231_v47  ;;  %v1786_v55 = vcombine.high %v184_v45, %v200_v48  ;;  %v203_v21 = vld [vmem:[%s1910_s19 + $0xf0] sm:$0xff]  ;;  %v220_v27 = vld [vmem:[%s1910_s19 + $0x178] sm:$0xff] }
  0x24   : > { %1829 = vmatmul.mubr.msk.bf16.vlgmr.msra.gmra.mrb[4].mxu0 %vm531_vm2, %v1937_v37  ;;  %v594_v52 = vand.u32 %v1813_v41, %v1918_v12  ;;  %v1818_v56 = vcombine.high %v216_v49, %v232_v50  ;;  %v1783_v57 = vcombine.low %v183_v42, %v199_v43  ;;  %v1785_v59 = vcombine.low %v184_v45, %v200_v48  ;;  %v219_v24 = vld [vmem:[%s1910_s19 + $0x170] sm:$0xff]  ;;  %v236_v28 = vld [vmem:[%s1910_s19 + $0x1f8] sm:$0x33] }
  0x25   : > { %1830 = vmatmul.mubr.msk.bf16.vlgmr.msra.gmra.mrb[4].mxu1 %vm531_vm2, %v1937_v37  ;;  %800 = vmatpush1.bf16.msra.mxu0 %v1771_v58  ;;  %v1815_v58 = vcombine.low %v215_v46, %v231_v47  ;;  %v1787_v15 = vcombine.low %v185_v62, %v201_v63  ;;  %v235_v25 = vld [vmem:[%s1910_s19 + $0x1f0] sm:$0x33]  ;;  %v1791_v35 = vcombine.low %v187_v20, %v203_v21 }
  0x26   : > { %841 = vmatpush1.bf16.msra.mxu1 %v1773_v60  ;;  %801 = vmatprep.subr.bf16.mxu0 %v567_v61  ;;  %v603_v60 = vand.u32 %v1816_v54, %v1918_v12  ;;  %v1817_v61 = vcombine.low %v216_v49, %v232_v50  ;;  %v609_v1 = vand.u32 %v1818_v56, %v1918_v12 }
  0x27   : > { %842 = vmatprep.subr.bf16.mxu1 %v573_v2  ;;  %831 = vmatprep.mubr.bf16.mxu0 %v1868_v0  ;;  %v186_v2 = vld [vmem:[%s1910_s19 + $0x68] sm:$0xff]  ;;  %v600_v8 = vand.u32 %v1815_v58, %v1918_v12 }
  0x28   : > { %872 = vmatprep.mubr.bf16.mxu1 %v1868_v0  ;;  %v1790_v13 = vcombine.high %v186_v2, %v202_v5  ;;  %v1789_v17 = vcombine.low %v186_v2, %v202_v5 }
  0x29   : > { %802 = vmatpush1.bf16.msra.mxu0 %v564_v9  ;;  %v606_v9 = vand.u32 %v1817_v61, %v1918_v12 }
  0x2a   : > { %843 = vmatpush1.bf16.msra.mxu1 %v570_v10  ;;  %881 = vmatprep.subr.bf16.mxu0 %v1776_v11  ;;  %v1788_v10 = vcombine.high %v185_v62, %v201_v63  ;;  %v1820_v11 = vcombine.high %v217_v3, %v233_v4 }
  0x2b   : > { %922 = vmatprep.subr.bf16.mxu1 %v1778_v14  ;;  %v1822_v14 = vcombine.high %v218_v6, %v234_v7 }
  0x2c   : > { %1831 = vmatmul.mubr.msk.bf16.vlgmr.msra.gmra.mrb[8].mxu0 %vm531_vm2, %v1937_v37 }
  0x2d   : > { %1832 = vmatmul.mubr.msk.bf16.vlgmr.msra.gmra.mrb[8].mxu1 %vm531_vm2, %v1937_v37  ;;  %882 = vmatpush1.bf16.msra.mxu0 %v1775_v16  ;;  %v1819_v16 = vcombine.low %v217_v3, %v233_v4  ;;  %v621_v22 = vand.u32 %v1822_v14, %v1918_v12 }
  0x2e   : > { %923 = vmatpush1.bf16.msra.mxu1 %v1777_v18  ;;  %883 = vmatprep.subr.bf16.mxu0 %v579_v19  ;;  %v615_v18 = vand.u32 %v1820_v11, %v1918_v12  ;;  %v1821_v19 = vcombine.low %v218_v6, %v234_v7 }
  0x2f   : > { %924 = vmatprep.subr.bf16.mxu1 %v585_v23  ;;  %913 = vmatprep.mubr.bf16.mxu0 %v1868_v0  ;;  %v188_v23 = vld [vmem:[%s1910_s19 + $0x78] sm:$0xff]  ;;  %v612_v29 = vand.u32 %v1819_v16, %v1918_v12 }
  0x30   : > { %954 = vmatprep.mubr.bf16.mxu1 %v1868_v0  ;;  %v1794_v33 = vcombine.high %v188_v23, %v204_v26  ;;  %v1793_v38 = vcombine.low %v188_v23, %v204_v26 }
  0x31   : > { %884 = vmatpush1.bf16.msra.mxu0 %v576_v30  ;;  %v618_v30 = vand.u32 %v1821_v19, %v1918_v12 }
  0x32   : > { %925 = vmatpush1.bf16.msra.mxu1 %v582_v31  ;;  %963 = vmatprep.subr.bf16.mxu0 %v1780_v32  ;;  %v1792_v31 = vcombine.high %v187_v20, %v203_v21  ;;  %v1824_v32 = vcombine.high %v219_v24, %v235_v25 }
  0x33   : > { %1004 = vmatprep.subr.bf16.mxu1 %v1782_v34  ;;  %v1826_v34 = vcombine.high %v220_v27, %v236_v28 }
  0x34   : > { %1833 = vmatmul.mubr.msk.bf16.vlgmr.msra.gmra.mrb[12].mxu0 %vm531_vm2, %v1937_v37 }
  0x35   : > { %1834 = vmatmul.mubr.msk.bf16.vlgmr.msra.gmra.mrb[12].mxu1 %vm531_vm2, %v1937_v37  ;;  %964 = vmatpush1.bf16.msra.mxu0 %v1779_v36  ;;  %v1823_v36 = vcombine.low %v219_v24, %v235_v25  ;;  %v633_v41 = vand.u32 %v1826_v34, %v1918_v12 }
  0x36   : > { %1005 = vmatpush1.bf16.msra.mxu1 %v1781_v39  ;;  %965 = vmatprep.subr.bf16.mxu0 %v591_v40  ;;  %v627_v39 = vand.u32 %v1824_v32, %v1918_v12  ;;  %v1825_v40 = vcombine.low %v220_v27, %v236_v28 }
  0x37   : > { %1006 = vmatprep.subr.bf16.mxu1 %v597_v44  ;;  %995 = vmatprep.mubr.bf16.mxu0 %v1868_v0  ;;  %v624_v42 = vand.u32 %v1823_v36, %v1918_v12 }
  0x38   : > { %1036 = vmatprep.mubr.bf16.mxu1 %v1868_v0  ;;  %v630_v43 = vand.u32 %v1825_v40, %v1918_v12 }
  0x39   : > { %966 = vmatpush1.bf16.msra.mxu0 %v588_v51 }
  0x3a   : > { %1007 = vmatpush1.bf16.msra.mxu1 %v594_v52  ;;  %1045 = vmatprep.subr.bf16.mxu0 %v1784_v53 }
  0x3b   : > { %1086 = vmatprep.subr.bf16.mxu1 %v1786_v55 }
  0x3c   : > { %1835 = vmatmul.mubr.msk.bf16.vlgmr.msra.gmra.mrb[16].mxu0 %vm531_vm2, %v1937_v37 }
  0x3d   : > { %1836 = vmatmul.mubr.msk.bf16.vlgmr.msra.gmra.mrb[16].mxu1 %vm531_vm2, %v1937_v37  ;;  %1046 = vmatpush1.bf16.msra.mxu0 %v1783_v57 }
  0x3e   : > { %1087 = vmatpush1.bf16.msra.mxu1 %v1785_v59  ;;  %1047 = vmatprep.subr.bf16.mxu0 %v603_v60 }
  0x3f   : > { %1088 = vmatprep.subr.bf16.mxu1 %v609_v1  ;;  %1077 = vmatprep.mubr.bf16.mxu0 %v1868_v0 }
  0x40   : > { %1118 = vmatprep.mubr.bf16.mxu1 %v1868_v0 }
  0x41   : > { %1048 = vmatpush1.bf16.msra.mxu0 %v600_v8 }
  0x42   : > { %1089 = vmatpush1.bf16.msra.mxu1 %v606_v9  ;;  %1127 = vmatprep.subr.bf16.mxu0 %v1788_v10 }
  0x43   : > { %1168 = vmatprep.subr.bf16.mxu1 %v1790_v13 }
  0x44   : > { %1837 = vmatmul.mubr.msk.bf16.vlgmr.msra.gmra.mrb[20].mxu0 %vm531_vm2, %v1937_v37 }
  0x45   : > { %1838 = vmatmul.mubr.msk.bf16.vlgmr.msra.gmra.mrb[20].mxu1 %vm531_vm2, %v1937_v37  ;;  %1128 = vmatpush1.bf16.msra.mxu0 %v1787_v15 }
  0x46   : > { %1169 = vmatpush1.bf16.msra.mxu1 %v1789_v17  ;;  %1129 = vmatprep.subr.bf16.mxu0 %v615_v18 }
  0x47   : > { %1170 = vmatprep.subr.bf16.mxu1 %v621_v22  ;;  %1159 = vmatprep.mubr.bf16.mxu0 %v1868_v0 }
  0x48   : > { %1200 = vmatprep.mubr.bf16.mxu1 %v1868_v0 }
  0x49   : > { %1130 = vmatpush1.bf16.msra.mxu0 %v612_v29 }
  0x4a   : > { %1171 = vmatpush1.bf16.msra.mxu1 %v618_v30  ;;  %1209 = vmatprep.subr.bf16.mxu0 %v1792_v31 }
  0x4b   : > { %1250 = vmatprep.subr.bf16.mxu1 %v1794_v33 }
  0x4c   : > { %1839 = vmatmul.mubr.msk.bf16.vlgmr.msra.gmra.mrb[24].mxu0 %vm531_vm2, %v1937_v37 }
  0x4d   : > { %1840 = vmatmul.mubr.msk.bf16.vlgmr.msra.gmra.mrb[24].mxu1 %vm531_vm2, %v1937_v37  ;;  %1210 = vmatpush1.bf16.msra.mxu0 %v1791_v35 }
  0x4e   : > { %1251 = vmatpush1.bf16.msra.mxu1 %v1793_v38  ;;  %1211 = vmatprep.subr.bf16.mxu0 %v627_v39 }
  0x4f   : > { %1252 = vmatprep.subr.bf16.mxu1 %v633_v41  ;;  %1241 = vmatprep.mubr.bf16.mxu0 %v1868_v0 }
  0x50   : > { %1282 = vmatprep.mubr.bf16.mxu1 %v1868_v0 }
  0x51   : > { %1212 = vmatpush1.bf16.msra.mxu0 %v624_v42 }
  0x52   : > { %1253 = vmatpush1.bf16.msra.mxu1 %v630_v43 }
  0x54   : > { %1841 = vmatmul.mubr.msk.bf16.vlgmr.msra.gmra.mrb[28].mxu0 %vm531_vm2, %v1937_v37 }
  0x55   : > { %1842 = vmatmul.mubr.msk.bf16.vlgmr.msra.gmra.mrb[28].mxu1 %vm531_vm2, %v1937_v37 }
  0x87   : > { %v2061_v44 = vpop.permute.xlu0 %240 }
  0xef   : > { %v669_v45 = vpop.f32.mrb[0].mxu0 }
  0xf0   : > { %v2064_v46 = vadd.f32 %v669_v45, %v2061_v44  ;;  %v671_v12 = vpop.f32.mrb[1].mxu0  ;;  %v710_v47 = vpop.f32.mrb[0].mxu1 }
  0xf1   : > { %v2067_v48 = vadd.f32 %v671_v12, %v2061_v44  ;;  %v673_v0 = vpop.f32.mrb[2].mxu0  ;;  %v2070_v49 = vadd.f32 %v710_v47, %v2061_v44  ;;  %v712_v50 = vpop.f32.mrb[1].mxu1 }
  0xf2   : > { %v1292_v37 = vsel %vm1291_vm3, %v2064_v46, 0.0  ;;  %v674_v51 = vpop.f32.mrb[3].mxu0  ;;  %v714_v52 = vpop.f32.mrb[2].mxu1  ;;  %v2079_v55 = vadd.f32 %v712_v50, %v2061_v44 }
  0xf3   : > { %v1293_v53 = vsel %vm1291_vm3, %v2067_v48, 0.0  ;;  %v1295_v54 = vsel %vm1291_vm3, %v2070_v49, 0.0  ;;  %v715_v56 = vpop.f32.mrb[3].mxu1 }
  0xf4   : > { %v1294_v57 = vadd.f32 %v1293_v53, %v1292_v37  ;;  %v1297_v59 = vsel %vm1291_vm3, %v2079_v55, 0.0 }
  0xf6   : > { %v1296_v58 = vadd.f32 %v1295_v54, %v1294_v57 }
  0xf7   : > { %v751_v60 = vpop.f32.mrb[4].mxu0 }
  0xf8   : > { %v1298_v61 = vadd.f32 %v1297_v59, %v1296_v58  ;;  %v2084_v62 = vadd.f32 %v751_v60, %v2061_v44  ;;  %v792_v63 = vpop.f32.mrb[4].mxu1  ;;  %v753_v1 = vpop.f32.mrb[5].mxu0 }
  0xf9   : > { %v2087_v2 = vadd.f32 %v753_v1, %v2061_v44  ;;  %v794_v3 = vpop.f32.mrb[5].mxu1  ;;  %v755_v4 = vpop.f32.mrb[6].mxu0  ;;  %v2092_v6 = vadd.f32 %v792_v63, %v2061_v44 }
  0xfa   : > { %v1299_v5 = vsel %vm1291_vm3, %v2084_v62, 0.0  ;;  %v756_v7 = vpop.f32.mrb[7].mxu0  ;;  %v796_v8 = vpop.f32.mrb[6].mxu1  ;;  %v2097_v13 = vadd.f32 %v794_v3, %v2061_v44 }
  0xfb   : > { %v1300_v9 = vadd.f32 %v1299_v5, %v1298_v61  ;;  %v1301_v10 = vsel %vm1291_vm3, %v2087_v2, 0.0  ;;  %v797_v11 = vpop.f32.mrb[7].mxu1  ;;  %v1303_v15 = vsel %vm1291_vm3, %v2092_v6, 0.0 }
  0xfc   : > { %v1305_v18 = vsel %vm1291_vm3, %v2097_v13, 0.0 }
  0xfd   : > { %v1302_v14 = vadd.f32 %v1301_v10, %v1300_v9 }
  0xff   : > { %v1304_v16 = vadd.f32 %v1303_v15, %v1302_v14  ;;  %v833_v17 = vpop.f32.mrb[8].mxu0 }
 0x100   : > { %v2104_v19 = vadd.f32 %v833_v17, %v2061_v44  ;;  %v874_v20 = vpop.f32.mrb[8].mxu1  ;;  %v835_v21 = vpop.f32.mrb[9].mxu0 }
 0x101   : > { %v1306_v22 = vadd.f32 %v1305_v18, %v1304_v16  ;;  %v2107_v23 = vadd.f32 %v835_v21, %v2061_v44  ;;  %v876_v24 = vpop.f32.mrb[9].mxu1  ;;  %v837_v25 = vpop.f32.mrb[10].mxu0  ;;  %v2112_v27 = vadd.f32 %v874_v20, %v2061_v44 }
 0x102   : > { %v1307_v26 = vsel %vm1291_vm3, %v2104_v19, 0.0  ;;  %v838_v28 = vpop.f32.mrb[11].mxu0  ;;  %v878_v29 = vpop.f32.mrb[10].mxu1  ;;  %v2117_v33 = vadd.f32 %v876_v24, %v2061_v44 }
 0x103   : > { %v1308_v30 = vadd.f32 %v1307_v26, %v1306_v22  ;;  %v1309_v31 = vsel %vm1291_vm3, %v2107_v23, 0.0  ;;  %v879_v32 = vpop.f32.mrb[11].mxu1  ;;  %v1311_v35 = vsel %vm1291_vm3, %v2112_v27, 0.0 }
 0x104   : > { %v1313_v39 = vsel %vm1291_vm3, %v2117_v33, 0.0 }
 0x105   : > { %v1310_v34 = vadd.f32 %v1309_v31, %v1308_v30 }
 0x107   : > { %v1312_v36 = vadd.f32 %v1311_v35, %v1310_v34  ;;  %v915_v38 = vpop.f32.mrb[12].mxu0 }
 0x108   : > { %v2124_v40 = vadd.f32 %v915_v38, %v2061_v44  ;;  %v956_v41 = vpop.f32.mrb[12].mxu1  ;;  %v917_v42 = vpop.f32.mrb[13].mxu0 }
 0x109   : > { %v1314_v43 = vadd.f32 %v1313_v39, %v1312_v36  ;;  %v2127_v45 = vadd.f32 %v917_v42, %v2061_v44  ;;  %v958_v12 = vpop.f32.mrb[13].mxu1  ;;  %v919_v47 = vpop.f32.mrb[14].mxu0  ;;  %v2132_v50 = vadd.f32 %v956_v41, %v2061_v44 }
 0x10a   : > { %v1315_v0 = vsel %vm1291_vm3, %v2124_v40, 0.0  ;;  %v920_v37 = vpop.f32.mrb[15].mxu0  ;;  %v960_v51 = vpop.f32.mrb[14].mxu1  ;;  %v2137_v56 = vadd.f32 %v958_v12, %v2061_v44 }
 0x10b   : > { %v1316_v52 = vadd.f32 %v1315_v0, %v1314_v43  ;;  %v1317_v53 = vsel %vm1291_vm3, %v2127_v45, 0.0  ;;  %v961_v54 = vpop.f32.mrb[15].mxu1  ;;  %v1319_v58 = vsel %vm1291_vm3, %v2132_v50, 0.0 }
 0x10c   : > { %v1321_v61 = vsel %vm1291_vm3, %v2137_v56, 0.0 }
 0x10d   : > { %v1318_v57 = vadd.f32 %v1317_v53, %v1316_v52 }
 0x10f   : > { %v1320_v59 = vadd.f32 %v1319_v58, %v1318_v57  ;;  %v997_v60 = vpop.f32.mrb[16].mxu0 }
 0x110   : > { %v2144_v63 = vadd.f32 %v997_v60, %v2061_v44  ;;  %v1038_v1 = vpop.f32.mrb[16].mxu1  ;;  %v999_v3 = vpop.f32.mrb[17].mxu0 }
 0x111   : > { %v1322_v4 = vadd.f32 %v1321_v61, %v1320_v59  ;;  %v2147_v5 = vadd.f32 %v999_v3, %v2061_v44  ;;  %v1040_v7 = vpop.f32.mrb[17].mxu1  ;;  %v1001_v8 = vpop.f32.mrb[18].mxu0  ;;  %v2152_v10 = vadd.f32 %v1038_v1, %v2061_v44 }
 0x112   : > { %v1323_v9 = vsel %vm1291_vm3, %v2144_v63, 0.0  ;;  %v1002_v11 = vpop.f32.mrb[19].mxu0  ;;  %v1042_v14 = vpop.f32.mrb[18].mxu1  ;;  %v2157_v18 = vadd.f32 %v1040_v7, %v2061_v44 }
 0x113   : > { %v1324_v15 = vadd.f32 %v1323_v9, %v1322_v4  ;;  %v1325_v16 = vsel %vm1291_vm3, %v2147_v5, 0.0  ;;  %v1043_v17 = vpop.f32.mrb[19].mxu1  ;;  %v1327_v21 = vsel %vm1291_vm3, %v2152_v10, 0.0 }
 0x114   : > { %v1329_v25 = vsel %vm1291_vm3, %v2157_v18, 0.0 }
 0x115   : > { %v1326_v20 = vadd.f32 %v1325_v16, %v1324_v15 }
 0x117   : > { %v1328_v22 = vadd.f32 %v1327_v21, %v1326_v20  ;;  %v1079_v24 = vpop.f32.mrb[20].mxu0 }
 0x118   : > { %v2164_v26 = vadd.f32 %v1079_v24, %v2061_v44  ;;  %v1120_v28 = vpop.f32.mrb[20].mxu1  ;;  %v1081_v29 = vpop.f32.mrb[21].mxu0 }
 0x119   : > { %v1330_v30 = vadd.f32 %v1329_v25, %v1328_v22  ;;  %v2167_v31 = vadd.f32 %v1081_v29, %v2061_v44  ;;  %v1122_v32 = vpop.f32.mrb[21].mxu1  ;;  %v1083_v34 = vpop.f32.mrb[22].mxu0  ;;  %v2172_v36 = vadd.f32 %v1120_v28, %v2061_v44 }
 0x11a   : > { %v1331_v35 = vsel %vm1291_vm3, %v2164_v26, 0.0  ;;  %v1084_v38 = vpop.f32.mrb[23].mxu0  ;;  %v1124_v39 = vpop.f32.mrb[22].mxu1  ;;  %v2177_v12 = vadd.f32 %v1122_v32, %v2061_v44 }
 0x11b   : > { %v1332_v41 = vadd.f32 %v1331_v35, %v1330_v30  ;;  %v1333_v42 = vsel %vm1291_vm3, %v2167_v31, 0.0  ;;  %v1125_v43 = vpop.f32.mrb[23].mxu1  ;;  %v1335_v0 = vsel %vm1291_vm3, %v2172_v36, 0.0 }
 0x11c   : > { %v1337_v52 = vsel %vm1291_vm3, %v2177_v12, 0.0 }
 0x11d   : > { %v1334_v47 = vadd.f32 %v1333_v42, %v1332_v41 }
 0x11f   : > { %v1336_v37 = vadd.f32 %v1335_v0, %v1334_v47  ;;  %v1161_v51 = vpop.f32.mrb[24].mxu0 }
 0x120   : > { %v2184_v53 = vadd.f32 %v1161_v51, %v2061_v44  ;;  %v1202_v54 = vpop.f32.mrb[24].mxu1  ;;  %v1163_v57 = vpop.f32.mrb[25].mxu0 }
 0x121   : > { %v1338_v58 = vadd.f32 %v1337_v52, %v1336_v37  ;;  %v2187_v59 = vadd.f32 %v1163_v57, %v2061_v44  ;;  %v1204_v60 = vpop.f32.mrb[25].mxu1  ;;  %v1165_v61 = vpop.f32.mrb[26].mxu0  ;;  %v2192_v3 = vadd.f32 %v1202_v54, %v2061_v44 }
 0x122   : > { %v1339_v1 = vsel %vm1291_vm3, %v2184_v53, 0.0  ;;  %v1166_v4 = vpop.f32.mrb[27].mxu0  ;;  %v1206_v7 = vpop.f32.mrb[26].mxu1  ;;  %v2197_v14 = vadd.f32 %v1204_v60, %v2061_v44 }
 0x123   : > { %v1340_v8 = vadd.f32 %v1339_v1, %v1338_v58  ;;  %v1341_v9 = vsel %vm1291_vm3, %v2187_v59, 0.0  ;;  %v1207_v11 = vpop.f32.mrb[27].mxu1  ;;  %v1343_v16 = vsel %vm1291_vm3, %v2192_v3, 0.0 }
 0x124   : > { %v1345_v21 = vsel %vm1291_vm3, %v2197_v14, 0.0 }
 0x125   : > { %v1342_v15 = vadd.f32 %v1341_v9, %v1340_v8 }
 0x127   : > { %v1344_v17 = vadd.f32 %v1343_v16, %v1342_v15  ;;  %v1243_v20 = vpop.f32.mrb[28].mxu0 }
 0x128   : > { %v2204_v22 = vadd.f32 %v1243_v20, %v2061_v44  ;;  %v1284_v24 = vpop.f32.mrb[28].mxu1  ;;  %v1245_v25 = vpop.f32.mrb[29].mxu0 }
 0x129   : > { %v1346_v28 = vadd.f32 %v1345_v21, %v1344_v17  ;;  %v2207_v29 = vadd.f32 %v1245_v25, %v2061_v44  ;;  %v1286_v30 = vpop.f32.mrb[29].mxu1  ;;  %v1247_v32 = vpop.f32.mrb[30].mxu0  ;;  %v2212_v35 = vadd.f32 %v1284_v24, %v2061_v44 }
 0x12a   : > { %v1347_v34 = vsel %vm1291_vm3, %v2204_v22, 0.0  ;;  %v1248_v38 = vpop.f32.mrb[31].mxu0  ;;  %v1288_v39 = vpop.f32.mrb[30].mxu1  ;;  %v2217_v47 = vadd.f32 %v1286_v30, %v2061_v44 }
 0x12b   : > { %v1348_v41 = vadd.f32 %v1347_v34, %v1346_v28  ;;  %v1349_v42 = vsel %vm1291_vm3, %v2207_v29, 0.0  ;;  %v1289_v43 = vpop.f32.mrb[31].mxu1  ;;  %v1351_v37 = vsel %vm1291_vm3, %v2212_v35, 0.0 }
 0x12c   : > { %v1353_v52 = vsel %vm1291_vm3, %v2217_v47, 0.0 }
 0x12d   : > { %v1350_v0 = vadd.f32 %v1349_v42, %v1348_v41 }
 0x12f   : > { %v1352_v51 = vadd.f32 %v1351_v37, %v1350_v0 }
 0x131   : > { %v1354_v54 = vadd.f32 %v1353_v52, %v1352_v51 }
 0x133   : > { %1355 = vadd.xlane.f32.xlu0 %v1354_v54 }
 0x1c0   : > { %v1356_v57 = vpop.xlane.xlu0 %1355 }
 0x1c1   : > { %v2223_v58 = vmul.f32 0.00024414063, %v1356_v57 }
 0x1c3   : > { %v2227_v60 = vsub.f32 %v2064_v46, %v2223_v58  ;;  %v2231_v44 = vsub.f32 %v2067_v48, %v2223_v58  ;;  %v2235_v61 = vsub.f32 %v2070_v49, %v2223_v58  ;;  %v2239_v1 = vsub.f32 %v2079_v55, %v2223_v58 }
 0x1c4   : > { %v2247_v46 = vsub.f32 %v2084_v62, %v2223_v58  ;;  %v2253_v49 = vsub.f32 %v2087_v2, %v2223_v58  ;;  %v2261_v15 = vsub.f32 %v2092_v6, %v2223_v58  ;;  %v2268_v2 = vsub.f32 %v2097_v13, %v2223_v58 }
 0x1c5   : > { %v1391_v4 = vmul.f32 %v2227_v60, %v2227_v60  ;;  %v1392_v7 = vmul.f32 %v2231_v44, %v2231_v44  ;;  %v1393_v48 = vmul.f32 %v2235_v61, %v2235_v61  ;;  %v1394_v55 = vmul.f32 %v2239_v1, %v2239_v1 }
 0x1c6   : > { %v1395_v62 = vmul.f32 %v2247_v46, %v2247_v46  ;;  %v1396_v20 = vmul.f32 %v2253_v49, %v2253_v49  ;;  %v2275_v6 = vsub.f32 %v2104_v19, %v2223_v58  ;;  %v1397_v25 = vmul.f32 %v2261_v15, %v2261_v15 }
 0x1c7   : > { %v1423_v8 = vsel %vm1291_vm3, %v1391_v4, 0.0  ;;  %v1424_v9 = vsel %vm1291_vm3, %v1392_v7, 0.0  ;;  %v1426_v16 = vsel %vm1291_vm3, %v1393_v48, 0.0  ;;  %v1428_v21 = vsel %vm1291_vm3, %v1394_v55, 0.0 }
 0x1c8   : > { %v1425_v11 = vadd.f32 %v1424_v9, %v1423_v8  ;;  %v1430_v28 = vsel %vm1291_vm3, %v1395_v62, 0.0  ;;  %v2282_v13 = vsub.f32 %v2107_v23, %v2223_v58  ;;  %v1398_v32 = vmul.f32 %v2268_v2, %v2268_v2 }
 0x1c9   : > { %v1432_v34 = vsel %vm1291_vm3, %v1396_v20, 0.0  ;;  %v2289_v19 = vsub.f32 %v2112_v27, %v2223_v58  ;;  %v1399_v39 = vmul.f32 %v2275_v6, %v2275_v6  ;;  %v1434_v41 = vsel %vm1291_vm3, %v1397_v25, 0.0 }
 0x1ca   : > { %v1427_v17 = vadd.f32 %v1426_v16, %v1425_v11  ;;  %v2296_v23 = vsub.f32 %v2117_v33, %v2223_v58  ;;  %v1400_v43 = vmul.f32 %v2282_v13, %v2282_v13  ;;  %v1436_v0 = vsel %vm1291_vm3, %v1398_v32, 0.0 }
 0x1cb   : > { %v2303_v27 = vsub.f32 %v2124_v40, %v2223_v58  ;;  %v1401_v51 = vmul.f32 %v2289_v19, %v2289_v19  ;;  %v1438_v52 = vsel %vm1291_vm3, %v1399_v39, 0.0  ;;  %v2310_v33 = vsub.f32 %v2127_v45, %v2223_v58 }
 0x1cc   : > { %v1429_v24 = vadd.f32 %v1428_v21, %v1427_v17  ;;  %v1402_v57 = vmul.f32 %v2296_v23, %v2296_v23  ;;  %v1440_v4 = vsel %vm1291_vm3, %v1400_v43, 0.0  ;;  %v2317_v40 = vsub.f32 %v2132_v50, %v2223_v58 }
 0x1cd   : > { %v1403_v48 = vmul.f32 %v2303_v27, %v2303_v27  ;;  %v1442_v55 = vsel %vm1291_vm3, %v1401_v51, 0.0  ;;  %v2324_v45 = vsub.f32 %v2137_v56, %v2223_v58  ;;  %v1404_v9 = vmul.f32 %v2310_v33, %v2310_v33 }
 0x1ce   : > { %v1431_v30 = vadd.f32 %v1430_v28, %v1429_v24  ;;  %v1444_v11 = vsel %vm1291_vm3, %v1402_v57, 0.0  ;;  %v2331_v50 = vsub.f32 %v2144_v63, %v2223_v58  ;;  %v1405_v16 = vmul.f32 %v2317_v40, %v2317_v40 }
 0x1cf   : > { %v1446_v17 = vsel %vm1291_vm3, %v1403_v48, 0.0  ;;  %v2338_v56 = vsub.f32 %v2147_v5, %v2223_v58  ;;  %v1406_v21 = vmul.f32 %v2324_v45, %v2324_v45  ;;  %v1448_v24 = vsel %vm1291_vm3, %v1404_v9, 0.0 }
 0x1d0   : > { %v1433_v38 = vadd.f32 %v1432_v34, %v1431_v30  ;;  %v2345_v63 = vsub.f32 %v2152_v10, %v2223_v58  ;;  %v1407_v28 = vmul.f32 %v2331_v50, %v2331_v50  ;;  %v1450_v30 = vsel %vm1291_vm3, %v1405_v16, 0.0 }
 0x1d1   : > { %v2352_v5 = vsub.f32 %v2157_v18, %v2223_v58  ;;  %v1408_v34 = vmul.f32 %v2338_v56, %v2338_v56  ;;  %v2359_v10 = vsub.f32 %v2164_v26, %v2223_v58  ;;  %v2366_v18 = vsub.f32 %v2167_v31, %v2223_v58 }
 0x1d2   : > { %v1435_v42 = vadd.f32 %v1434_v41, %v1433_v38  ;;  %v1452_v38 = vsel %vm1291_vm3, %v1406_v21, 0.0  ;;  %v1409_v41 = vmul.f32 %v2345_v63, %v2345_v63  ;;  %v2373_v26 = vsub.f32 %v2172_v36, %v2223_v58 }
 0x1d3   : > { %v2380_v31 = vsub.f32 %v2177_v12, %v2223_v58  ;;  %v2387_v36 = vsub.f32 %v2184_v53, %v2223_v58  ;;  %v2394_v12 = vsub.f32 %v2187_v59, %v2223_v58  ;;  %v2401_v53 = vsub.f32 %v2192_v3, %v2223_v58 }
 0x1d4   : > { %v1437_v37 = vadd.f32 %v1436_v0, %v1435_v42  ;;  %v1454_v42 = vsel %vm1291_vm3, %v1407_v28, 0.0  ;;  %v1410_v0 = vmul.f32 %v2352_v5, %v2352_v5  ;;  %v2408_v59 = vsub.f32 %v2197_v14, %v2223_v58 }
 0x1d5   : > { %v1387_v3 = vsub.f32 %v2204_v22, %v2223_v58 }
 0x1d6   : > { %v1439_v54 = vadd.f32 %v1438_v52, %v1437_v37  ;;  %v1456_v37 = vsel %vm1291_vm3, %v1408_v34, 0.0  ;;  %v1411_v52 = vmul.f32 %v2359_v10, %v2359_v10  ;;  %v1418_v14 = vmul.f32 %v2408_v59, %v2408_v59 }
 0x1d7   : > { %v1419_v22 = vmul.f32 %v1387_v3, %v1387_v3 }
 0x1d8   : > { %v1441_v7 = vadd.f32 %v1440_v4, %v1439_v54  ;;  %v1458_v54 = vsel %vm1291_vm3, %v1409_v41, 0.0  ;;  %v1412_v4 = vmul.f32 %v2366_v18, %v2366_v18 }
 0x1da   : > { %v1443_v8 = vadd.f32 %v1442_v55, %v1441_v7  ;;  %v1460_v7 = vsel %vm1291_vm3, %v1410_v0, 0.0  ;;  %v1413_v55 = vmul.f32 %v2373_v26, %v2373_v26 }
 0x1dc   : > { %v1445_v62 = vadd.f32 %v1444_v11, %v1443_v8  ;;  %v1462_v8 = vsel %vm1291_vm3, %v1411_v52, 0.0  ;;  %v1414_v11 = vmul.f32 %v2380_v31, %v2380_v31 }
 0x1de   : > { %v1447_v20 = vadd.f32 %v1446_v17, %v1445_v62  ;;  %v1464_v62 = vsel %vm1291_vm3, %v1412_v4, 0.0  ;;  %v1415_v17 = vmul.f32 %v2387_v36, %v2387_v36 }
 0x1e0   : > { %v1449_v25 = vadd.f32 %v1448_v24, %v1447_v20  ;;  %v1466_v20 = vsel %vm1291_vm3, %v1413_v55, 0.0  ;;  %v1416_v24 = vmul.f32 %v2394_v12, %v2394_v12 }
 0x1e2   : > { %v1451_v32 = vadd.f32 %v1450_v30, %v1449_v25  ;;  %v1468_v25 = vsel %vm1291_vm3, %v1414_v11, 0.0  ;;  %v1417_v30 = vmul.f32 %v2401_v53, %v2401_v53 }
 0x1e4   : > { %v1453_v39 = vadd.f32 %v1452_v38, %v1451_v32  ;;  %v1470_v32 = vsel %vm1291_vm3, %v1415_v17, 0.0  ;;  %v1388_v38 = vsub.f32 %v2207_v29, %v2223_v58  ;;  %v1476_v29 = vsel %vm1291_vm3, %v1418_v14, 0.0 }
 0x1e6   : > { %v1455_v43 = vadd.f32 %v1454_v42, %v1453_v39  ;;  %v1472_v39 = vsel %vm1291_vm3, %v1416_v24, 0.0  ;;  %v2425_v42 = vsub.f32 %v2212_v35, %v2223_v58 }
 0x1e8   : > { %v1457_v51 = vadd.f32 %v1456_v37, %v1455_v43  ;;  %v1474_v43 = vsel %vm1291_vm3, %v1417_v30, 0.0  ;;  %v2430_v37 = vsub.f32 %v2217_v47, %v2223_v58 }
 0x1ea   : > { %v1459_v57 = vadd.f32 %v1458_v54, %v1457_v51  ;;  %v1420_v51 = vmul.f32 %v1388_v38, %v1388_v38  ;;  %v1421_v54 = vmul.f32 %v2425_v42, %v2425_v42  ;;  %v1422_v35 = vmul.f32 %v2430_v37, %v2430_v37 }
 0x1ec   : > { %v1461_v48 = vadd.f32 %v1460_v7, %v1459_v57  ;;  %v1478_v57 = vsel %vm1291_vm3, %v1419_v22, 0.0  ;;  %v1480_v7 = vsel %vm1291_vm3, %v1420_v51, 0.0  ;;  %v1482_v55 = vsel %vm1291_vm3, %v1421_v54, 0.0 }
 0x1ed   : > { %v1484_v58 = vsel %vm1291_vm3, %v1422_v35, 0.0 }
 0x1ee   : > { %v1463_v9 = vadd.f32 %v1462_v8, %v1461_v48 }
 0x1f0   : > { %v1465_v16 = vadd.f32 %v1464_v62, %v1463_v9 }
 0x1f2   : > { %v1467_v21 = vadd.f32 %v1466_v20, %v1465_v16 }
 0x1f4   : > { %v1469_v28 = vadd.f32 %v1468_v25, %v1467_v21 }
 0x1f6   : > { %v1471_v34 = vadd.f32 %v1470_v32, %v1469_v28 }
 0x1f8   : > { %v1473_v41 = vadd.f32 %v1472_v39, %v1471_v34 }
 0x1fa   : > { %v1475_v0 = vadd.f32 %v1474_v43, %v1473_v41 }
 0x1fc   : > { %v1477_v52 = vadd.f32 %v1476_v29, %v1475_v0 }
 0x1fe   : > { %v1479_v4 = vadd.f32 %v1478_v57, %v1477_v52 }
 0x200   : > { %v1481_v48 = vadd.f32 %v1480_v7, %v1479_v4 }
 0x202   : > { %v1483_v47 = vadd.f32 %v1482_v55, %v1481_v48 }
 0x204   : > { %v1485_v8 = vadd.f32 %v1484_v58, %v1483_v47 }
 0x206   : > { %1486 = vadd.xlane.f32.xlu1 %v1485_v8 }
 0x293   : > { %v1487_v9 = vpop.xlane.xlu1 %1486 }
 0x294   : > { %v1488_v11 = vmul.f32 0.00024414063, %v1487_v9 }
 0x296   : > { %v1489_v62 = vadd.f32 1e-05, %v1488_v11 }
 0x298   : > { %1858 = vrsqrt.f32 %v1489_v62 }
 0x2a2   : > { %v1859_v16 = vpop.eup %1858 }
 0x2a3   : > { %v2442_v17 = vmul.f32 %v1859_v16, %v2227_v60  ;;  %v2445_v20 = vmul.f32 %v1859_v16, %v2231_v44  ;;  %v2448_v21 = vmul.f32 %v1859_v16, %v2235_v61  ;;  %v2451_v24 = vmul.f32 %v1859_v16, %v2239_v1 }
 0x2a4   : > { %v2454_v25 = vmul.f32 %v1859_v16, %v2247_v46  ;;  %v2457_v28 = vmul.f32 %v1859_v16, %v2253_v49  ;;  %v2460_v30 = vmul.f32 %v1859_v16, %v2261_v15  ;;  %v2463_v60 = vmul.f32 %v1859_v16, %v2268_v2 }
 0x2a5   : > { %v2466_v44 = vmul.f32 %v1859_v16, %v2275_v6  ;;  %v2469_v61 = vmul.f32 %v1859_v16, %v2282_v13  ;;  %v2472_v1 = vmul.f32 %v1859_v16, %v2289_v19  ;;  %v2475_v46 = vmul.f32 %v1859_v16, %v2296_v23 }
 0x2a6   : > { %v2478_v49 = vmul.f32 %v1859_v16, %v2303_v27  ;;  %v2481_v15 = vmul.f32 %v1859_v16, %v2310_v33  ;;  %v2484_v2 = vmul.f32 %v1859_v16, %v2317_v40  ;;  %v2487_v6 = vmul.f32 %v1859_v16, %v2324_v45 }
 0x2a7   : > { %v2490_v13 = vmul.f32 %v1859_v16, %v2331_v50  ;;  %v2493_v19 = vmul.f32 %v1859_v16, %v2338_v56  ;;  %v2496_v23 = vmul.f32 %v1859_v16, %v2345_v63  ;;  %v2499_v27 = vmul.f32 %v1859_v16, %v2352_v5 }
 0x2a8   : > { %v2502_v33 = vmul.f32 %v1859_v16, %v2359_v10  ;;  %v2505_v40 = vmul.f32 %v1859_v16, %v2366_v18  ;;  %v2508_v45 = vmul.f32 %v1859_v16, %v2373_v26  ;;  %v2511_v50 = vmul.f32 %v1859_v16, %v2380_v31 }
 0x2a9   : > { %v2514_v56 = vmul.f32 %v1859_v16, %v2387_v36  ;;  %v2517_v63 = vmul.f32 %v1859_v16, %v2394_v12  ;;  %v2520_v5 = vmul.f32 %v1859_v16, %v2401_v53  ;;  %v2523_v10 = vmul.f32 %v1859_v16, %v2408_v59 }
 0x2aa   : > { %v2525_v18 = vmul.f32 %v1859_v16, %v1387_v3  ;;  %v2527_v32 = vmul.f32 %v1859_v16, %v1388_v38  ;;  %vm1523_vm4 = vcmp.ge.f32.partialorder %v2442_v17, 0.0  ;;  %vm1524_vm5 = vcmp.ge.f32.partialorder %v2445_v20, 0.0 }
 0x2ab   : > { %vm1525_vm6 = vcmp.ge.f32.partialorder %v2448_v21, 0.0  ;;  %vm1526_vm7 = vcmp.ge.f32.partialorder %v2451_v24, 0.0  ;;  %vm1527_vm8 = vcmp.ge.f32.partialorder %v2454_v25, 0.0  ;;  %vm1528_vm9 = vcmp.ge.f32.partialorder %v2457_v28, 0.0 }
 0x2ac   : > { %vm1529_vm10 = vcmp.ge.f32.partialorder %v2460_v30, 0.0  ;;  %vm1530_vm11 = vcmp.ge.f32.partialorder %v2463_v60, 0.0  ;;  %vm1531_vm12 = vcmp.ge.f32.partialorder %v2466_v44, 0.0  ;;  %v2540_v26 = vmul.f32 %v1859_v16, %v2425_v42 }
 0x2ad   : > { %v1555_v31 = vmul.f32 0.01, %v2442_v17  ;;  %v1556_v36 = vmul.f32 0.01, %v2445_v20  ;;  %v1557_v12 = vmul.f32 0.01, %v2448_v21  ;;  %v2550_v53 = vmul.f32 %v1859_v16, %v2430_v37 }
 0x2ae   : > { %vm1538_vm3 = vcmp.ge.f32.partialorder %v2487_v6, 0.0  ;;  %vm1539_vm14 = vcmp.ge.f32.partialorder %v2490_v13, 0.0  ;;  %v1558_v59 = vmul.f32 0.01, %v2451_v24  ;;  %v1559_v3 = vmul.f32 0.01, %v2454_v25 }
 0x2af   : > { %v1560_v34 = vmul.f32 0.01, %v2457_v28  ;;  %vm1544_vm2 = vcmp.ge.f32.partialorder %v2505_v40, 0.0  ;;  %v1561_v38 = vmul.f32 0.01, %v2460_v30  ;;  %v2569_v41 = vsel %vm1523_vm4, %v2442_v17, %v1555_v31 }
 0x2b0   : > { %v1562_v14 = vmul.f32 0.01, %v2463_v60  ;;  %v1563_v39 = vmul.f32 0.01, %v2466_v44  ;;  %vm1548_vm13 = vcmp.ge.f32.partialorder %v2517_v63, 0.0  ;;  %v2581_v0 = vsel %vm1524_vm5, %v2445_v20, %v1556_v36 }
 0x2b1   : > { %v1564_v42 = vmul.f32 0.01, %v2469_v61  ;;  %v1565_v22 = vmul.f32 0.01, %v2472_v1  ;;  %v1566_v43 = vmul.f32 0.01, %v2475_v46  ;;  %v1589_v52 = vsel %vm1525_vm6, %v2448_v21, %v1557_v12 }
 0x2b2   : > { %vm1550_vm15 = vcmp.ge.f32.partialorder %v2523_v10, 0.0  ;;  %vm1551_vm1 = vcmp.ge.f32.partialorder %v2525_v18, 0.0  ;;  %vm1552_vm0 = vcmp.ge.f32.partialorder %v2527_v32, 0.0  ;;  %v1567_v37 = vmul.f32 0.01, %v2478_v49 }
 0x2b3   : > { %v1568_v51 = vmul.f32 0.01, %v2481_v15  ;;  %v1569_v29 = vmul.f32 0.01, %v2484_v2  ;;  %vm1553_vm5 = vcmp.ge.f32.partialorder %v2540_v26, 0.0  ;;  %vm1554_vm4 = vcmp.ge.f32.partialorder %v2550_v53, 0.0 }
 0x2b4   : > { %v1570_v54 = vmul.f32 0.01, %v2487_v6  ;;  %v1571_v57 = vmul.f32 0.01, %v2490_v13  ;;  %v1572_v4 = vmul.f32 0.01, %v2493_v19  ;;  %v1590_v35 = vsel %vm1526_vm7, %v2451_v24, %v1558_v59 }
 0x2b5   : > { %v1573_v7 = vmul.f32 0.01, %v2496_v23  ;;  %v1574_v48 = vmul.f32 0.01, %v2499_v27  ;;  %v1575_v55 = vmul.f32 0.01, %v2502_v33  ;;  %v1591_v47 = vsel %vm1527_vm8, %v2454_v25, %v1559_v3 }
 0x2b6   : > { %v1576_v58 = vmul.f32 0.01, %v2505_v40  ;;  %v1577_v8 = vmul.f32 0.01, %v2508_v45  ;;  %v1578_v9 = vmul.f32 0.01, %v2511_v50  ;;  %v1592_v11 = vsel %vm1528_vm9, %v2457_v28, %v1560_v34 }
 0x2b7   : > { %v1579_v62 = vmul.f32 0.01, %v2514_v56  ;;  %v1580_v16 = vmul.f32 0.01, %v2517_v63  ;;  %v1581_v17 = vmul.f32 0.01, %v2520_v5  ;;  %v1593_v20 = vsel %vm1529_vm10, %v2460_v30, %v1561_v38 }
 0x2b8   : > { %v1582_v21 = vmul.f32 0.01, %v2523_v10  ;;  %v1583_v24 = vmul.f32 0.01, %v2525_v18  ;;  %v1584_v25 = vmul.f32 0.01, %v2527_v32  ;;  %v1594_v28 = vsel %vm1530_vm11, %v2463_v60, %v1562_v14 }
 0x2b9   : > { %v1585_v31 = vmul.f32 0.01, %v2540_v26  ;;  %v1586_v36 = vmul.f32 0.01, %v2550_v53  ;;  %v1595_v12 = vsel %vm1531_vm12, %v2466_v44, %v1563_v39  ;;  %vm2730_vm6 = vcmp.ge.f32.partialorder %v2469_v61, 0.0 }
 0x2ba   : > { %v1596_v30 = vsel %vm2730_vm6, %v2469_v61, %v1564_v42  ;;  %vm2731_vm7 = vcmp.ge.f32.partialorder %v2472_v1, 0.0  ;;  %vm2732_vm8 = vcmp.ge.f32.partialorder %v2475_v46, 0.0  ;;  %vm2733_vm9 = vcmp.ge.f32.partialorder %v2478_v49, 0.0 }
 0x2bb   : > { %v1597_v59 = vsel %vm2731_vm7, %v2472_v1, %v1565_v22  ;;  %v1598_v60 = vsel %vm2732_vm8, %v2475_v46, %v1566_v43  ;;  %v1599_v3 = vsel %vm2733_vm9, %v2478_v49, %v1567_v37  ;;  %vm2734_vm10 = vcmp.ge.f32.partialorder %v2481_v15, 0.0 }
 0x2bc   : > { %v1600_v44 = vsel %vm2734_vm10, %v2481_v15, %v1568_v51  ;;  %vm2735_vm11 = vcmp.ge.f32.partialorder %v2484_v2, 0.0  ;;  %v1602_v1 = vsel %vm1538_vm3, %v2487_v6, %v1570_v54  ;;  %v1603_v46 = vsel %vm1539_vm14, %v2490_v13, %v1571_v57 }
 0x2bd   : > { %v1601_v61 = vsel %vm2735_vm11, %v2484_v2, %v1569_v29  ;;  %vm2736_vm12 = vcmp.ge.f32.partialorder %v2493_v19, 0.0  ;;  %vm2737_vm6 = vcmp.ge.f32.partialorder %v2496_v23, 0.0  ;;  %vm2738_vm7 = vcmp.ge.f32.partialorder %v2499_v27, 0.0 }
 0x2be   : > { %v1604_v49 = vsel %vm2736_vm12, %v2493_v19, %v1572_v4  ;;  %v1605_v15 = vsel %vm2737_vm6, %v2496_v23, %v1573_v7  ;;  %v1606_v2 = vsel %vm2738_vm7, %v2499_v27, %v1574_v48  ;;  %vm2739_vm8 = vcmp.ge.f32.partialorder %v2502_v33, 0.0 }
 0x2bf   : > { %v1607_v6 = vsel %vm2739_vm8, %v2502_v33, %v1575_v55  ;;  %v1608_v13 = vsel %vm1544_vm2, %v2505_v40, %v1576_v58  ;;  %vm2740_vm14 = vcmp.ge.f32.partialorder %v2508_v45, 0.0  ;;  %vm2741_vm3 = vcmp.ge.f32.partialorder %v2511_v50, 0.0 }
 0x2c0   : > { %v1609_v19 = vsel %vm2740_vm14, %v2508_v45, %v1577_v8  ;;  %v1610_v23 = vsel %vm2741_vm3, %v2511_v50, %v1578_v9  ;;  %vm2742_vm9 = vcmp.ge.f32.partialorder %v2514_v56, 0.0  ;;  %v1612_v33 = vsel %vm1548_vm13, %v2517_v63, %v1580_v16 }
 0x2c1   : > { %v1611_v27 = vsel %vm2742_vm9, %v2514_v56, %v1579_v62  ;;  %vm2743_vm2 = vcmp.ge.f32.partialorder %v2520_v5, 0.0  ;;  %v1614_v45 = vsel %vm1550_vm15, %v2523_v10, %v1582_v21  ;;  %v1615_v50 = vsel %vm1551_vm1, %v2525_v18, %v1583_v24 }
 0x2c2   : > { %v1613_v40 = vsel %vm2743_vm2, %v2520_v5, %v1581_v17  ;;  %v1616_v56 = vsel %vm1552_vm0, %v2527_v32, %v1584_v25  ;;  %v1617_v63 = vsel %vm1553_vm5, %v2540_v26, %v1585_v31  ;;  %v1618_v5 = vsel %vm1554_vm4, %v2550_v53, %v1586_v36 }
 0x2c3   : > { %v1651_v10 = vcombine.low %v2569_v41, %v2581_v0  ;;  %v1652_v34 = vcombine.low %v1589_v52, %v1590_v35  ;;  %v1653_v38 = vcombine.low %v1591_v47, %v1592_v11  ;;  %v1654_v18 = vcombine.low %v1593_v20, %v1594_v28 }
 0x2c4   : > { %v1655_v14 = vcombine.low %v1595_v12, %v1596_v30  ;;  %v1656_v32 = vcombine.low %v1597_v59, %v1598_v60  ;;  %v1657_v39 = vcombine.low %v1599_v3, %v1600_v44  ;;  %v1658_v42 = vcombine.low %v1601_v61, %v1602_v1 }
 0x2c5   : > { %v1659_v26 = vcombine.low %v1603_v46, %v1604_v49  ;;  %v1660_v22 = vcombine.low %v1605_v15, %v1606_v2  ;;  %1683 = vst [vmem:[%s2685_s25] sm:$0xff] %v1651_v10  ;;  %1684 = vst [vmem:[%s2685_s25 + $0x8] sm:$0xff] %v1652_v34  ;;  %v1661_v53 = vcombine.low %v1607_v6, %v1608_v13 }
 0x2c6   : > { %v1662_v41 = vcombine.low %v1609_v19, %v1610_v23  ;;  %v1663_v43 = vcombine.low %v1611_v27, %v1612_v33  ;;  %v1664_v0 = vcombine.low %v1613_v40, %v1614_v45  ;;  %1685 = vst [vmem:[%s2685_s25 + $0x10] sm:$0xff] %v1653_v38  ;;  %1686 = vst [vmem:[%s2685_s25 + $0x18] sm:$0xff] %v1654_v18 }
 0x2c7   : > { %1687 = vst [vmem:[%s2685_s25 + $0x20] sm:$0xff] %v1655_v14  ;;  %1688 = vst [vmem:[%s2685_s25 + $0x28] sm:$0xff] %v1656_v32  ;;  %v1665_v37 = vcombine.low %v1615_v50, %v1616_v56  ;;  %v1666_v51 = vcombine.low %v1617_v63, %v1618_v5 }
 0x2c8   : > { %1689 = vst [vmem:[%s2685_s25 + $0x30] sm:$0xff] %v1657_v39  ;;  %1690 = vst [vmem:[%s2685_s25 + $0x38] sm:$0xff] %v1658_v42 }
 0x2c9   : > { %1691 = vst [vmem:[%s2685_s25 + $0x40] sm:$0xff] %v1659_v26  ;;  %1692 = vst [vmem:[%s2685_s25 + $0x48] sm:$0xff] %v1660_v22 }
 0x2ca   : > { %1693 = vst [vmem:[%s2685_s25 + $0x50] sm:$0xff] %v1661_v53  ;;  %1694 = vst [vmem:[%s2685_s25 + $0x58] sm:$0xff] %v1662_v41 }
 0x2cb   : > { %1695 = vst [vmem:[%s2685_s25 + $0x60] sm:$0xff] %v1663_v43  ;;  %1696 = vst [vmem:[%s2685_s25 + $0x68] sm:$0xff] %v1664_v0 }
 0x2cc   : > { %1697 = vst [vmem:[%s2685_s25 + $0x70] sm:$0xff] %v1665_v37  ;;  %1698 = vst [vmem:[%s2685_s25 + $0x78] sm:$0xff] %v1666_v51 }
 0x2cd PF: > { %s13_s12 = sadd.s32 1, %s1866_s12  }
 0x2ce   : > { %p10_p4 = scmp.ge.s32.totalorder %s13_s12, 4  }
 0x2d0   :  { %12 = sbr.rel (!%p10_p4) target bundleno = 1 (0x1), region = 62 }

// kernel: embeddings_forward.10
= control target key start
LH: loop header
LB: loop body
LE: loop exit
PB: predicated region body
PF: predicated region fallthrough
CT: control target
= control target key end

     0   :  { %s3021_s12 = smov 0   ;;  %s4026_s0 = inlined_call_operand.vmem [shape: bf16[2,108,4096], index: 0, kind: input, shape index: {}]   ;;  %s4027_s1 = inlined_call_operand.vmem [shape: bf16[4,108], index: 1, kind: input, shape index: {}]   ;;  %s4028_s2 = inlined_call_operand.vmem [shape: f32[4,1], index: 2, kind: input, shape index: {}]   ;;  %s4029_s3 = inlined_call_operand.vmem [shape: f32[2,4,4096], index: 3, kind: output, shape index: {}]  }
   0x1 LB: > { %s2711_s13 = sadd.s32 4294967295, %s2998_s12   ;;  %p2715_p0 = scmp.ge.s32.totalorder %s2998_s12, 1  ;;  %s2998_s12 = sphi %s3021_s12, %s13_s12  }
   0x2   : > { %p137_p1 = scmp.lt.s32.totalorder %s2998_s12, 3 }
   0x4   : > { %p138_p2 = pnand %p2715_p0, %p137_p1 }
   0x5   : > { %p161_p3 = scmp.lt.s32.totalorder (!%p138_p2), %s2711_s13, 1  ;;  %v3000_v0 = vmov (!%p138_p2), 0   ;;  %v397_v1 = vld [vmem:[%s4028_s2] sm:$0xf] (!%p138_p2)  ;;  %vm1495_vm0 = vcmask (!%p138_p2), 1045504   ;;  %vm1491_vm1 = vcmask (!%p138_p2), 883712  }
   0x6   : > { %141 = sbr.rel (%p138_p2) target bundleno = 878 (0x36e), region = 32  ;;  %1624 = vmatprep.mubr.bf16.mxu0 (!%p138_p2), %v3000_v0  ;;  %1665 = vmatprep.mubr.bf16.mxu1 (!%p138_p2), %v3000_v0  ;;  %vm2248_vm2 = vcmask (!%p138_p2), 1043456  }
   0x7   : > { %2988 = vset.pattern.permute.xlu0 (!%p138_p2), %v3000_v0 }
   0x8   : > { %400 = vperm.xlu0 (!%p138_p2), %2988, %v397_v1  }
   0xd   : > { %s4045_s13 = smov (!%p161_p3, %s2711_s13), 1 }
   0xe   : > { %s2978_s16 = smul.u32 1792, %s4045_s13  ;;  %s2977_s24 = sshll.u32 %s4045_s13, 7 }
   0xf   : > { %s3985_s27 = scalar_lea.vmem %s4029_s3, %s2977_s24 }
  0x10   : > { %s3041_s19 = scalar_lea.vmem %s4026_s0, %s2978_s16 }
  0x11   : > { %v173_v2 = vld [vmem:[%s3041_s19] sm:$0xff]  ;;  %v174_v4 = vld [vmem:[%s3041_s19 + $0x8] sm:$0xff]  ;;  %v175_v58 = vld [vmem:[%s3041_s19 + $0x10] sm:$0xff] }
  0x12   : > { %v189_v3 = vld [vmem:[%s3041_s19 + $0x80] sm:$0xff]  ;;  %v190_v6 = vld [vmem:[%s3041_s19 + $0x88] sm:$0xff]  ;;  %v191_v59 = vld [vmem:[%s3041_s19 + $0x90] sm:$0xff] }
  0x13   : > { %v2720_v5 = vcombine.high %v173_v2, %v189_v3  ;;  %v2719_v7 = vcombine.low %v173_v2, %v189_v3  ;;  %v205_v8 = vld [vmem:[%s3041_s19 + $0x100] sm:$0xff]  ;;  %v2722_v10 = vcombine.high %v174_v4, %v190_v6  ;;  %v2721_v11 = vcombine.low %v174_v4, %v190_v6  ;;  %v206_v13 = vld [vmem:[%s3041_s19 + $0x108] sm:$0xff]  ;;  %v176_v60 = vld [vmem:[%s3041_s19 + $0x18] sm:$0xff] }
  0x14   : > { %v221_v9 = vld [vmem:[%s3041_s19 + $0x180] sm:$0xff]  ;;  %v222_v14 = vld [vmem:[%s3041_s19 + $0x188] sm:$0xff]  ;;  %v192_v61 = vld [vmem:[%s3041_s19 + $0x98] sm:$0xff]  ;;  %v2724_v63 = vcombine.high %v175_v58, %v191_v59 }
  0x15   : > { %v2752_v12 = vcombine.high %v205_v8, %v221_v9  ;;  %v237_v15 = vld [vmem:[%s3041_s19 + $0x200] sm:$0xff]  ;;  %1592 = vmatprep.subr.bf16.mxu0 %v2720_v5  ;;  %v2754_v16 = vcombine.high %v206_v13, %v222_v14  ;;  %v238_v18 = vld [vmem:[%s3041_s19 + $0x208] sm:$0xff]  ;;  %1633 = vmatprep.subr.bf16.mxu1 %v2722_v10  ;;  %v2751_v20 = vcombine.low %v205_v8, %v221_v9  ;;  %v207_v3 = vld [vmem:[%s3041_s19 + $0x110] sm:$0xff] }
  0x16   : > { %v253_v17 = vld [vmem:[%s3041_s19 + $0x280] sm:$0xff]  ;;  %v254_v19 = vld [vmem:[%s3041_s19 + $0x288] sm:$0xff]  ;;  %1593 = vmatpush1.bf16.msra.mxu0 %v2719_v7  ;;  %1634 = vmatpush1.bf16.msra.mxu1 %v2721_v11  ;;  %v2753_v21 = vcombine.low %v206_v13, %v222_v14  ;;  %v2726_v2 = vcombine.high %v176_v60, %v192_v61  ;;  %v223_v4 = vld [vmem:[%s3041_s19 + $0x190] sm:$0xff]  ;;  %v2723_v8 = vcombine.low %v175_v58, %v191_v59 }
  0x17   : > { %1594 = vmatprep.subr.bf16.mxu0 %v2752_v12  ;;  %v2784_v22 = vcombine.high %v237_v15, %v253_v17  ;;  %1635 = vmatprep.subr.bf16.mxu1 %v2754_v16  ;;  %v2786_v23 = vcombine.high %v238_v18, %v254_v19  ;;  %v269_v24 = vld [vmem:[%s3041_s19 + $0x300] sm:$0xff]  ;;  %v270_v26 = vld [vmem:[%s3041_s19 + $0x308] sm:$0xff]  ;;  %v2783_v28 = vcombine.low %v237_v15, %v253_v17  ;;  %v208_v5 = vld [vmem:[%s3041_s19 + $0x118] sm:$0xff] }
  0x18   : > { %v285_v25 = vld [vmem:[%s3041_s19 + $0x380] sm:$0xff]  ;;  %v286_v27 = vld [vmem:[%s3041_s19 + $0x388] sm:$0xff]  ;;  %v2785_v29 = vcombine.low %v238_v18, %v254_v19  ;;  %v224_v6 = vld [vmem:[%s3041_s19 + $0x198] sm:$0xff]  ;;  %v2725_v9 = vcombine.low %v176_v60, %v192_v61  ;;  %v2756_v10 = vcombine.high %v207_v3, %v223_v4  ;;  %v2755_v16 = vcombine.low %v207_v3, %v223_v4 }
  0x19   : > { %v2816_v30 = vcombine.high %v269_v24, %v285_v25  ;;  %v2818_v31 = vcombine.high %v270_v26, %v286_v27  ;;  %v301_v32 = vld [vmem:[%s3041_s19 + $0x400] sm:$0xff]  ;;  %v302_v34 = vld [vmem:[%s3041_s19 + $0x408] sm:$0xff]  ;;  %v2815_v36 = vcombine.low %v269_v24, %v285_v25  ;;  %v2817_v37 = vcombine.low %v270_v26, %v286_v27  ;;  %v239_v12 = vld [vmem:[%s3041_s19 + $0x210] sm:$0xff] }
  0x1a   : > { %1595 = vmatpush1.bf16.msra.mxu0 %v2751_v20  ;;  %1636 = vmatpush1.bf16.msra.mxu1 %v2753_v21  ;;  %v317_v33 = vld [vmem:[%s3041_s19 + $0x480] sm:$0xff]  ;;  %v318_v35 = vld [vmem:[%s3041_s19 + $0x488] sm:$0xff]  ;;  %v2758_v11 = vcombine.high %v208_v5, %v224_v6  ;;  %v255_v13 = vld [vmem:[%s3041_s19 + $0x290] sm:$0xff]  ;;  %v2757_v17 = vcombine.low %v208_v5, %v224_v6 }
  0x1b   : > { %1596 = vmatprep.subr.bf16.mxu0 %v2784_v22  ;;  %1637 = vmatprep.subr.bf16.mxu1 %v2786_v23  ;;  %v2848_v38 = vcombine.high %v301_v32, %v317_v33  ;;  %v2850_v39 = vcombine.high %v302_v34, %v318_v35  ;;  %v333_v40 = vld [vmem:[%s3041_s19 + $0x500] sm:$0xff]  ;;  %v334_v42 = vld [vmem:[%s3041_s19 + $0x508] sm:$0xff]  ;;  %v2847_v44 = vcombine.low %v301_v32, %v317_v33  ;;  %v240_v14 = vld [vmem:[%s3041_s19 + $0x218] sm:$0xff] }
  0x1c   : > { %v349_v41 = vld [vmem:[%s3041_s19 + $0x580] sm:$0xff]  ;;  %v350_v43 = vld [vmem:[%s3041_s19 + $0x588] sm:$0xff]  ;;  %v2849_v45 = vcombine.low %v302_v34, %v318_v35  ;;  %v256_v15 = vld [vmem:[%s3041_s19 + $0x298] sm:$0xff]  ;;  %v2788_v18 = vcombine.high %v239_v12, %v255_v13  ;;  %v2787_v24 = vcombine.low %v239_v12, %v255_v13 }
  0x1d   : > { %v2880_v46 = vcombine.high %v333_v40, %v349_v41  ;;  %v2882_v47 = vcombine.high %v334_v42, %v350_v43  ;;  %v365_v48 = vld [vmem:[%s3041_s19 + $0x600] sm:$0xff]  ;;  %v366_v50 = vld [vmem:[%s3041_s19 + $0x608] sm:$0xff]  ;;  %v2879_v52 = vcombine.low %v333_v40, %v349_v41  ;;  %v2881_v53 = vcombine.low %v334_v42, %v350_v43  ;;  %v271_v20 = vld [vmem:[%s3041_s19 + $0x310] sm:$0xff] }
  0x1e   : > { %1597 = vmatpush1.bf16.msra.mxu0 %v2783_v28  ;;  %1638 = vmatpush1.bf16.msra.mxu1 %v2785_v29  ;;  %v381_v49 = vld [vmem:[%s3041_s19 + $0x680] sm:$0x33]  ;;  %v382_v51 = vld [vmem:[%s3041_s19 + $0x688] sm:$0x33]  ;;  %v2790_v19 = vcombine.high %v240_v14, %v256_v15  ;;  %v287_v21 = vld [vmem:[%s3041_s19 + $0x390] sm:$0xff]  ;;  %v2789_v25 = vcombine.low %v240_v14, %v256_v15 }
  0x1f   : > { %1598 = vmatprep.subr.bf16.mxu0 %v2816_v30  ;;  %1639 = vmatprep.subr.bf16.mxu1 %v2818_v31  ;;  %v2912_v54 = vcombine.high %v365_v48, %v381_v49  ;;  %v2911_v55 = vcombine.low %v365_v48, %v381_v49  ;;  %v2914_v56 = vcombine.high %v366_v50, %v382_v51  ;;  %v3086_v7 = vld [vmem:[%s4027_s1] sm:$0x3]  ;;  %v272_v22 = vld [vmem:[%s3041_s19 + $0x318] sm:$0xff]  ;;  %v303_v28 = vld [vmem:[%s3041_s19 + $0x410] sm:$0xff] }
  0x20   : > { %v2913_v57 = vcombine.low %v366_v50, %v382_v51  ;;  %v288_v23 = vld [vmem:[%s3041_s19 + $0x398] sm:$0xff]  ;;  %v2820_v26 = vcombine.high %v271_v20, %v287_v21  ;;  %v319_v29 = vld [vmem:[%s3041_s19 + $0x490] sm:$0xff]  ;;  %v2819_v32 = vcombine.low %v271_v20, %v287_v21 }
  0x21   : > { %v1497_v62 = vsel %vm1495_vm0, %v2911_v55, 0  ;;  %v2822_v27 = vcombine.high %v272_v22, %v288_v23  ;;  %v304_v30 = vld [vmem:[%s3041_s19 + $0x418] sm:$0xff]  ;;  %v2821_v33 = vcombine.low %v272_v22, %v288_v23  ;;  %v2852_v34 = vcombine.high %v303_v28, %v319_v29  ;;  %v193_v55 = vld [vmem:[%s3041_s19 + $0xa0] sm:$0xff] }
  0x22   : > { %1599 = vmatpush1.bf16.msra.mxu0 %v2815_v36  ;;  %1640 = vmatpush1.bf16.msra.mxu1 %v2817_v37  ;;  %v1503_v1 = vsel %vm1495_vm0, %v2913_v57, 0  ;;  %v320_v31 = vld [vmem:[%s3041_s19 + $0x498] sm:$0xff]  ;;  %v335_v36 = vld [vmem:[%s3041_s19 + $0x510] sm:$0xff]  ;;  %v2851_v40 = vcombine.low %v303_v28, %v319_v29  ;;  %v194_v57 = vld [vmem:[%s3041_s19 + $0xa8] sm:$0xff] }
  0x23   : > { %1600 = vmatprep.subr.bf16.mxu0 %v2848_v38  ;;  %1641 = vmatprep.subr.bf16.mxu1 %v2850_v39  ;;  %v2854_v35 = vcombine.high %v304_v30, %v320_v31  ;;  %v351_v37 = vld [vmem:[%s3041_s19 + $0x590] sm:$0xff]  ;;  %v336_v38 = vld [vmem:[%s3041_s19 + $0x518] sm:$0xff]  ;;  %v2853_v41 = vcombine.low %v304_v30, %v320_v31 }
  0x24   : > { %v352_v39 = vld [vmem:[%s3041_s19 + $0x598] sm:$0xff]  ;;  %v2884_v42 = vcombine.high %v335_v36, %v351_v37  ;;  %v2883_v48 = vcombine.low %v335_v36, %v351_v37 }
  0x25   : > { %v2886_v43 = vcombine.high %v336_v38, %v352_v39  ;;  %v2885_v49 = vcombine.low %v336_v38, %v352_v39 }
  0x26   : > { %1601 = vmatpush1.bf16.msra.mxu0 %v2847_v44  ;;  %1642 = vmatpush1.bf16.msra.mxu1 %v2849_v45  ;;  %v367_v44 = vld [vmem:[%s3041_s19 + $0x610] sm:$0xff] }
  0x27   : > { %1602 = vmatprep.subr.bf16.mxu0 %v2880_v46  ;;  %1643 = vmatprep.subr.bf16.mxu1 %v2882_v47  ;;  %v383_v45 = vld [vmem:[%s3041_s19 + $0x690] sm:$0x33]  ;;  %v368_v46 = vld [vmem:[%s3041_s19 + $0x618] sm:$0xff] }
  0x28   : > { %v384_v47 = vld [vmem:[%s3041_s19 + $0x698] sm:$0x33]  ;;  %v2916_v50 = vcombine.high %v367_v44, %v383_v45  ;;  %v2915_v51 = vcombine.low %v367_v44, %v383_v45 }
  0x2a   : > { %1603 = vmatpush1.bf16.msra.mxu0 %v2879_v52  ;;  %1644 = vmatpush1.bf16.msra.mxu1 %v2881_v53  ;;  %v2918_v52 = vcombine.high %v368_v46, %v384_v47  ;;  %v2917_v53 = vcombine.low %v368_v46, %v384_v47  ;;  %v1509_v58 = vsel %vm1495_vm0, %v2915_v51, 0  ;;  %v195_v51 = vld [vmem:[%s3041_s19 + $0xb0] sm:$0xff] }
  0x2b   : > { %2943 = vmatprep.subr.msk.bf16.mxu0 %vm1495_vm0, %v2912_v54  ;;  %2945 = vmatprep.subr.msk.bf16.mxu1 %vm1495_vm0, %v2914_v56  ;;  %v177_v54 = vld [vmem:[%s3041_s19 + $0x20] sm:$0xff]  ;;  %v178_v56 = vld [vmem:[%s3041_s19 + $0x28] sm:$0xff] }
  0x2c   : > { %v2728_v59 = vcombine.high %v177_v54, %v193_v55  ;;  %v1515_v60 = vsel %vm1495_vm0, %v2917_v53, 0  ;;  %v2730_v61 = vcombine.high %v178_v56, %v194_v57  ;;  %v2727_v3 = vcombine.low %v177_v54, %v193_v55  ;;  %v196_v53 = vld [vmem:[%s3041_s19 + $0xb8] sm:$0xff] }
  0x2d   : > { %v2729_v4 = vcombine.low %v178_v56, %v194_v57 }
  0x2e   : > { %1605 = vmatpush1.bf16.msra.mxu0 %v1497_v62  ;;  %1646 = vmatpush1.bf16.msra.mxu1 %v1503_v1  ;;  %v209_v62 = vld [vmem:[%s3041_s19 + $0x120] sm:$0xff]  ;;  %v210_v1 = vld [vmem:[%s3041_s19 + $0x128] sm:$0xff] }
  0x2f   : > { %1674 = vmatprep.subr.bf16.mxu0 %v2724_v63  ;;  %1715 = vmatprep.subr.bf16.mxu1 %v2726_v2  ;;  %v225_v63 = vld [vmem:[%s3041_s19 + $0x1a0] sm:$0xff]  ;;  %v226_v2 = vld [vmem:[%s3041_s19 + $0x1a8] sm:$0xff] }
  0x30   : > { %v2760_v5 = vcombine.high %v209_v62, %v225_v63  ;;  %v2762_v6 = vcombine.high %v210_v1, %v226_v2  ;;  %v2759_v12 = vcombine.low %v209_v62, %v225_v63  ;;  %v2761_v13 = vcombine.low %v210_v1, %v226_v2 }
  0x31   : > { %2944 = vmatmul.mubr.msk.bf16.vlgmr.msra.gmra.mrb[0].mxu0 %vm1491_vm1, %v3086_v7  ;;  %2946 = vmatmul.mubr.msk.bf16.vlgmr.msra.gmra.mrb[0].mxu1 %vm1491_vm1, %v3086_v7 }
  0x32   : > { %1675 = vmatpush1.bf16.msra.mxu0 %v2723_v8  ;;  %1716 = vmatpush1.bf16.msra.mxu1 %v2725_v9  ;;  %v241_v8 = vld [vmem:[%s3041_s19 + $0x220] sm:$0xff] }
  0x33   : > { %1676 = vmatprep.subr.bf16.mxu0 %v2756_v10  ;;  %1717 = vmatprep.subr.bf16.mxu1 %v2758_v11  ;;  %v257_v9 = vld [vmem:[%s3041_s19 + $0x2a0] sm:$0xff]  ;;  %v242_v10 = vld [vmem:[%s3041_s19 + $0x228] sm:$0xff] }
  0x34   : > { %1706 = vmatprep.mubr.bf16.mxu0 %v3000_v0  ;;  %1747 = vmatprep.mubr.bf16.mxu1 %v3000_v0  ;;  %v258_v11 = vld [vmem:[%s3041_s19 + $0x2a8] sm:$0xff]  ;;  %v2792_v14 = vcombine.high %v241_v8, %v257_v9  ;;  %v2791_v20 = vcombine.low %v241_v8, %v257_v9 }
  0x35   : > { %v2794_v15 = vcombine.high %v242_v10, %v258_v11  ;;  %v2793_v21 = vcombine.low %v242_v10, %v258_v11 }
  0x36   : > { %1677 = vmatpush1.bf16.msra.mxu0 %v2755_v16  ;;  %1718 = vmatpush1.bf16.msra.mxu1 %v2757_v17  ;;  %v273_v16 = vld [vmem:[%s3041_s19 + $0x320] sm:$0xff] }
  0x37   : > { %1678 = vmatprep.subr.bf16.mxu0 %v2788_v18  ;;  %1719 = vmatprep.subr.bf16.mxu1 %v2790_v19  ;;  %v289_v17 = vld [vmem:[%s3041_s19 + $0x3a0] sm:$0xff]  ;;  %v274_v18 = vld [vmem:[%s3041_s19 + $0x328] sm:$0xff] }
  0x38   : > { %v290_v19 = vld [vmem:[%s3041_s19 + $0x3a8] sm:$0xff]  ;;  %v2824_v22 = vcombine.high %v273_v16, %v289_v17  ;;  %v2823_v28 = vcombine.low %v273_v16, %v289_v17 }
  0x39   : > { %v2826_v23 = vcombine.high %v274_v18, %v290_v19  ;;  %v2825_v29 = vcombine.low %v274_v18, %v290_v19 }
  0x3a   : > { %1679 = vmatpush1.bf16.msra.mxu0 %v2787_v24  ;;  %1720 = vmatpush1.bf16.msra.mxu1 %v2789_v25  ;;  %v305_v24 = vld [vmem:[%s3041_s19 + $0x420] sm:$0xff] }
  0x3b   : > { %1680 = vmatprep.subr.bf16.mxu0 %v2820_v26  ;;  %1721 = vmatprep.subr.bf16.mxu1 %v2822_v27  ;;  %v321_v25 = vld [vmem:[%s3041_s19 + $0x4a0] sm:$0xff]  ;;  %v306_v26 = vld [vmem:[%s3041_s19 + $0x428] sm:$0xff] }
  0x3c   : > { %v322_v27 = vld [vmem:[%s3041_s19 + $0x4a8] sm:$0xff]  ;;  %v2856_v30 = vcombine.high %v305_v24, %v321_v25  ;;  %v2855_v36 = vcombine.low %v305_v24, %v321_v25 }
  0x3d   : > { %v2858_v31 = vcombine.high %v306_v26, %v322_v27  ;;  %v2857_v37 = vcombine.low %v306_v26, %v322_v27 }
  0x3e   : > { %1681 = vmatpush1.bf16.msra.mxu0 %v2819_v32  ;;  %1722 = vmatpush1.bf16.msra.mxu1 %v2821_v33  ;;  %v337_v32 = vld [vmem:[%s3041_s19 + $0x520] sm:$0xff] }
  0x3f   : > { %1682 = vmatprep.subr.bf16.mxu0 %v2852_v34  ;;  %1723 = vmatprep.subr.bf16.mxu1 %v2854_v35  ;;  %v353_v33 = vld [vmem:[%s3041_s19 + $0x5a0] sm:$0xff]  ;;  %v338_v34 = vld [vmem:[%s3041_s19 + $0x528] sm:$0xff] }
  0x40   : > { %v354_v35 = vld [vmem:[%s3041_s19 + $0x5a8] sm:$0xff]  ;;  %v2888_v38 = vcombine.high %v337_v32, %v353_v33  ;;  %v2887_v44 = vcombine.low %v337_v32, %v353_v33 }
  0x41   : > { %v2890_v39 = vcombine.high %v338_v34, %v354_v35  ;;  %v2889_v45 = vcombine.low %v338_v34, %v354_v35 }
  0x42   : > { %1683 = vmatpush1.bf16.msra.mxu0 %v2851_v40  ;;  %1724 = vmatpush1.bf16.msra.mxu1 %v2853_v41  ;;  %v369_v40 = vld [vmem:[%s3041_s19 + $0x620] sm:$0xff] }
  0x43   : > { %1684 = vmatprep.subr.bf16.mxu0 %v2884_v42  ;;  %1725 = vmatprep.subr.bf16.mxu1 %v2886_v43  ;;  %v385_v41 = vld [vmem:[%s3041_s19 + $0x6a0] sm:$0x33]  ;;  %v370_v42 = vld [vmem:[%s3041_s19 + $0x628] sm:$0xff] }
  0x44   : > { %v386_v43 = vld [vmem:[%s3041_s19 + $0x6a8] sm:$0x33]  ;;  %v2920_v46 = vcombine.high %v369_v40, %v385_v41  ;;  %v2919_v47 = vcombine.low %v369_v40, %v385_v41 }
  0x46   : > { %1685 = vmatpush1.bf16.msra.mxu0 %v2883_v48  ;;  %1726 = vmatpush1.bf16.msra.mxu1 %v2885_v49  ;;  %v2922_v48 = vcombine.high %v370_v42, %v386_v43  ;;  %v2921_v49 = vcombine.low %v370_v42, %v386_v43  ;;  %v1521_v54 = vsel %vm1495_vm0, %v2919_v47, 0  ;;  %v197_v47 = vld [vmem:[%s3041_s19 + $0xc0] sm:$0xff] }
  0x47   : > { %2947 = vmatprep.subr.msk.bf16.mxu0 %vm1495_vm0, %v2916_v50  ;;  %2949 = vmatprep.subr.msk.bf16.mxu1 %vm1495_vm0, %v2918_v52  ;;  %v179_v50 = vld [vmem:[%s3041_s19 + $0x30] sm:$0xff]  ;;  %v180_v52 = vld [vmem:[%s3041_s19 + $0x38] sm:$0xff] }
  0x48   : > { %v2732_v55 = vcombine.high %v179_v50, %v195_v51  ;;  %v1527_v56 = vsel %vm1495_vm0, %v2921_v49, 0  ;;  %v2734_v57 = vcombine.high %v180_v52, %v196_v53  ;;  %v2731_v62 = vcombine.low %v179_v50, %v195_v51  ;;  %v198_v49 = vld [vmem:[%s3041_s19 + $0xc8] sm:$0xff] }
  0x49   : > { %v2733_v63 = vcombine.low %v180_v52, %v196_v53 }
  0x4a   : > { %1687 = vmatpush1.bf16.msra.mxu0 %v1509_v58  ;;  %1728 = vmatpush1.bf16.msra.mxu1 %v1515_v60  ;;  %v211_v58 = vld [vmem:[%s3041_s19 + $0x130] sm:$0xff]  ;;  %v212_v60 = vld [vmem:[%s3041_s19 + $0x138] sm:$0xff] }
  0x4b   : > { %1756 = vmatprep.subr.bf16.mxu0 %v2728_v59  ;;  %1797 = vmatprep.subr.bf16.mxu1 %v2730_v61  ;;  %v227_v59 = vld [vmem:[%s3041_s19 + $0x1b0] sm:$0xff]  ;;  %v228_v61 = vld [vmem:[%s3041_s19 + $0x1b8] sm:$0xff] }
  0x4c   : > { %v2764_v1 = vcombine.high %v211_v58, %v227_v59  ;;  %v2766_v2 = vcombine.high %v212_v60, %v228_v61  ;;  %v2763_v8 = vcombine.low %v211_v58, %v227_v59  ;;  %v2765_v9 = vcombine.low %v212_v60, %v228_v61 }
  0x4d   : > { %2948 = vmatmul.mubr.msk.bf16.vlgmr.msra.gmra.mrb[4].mxu0 %vm1491_vm1, %v3086_v7  ;;  %2950 = vmatmul.mubr.msk.bf16.vlgmr.msra.gmra.mrb[4].mxu1 %vm1491_vm1, %v3086_v7 }
  0x4e   : > { %1757 = vmatpush1.bf16.msra.mxu0 %v2727_v3  ;;  %1798 = vmatpush1.bf16.msra.mxu1 %v2729_v4  ;;  %v243_v3 = vld [vmem:[%s3041_s19 + $0x230] sm:$0xff] }
  0x4f   : > { %1758 = vmatprep.subr.bf16.mxu0 %v2760_v5  ;;  %1799 = vmatprep.subr.bf16.mxu1 %v2762_v6  ;;  %v259_v4 = vld [vmem:[%s3041_s19 + $0x2b0] sm:$0xff]  ;;  %v244_v5 = vld [vmem:[%s3041_s19 + $0x238] sm:$0xff] }
  0x50   : > { %1788 = vmatprep.mubr.bf16.mxu0 %v3000_v0  ;;  %1829 = vmatprep.mubr.bf16.mxu1 %v3000_v0  ;;  %v260_v6 = vld [vmem:[%s3041_s19 + $0x2b8] sm:$0xff]  ;;  %v2796_v10 = vcombine.high %v243_v3, %v259_v4  ;;  %v2795_v16 = vcombine.low %v243_v3, %v259_v4 }
  0x51   : > { %v2798_v11 = vcombine.high %v244_v5, %v260_v6  ;;  %v2797_v17 = vcombine.low %v244_v5, %v260_v6 }
  0x52   : > { %1759 = vmatpush1.bf16.msra.mxu0 %v2759_v12  ;;  %1800 = vmatpush1.bf16.msra.mxu1 %v2761_v13  ;;  %v275_v12 = vld [vmem:[%s3041_s19 + $0x330] sm:$0xff] }
  0x53   : > { %1760 = vmatprep.subr.bf16.mxu0 %v2792_v14  ;;  %1801 = vmatprep.subr.bf16.mxu1 %v2794_v15  ;;  %v291_v13 = vld [vmem:[%s3041_s19 + $0x3b0] sm:$0xff]  ;;  %v276_v14 = vld [vmem:[%s3041_s19 + $0x338] sm:$0xff] }
  0x54   : > { %v292_v15 = vld [vmem:[%s3041_s19 + $0x3b8] sm:$0xff]  ;;  %v2828_v18 = vcombine.high %v275_v12, %v291_v13  ;;  %v2827_v24 = vcombine.low %v275_v12, %v291_v13 }
  0x55   : > { %v2830_v19 = vcombine.high %v276_v14, %v292_v15  ;;  %v2829_v25 = vcombine.low %v276_v14, %v292_v15 }
  0x56   : > { %1761 = vmatpush1.bf16.msra.mxu0 %v2791_v20  ;;  %1802 = vmatpush1.bf16.msra.mxu1 %v2793_v21  ;;  %v307_v20 = vld [vmem:[%s3041_s19 + $0x430] sm:$0xff] }
  0x57   : > { %1762 = vmatprep.subr.bf16.mxu0 %v2824_v22  ;;  %1803 = vmatprep.subr.bf16.mxu1 %v2826_v23  ;;  %v323_v21 = vld [vmem:[%s3041_s19 + $0x4b0] sm:$0xff]  ;;  %v308_v22 = vld [vmem:[%s3041_s19 + $0x438] sm:$0xff] }
  0x58   : > { %v324_v23 = vld [vmem:[%s3041_s19 + $0x4b8] sm:$0xff]  ;;  %v2860_v26 = vcombine.high %v307_v20, %v323_v21  ;;  %v2859_v32 = vcombine.low %v307_v20, %v323_v21 }
  0x59   : > { %v2862_v27 = vcombine.high %v308_v22, %v324_v23  ;;  %v2861_v33 = vcombine.low %v308_v22, %v324_v23 }
  0x5a   : > { %1763 = vmatpush1.bf16.msra.mxu0 %v2823_v28  ;;  %1804 = vmatpush1.bf16.msra.mxu1 %v2825_v29  ;;  %v339_v28 = vld [vmem:[%s3041_s19 + $0x530] sm:$0xff] }
  0x5b   : > { %1764 = vmatprep.subr.bf16.mxu0 %v2856_v30  ;;  %1805 = vmatprep.subr.bf16.mxu1 %v2858_v31  ;;  %v355_v29 = vld [vmem:[%s3041_s19 + $0x5b0] sm:$0xff]  ;;  %v340_v30 = vld [vmem:[%s3041_s19 + $0x538] sm:$0xff] }
  0x5c   : > { %v356_v31 = vld [vmem:[%s3041_s19 + $0x5b8] sm:$0xff]  ;;  %v2892_v34 = vcombine.high %v339_v28, %v355_v29  ;;  %v2891_v40 = vcombine.low %v339_v28, %v355_v29 }
  0x5d   : > { %v2894_v35 = vcombine.high %v340_v30, %v356_v31  ;;  %v2893_v41 = vcombine.low %v340_v30, %v356_v31 }
  0x5e   : > { %1765 = vmatpush1.bf16.msra.mxu0 %v2855_v36  ;;  %1806 = vmatpush1.bf16.msra.mxu1 %v2857_v37  ;;  %v371_v36 = vld [vmem:[%s3041_s19 + $0x630] sm:$0xff] }
  0x5f   : > { %1766 = vmatprep.subr.bf16.mxu0 %v2888_v38  ;;  %1807 = vmatprep.subr.bf16.mxu1 %v2890_v39  ;;  %v387_v37 = vld [vmem:[%s3041_s19 + $0x6b0] sm:$0x33]  ;;  %v372_v38 = vld [vmem:[%s3041_s19 + $0x638] sm:$0xff] }
  0x60   : > { %v388_v39 = vld [vmem:[%s3041_s19 + $0x6b8] sm:$0x33]  ;;  %v2924_v42 = vcombine.high %v371_v36, %v387_v37  ;;  %v2923_v43 = vcombine.low %v371_v36, %v387_v37 }
  0x62   : > { %1767 = vmatpush1.bf16.msra.mxu0 %v2887_v44  ;;  %1808 = vmatpush1.bf16.msra.mxu1 %v2889_v45  ;;  %v2926_v44 = vcombine.high %v372_v38, %v388_v39  ;;  %v2925_v45 = vcombine.low %v372_v38, %v388_v39  ;;  %v1533_v50 = vsel %vm1495_vm0, %v2923_v43, 0  ;;  %v199_v43 = vld [vmem:[%s3041_s19 + $0xd0] sm:$0xff] }
  0x63   : > { %2951 = vmatprep.subr.msk.bf16.mxu0 %vm1495_vm0, %v2920_v46  ;;  %2953 = vmatprep.subr.msk.bf16.mxu1 %vm1495_vm0, %v2922_v48  ;;  %v181_v46 = vld [vmem:[%s3041_s19 + $0x40] sm:$0xff]  ;;  %v182_v48 = vld [vmem:[%s3041_s19 + $0x48] sm:$0xff] }
  0x64   : > { %v2736_v51 = vcombine.high %v181_v46, %v197_v47  ;;  %v1539_v52 = vsel %vm1495_vm0, %v2925_v45, 0  ;;  %v2738_v53 = vcombine.high %v182_v48, %v198_v49  ;;  %v2735_v58 = vcombine.low %v181_v46, %v197_v47  ;;  %v200_v45 = vld [vmem:[%s3041_s19 + $0xd8] sm:$0xff] }
  0x65   : > { %v2737_v59 = vcombine.low %v182_v48, %v198_v49 }
  0x66   : > { %1769 = vmatpush1.bf16.msra.mxu0 %v1521_v54  ;;  %1810 = vmatpush1.bf16.msra.mxu1 %v1527_v56  ;;  %v213_v54 = vld [vmem:[%s3041_s19 + $0x140] sm:$0xff]  ;;  %v214_v56 = vld [vmem:[%s3041_s19 + $0x148] sm:$0xff] }
  0x67   : > { %1838 = vmatprep.subr.bf16.mxu0 %v2732_v55  ;;  %1879 = vmatprep.subr.bf16.mxu1 %v2734_v57  ;;  %v229_v55 = vld [vmem:[%s3041_s19 + $0x1c0] sm:$0xff]  ;;  %v230_v57 = vld [vmem:[%s3041_s19 + $0x1c8] sm:$0xff] }
  0x68   : > { %v2768_v60 = vcombine.high %v213_v54, %v229_v55  ;;  %v2770_v61 = vcombine.high %v214_v56, %v230_v57  ;;  %v2767_v3 = vcombine.low %v213_v54, %v229_v55  ;;  %v2769_v4 = vcombine.low %v214_v56, %v230_v57 }
  0x69   : > { %2952 = vmatmul.mubr.msk.bf16.vlgmr.msra.gmra.mrb[8].mxu0 %vm1491_vm1, %v3086_v7  ;;  %2954 = vmatmul.mubr.msk.bf16.vlgmr.msra.gmra.mrb[8].mxu1 %vm1491_vm1, %v3086_v7 }
  0x6a   : > { %1839 = vmatpush1.bf16.msra.mxu0 %v2731_v62  ;;  %1880 = vmatpush1.bf16.msra.mxu1 %v2733_v63  ;;  %v245_v62 = vld [vmem:[%s3041_s19 + $0x240] sm:$0xff] }
  0x6b   : > { %1840 = vmatprep.subr.bf16.mxu0 %v2764_v1  ;;  %1881 = vmatprep.subr.bf16.mxu1 %v2766_v2  ;;  %v261_v63 = vld [vmem:[%s3041_s19 + $0x2c0] sm:$0xff]  ;;  %v246_v1 = vld [vmem:[%s3041_s19 + $0x248] sm:$0xff] }
  0x6c   : > { %1870 = vmatprep.mubr.bf16.mxu0 %v3000_v0  ;;  %1911 = vmatprep.mubr.bf16.mxu1 %v3000_v0  ;;  %v262_v2 = vld [vmem:[%s3041_s19 + $0x2c8] sm:$0xff]  ;;  %v2800_v5 = vcombine.high %v245_v62, %v261_v63  ;;  %v2799_v12 = vcombine.low %v245_v62, %v261_v63 }
  0x6d   : > { %v2802_v6 = vcombine.high %v246_v1, %v262_v2  ;;  %v2801_v13 = vcombine.low %v246_v1, %v262_v2 }
  0x6e   : > { %1841 = vmatpush1.bf16.msra.mxu0 %v2763_v8  ;;  %1882 = vmatpush1.bf16.msra.mxu1 %v2765_v9  ;;  %v277_v8 = vld [vmem:[%s3041_s19 + $0x340] sm:$0xff] }
  0x6f   : > { %1842 = vmatprep.subr.bf16.mxu0 %v2796_v10  ;;  %1883 = vmatprep.subr.bf16.mxu1 %v2798_v11  ;;  %v293_v9 = vld [vmem:[%s3041_s19 + $0x3c0] sm:$0xff]  ;;  %v278_v10 = vld [vmem:[%s3041_s19 + $0x348] sm:$0xff] }
  0x70   : > { %v294_v11 = vld [vmem:[%s3041_s19 + $0x3c8] sm:$0xff]  ;;  %v2832_v14 = vcombine.high %v277_v8, %v293_v9  ;;  %v2831_v20 = vcombine.low %v277_v8, %v293_v9 }
  0x71   : > { %v2834_v15 = vcombine.high %v278_v10, %v294_v11  ;;  %v2833_v21 = vcombine.low %v278_v10, %v294_v11 }
  0x72   : > { %1843 = vmatpush1.bf16.msra.mxu0 %v2795_v16  ;;  %1884 = vmatpush1.bf16.msra.mxu1 %v2797_v17  ;;  %v309_v16 = vld [vmem:[%s3041_s19 + $0x440] sm:$0xff] }
  0x73   : > { %1844 = vmatprep.subr.bf16.mxu0 %v2828_v18  ;;  %1885 = vmatprep.subr.bf16.mxu1 %v2830_v19  ;;  %v325_v17 = vld [vmem:[%s3041_s19 + $0x4c0] sm:$0xff]  ;;  %v310_v18 = vld [vmem:[%s3041_s19 + $0x448] sm:$0xff] }
  0x74   : > { %v326_v19 = vld [vmem:[%s3041_s19 + $0x4c8] sm:$0xff]  ;;  %v2864_v22 = vcombine.high %v309_v16, %v325_v17  ;;  %v2863_v28 = vcombine.low %v309_v16, %v325_v17 }
  0x75   : > { %v2866_v23 = vcombine.high %v310_v18, %v326_v19  ;;  %v2865_v29 = vcombine.low %v310_v18, %v326_v19 }
  0x76   : > { %1845 = vmatpush1.bf16.msra.mxu0 %v2827_v24  ;;  %1886 = vmatpush1.bf16.msra.mxu1 %v2829_v25  ;;  %v341_v24 = vld [vmem:[%s3041_s19 + $0x540] sm:$0xff] }
  0x77   : > { %1846 = vmatprep.subr.bf16.mxu0 %v2860_v26  ;;  %1887 = vmatprep.subr.bf16.mxu1 %v2862_v27  ;;  %v357_v25 = vld [vmem:[%s3041_s19 + $0x5c0] sm:$0xff]  ;;  %v342_v26 = vld [vmem:[%s3041_s19 + $0x548] sm:$0xff] }
  0x78   : > { %v358_v27 = vld [vmem:[%s3041_s19 + $0x5c8] sm:$0xff]  ;;  %v2896_v30 = vcombine.high %v341_v24, %v357_v25  ;;  %v2895_v36 = vcombine.low %v341_v24, %v357_v25 }
  0x79   : > { %v2898_v31 = vcombine.high %v342_v26, %v358_v27  ;;  %v2897_v37 = vcombine.low %v342_v26, %v358_v27 }
  0x7a   : > { %1847 = vmatpush1.bf16.msra.mxu0 %v2859_v32  ;;  %1888 = vmatpush1.bf16.msra.mxu1 %v2861_v33  ;;  %v373_v32 = vld [vmem:[%s3041_s19 + $0x640] sm:$0xff] }
  0x7b   : > { %1848 = vmatprep.subr.bf16.mxu0 %v2892_v34  ;;  %1889 = vmatprep.subr.bf16.mxu1 %v2894_v35  ;;  %v389_v33 = vld [vmem:[%s3041_s19 + $0x6c0] sm:$0x33]  ;;  %v374_v34 = vld [vmem:[%s3041_s19 + $0x648] sm:$0xff] }
  0x7c   : > { %v390_v35 = vld [vmem:[%s3041_s19 + $0x6c8] sm:$0x33]  ;;  %v2928_v38 = vcombine.high %v373_v32, %v389_v33  ;;  %v2927_v39 = vcombine.low %v373_v32, %v389_v33 }
  0x7e   : > { %1849 = vmatpush1.bf16.msra.mxu0 %v2891_v40  ;;  %1890 = vmatpush1.bf16.msra.mxu1 %v2893_v41  ;;  %v2930_v40 = vcombine.high %v374_v34, %v390_v35  ;;  %v2929_v41 = vcombine.low %v374_v34, %v390_v35  ;;  %v1545_v46 = vsel %vm1495_vm0, %v2927_v39, 0  ;;  %v201_v39 = vld [vmem:[%s3041_s19 + $0xe0] sm:$0xff] }
  0x7f   : > { %2955 = vmatprep.subr.msk.bf16.mxu0 %vm1495_vm0, %v2924_v42  ;;  %2957 = vmatprep.subr.msk.bf16.mxu1 %vm1495_vm0, %v2926_v44  ;;  %v183_v42 = vld [vmem:[%s3041_s19 + $0x50] sm:$0xff]  ;;  %v184_v44 = vld [vmem:[%s3041_s19 + $0x58] sm:$0xff] }
  0x80   : > { %v2740_v47 = vcombine.high %v183_v42, %v199_v43  ;;  %v1551_v48 = vsel %vm1495_vm0, %v2929_v41, 0  ;;  %v2742_v49 = vcombine.high %v184_v44, %v200_v45  ;;  %v2739_v54 = vcombine.low %v183_v42, %v199_v43  ;;  %v202_v41 = vld [vmem:[%s3041_s19 + $0xe8] sm:$0xff] }
  0x81   : > { %v2741_v55 = vcombine.low %v184_v44, %v200_v45 }
  0x82   : > { %1851 = vmatpush1.bf16.msra.mxu0 %v1533_v50  ;;  %1892 = vmatpush1.bf16.msra.mxu1 %v1539_v52  ;;  %v215_v50 = vld [vmem:[%s3041_s19 + $0x150] sm:$0xff]  ;;  %v216_v52 = vld [vmem:[%s3041_s19 + $0x158] sm:$0xff] }
  0x83   : > { %1920 = vmatprep.subr.bf16.mxu0 %v2736_v51  ;;  %1961 = vmatprep.subr.bf16.mxu1 %v2738_v53  ;;  %v231_v51 = vld [vmem:[%s3041_s19 + $0x1d0] sm:$0xff]  ;;  %v232_v53 = vld [vmem:[%s3041_s19 + $0x1d8] sm:$0xff] }
  0x84   : > { %v2772_v56 = vcombine.high %v215_v50, %v231_v51  ;;  %v2774_v57 = vcombine.high %v216_v52, %v232_v53  ;;  %v2771_v62 = vcombine.low %v215_v50, %v231_v51  ;;  %v2773_v63 = vcombine.low %v216_v52, %v232_v53 }
  0x85   : > { %2956 = vmatmul.mubr.msk.bf16.vlgmr.msra.gmra.mrb[12].mxu0 %vm1491_vm1, %v3086_v7  ;;  %2958 = vmatmul.mubr.msk.bf16.vlgmr.msra.gmra.mrb[12].mxu1 %vm1491_vm1, %v3086_v7 }
  0x86   : > { %1921 = vmatpush1.bf16.msra.mxu0 %v2735_v58  ;;  %1962 = vmatpush1.bf16.msra.mxu1 %v2737_v59  ;;  %v247_v58 = vld [vmem:[%s3041_s19 + $0x250] sm:$0xff] }
  0x87   : > { %1922 = vmatprep.subr.bf16.mxu0 %v2768_v60  ;;  %1963 = vmatprep.subr.bf16.mxu1 %v2770_v61  ;;  %v263_v59 = vld [vmem:[%s3041_s19 + $0x2d0] sm:$0xff]  ;;  %v248_v60 = vld [vmem:[%s3041_s19 + $0x258] sm:$0xff] }
  0x88   : > { %1952 = vmatprep.mubr.bf16.mxu0 %v3000_v0  ;;  %1993 = vmatprep.mubr.bf16.mxu1 %v3000_v0  ;;  %v264_v61 = vld [vmem:[%s3041_s19 + $0x2d8] sm:$0xff]  ;;  %v2804_v1 = vcombine.high %v247_v58, %v263_v59  ;;  %v2803_v8 = vcombine.low %v247_v58, %v263_v59 }
  0x89   : > { %v2806_v2 = vcombine.high %v248_v60, %v264_v61  ;;  %v2805_v9 = vcombine.low %v248_v60, %v264_v61 }
  0x8a   : > { %1923 = vmatpush1.bf16.msra.mxu0 %v2767_v3  ;;  %1964 = vmatpush1.bf16.msra.mxu1 %v2769_v4  ;;  %v279_v3 = vld [vmem:[%s3041_s19 + $0x350] sm:$0xff] }
  0x8b   : > { %1924 = vmatprep.subr.bf16.mxu0 %v2800_v5  ;;  %1965 = vmatprep.subr.bf16.mxu1 %v2802_v6  ;;  %v295_v4 = vld [vmem:[%s3041_s19 + $0x3d0] sm:$0xff]  ;;  %v280_v5 = vld [vmem:[%s3041_s19 + $0x358] sm:$0xff] }
  0x8c   : > { %v296_v6 = vld [vmem:[%s3041_s19 + $0x3d8] sm:$0xff]  ;;  %v2836_v10 = vcombine.high %v279_v3, %v295_v4  ;;  %v2835_v16 = vcombine.low %v279_v3, %v295_v4 }
  0x8d   : > { %v2838_v11 = vcombine.high %v280_v5, %v296_v6  ;;  %v2837_v17 = vcombine.low %v280_v5, %v296_v6  ;;  %v313_v6 = vld [vmem:[%s3041_s19 + $0x460] sm:$0xff] }
  0x8e   : > { %1925 = vmatpush1.bf16.msra.mxu0 %v2799_v12  ;;  %1966 = vmatpush1.bf16.msra.mxu1 %v2801_v13  ;;  %v311_v12 = vld [vmem:[%s3041_s19 + $0x450] sm:$0xff] }
  0x8f   : > { %1926 = vmatprep.subr.bf16.mxu0 %v2832_v14  ;;  %1967 = vmatprep.subr.bf16.mxu1 %v2834_v15  ;;  %v327_v13 = vld [vmem:[%s3041_s19 + $0x4d0] sm:$0xff]  ;;  %v312_v14 = vld [vmem:[%s3041_s19 + $0x458] sm:$0xff] }
  0x90   : > { %v328_v15 = vld [vmem:[%s3041_s19 + $0x4d8] sm:$0xff]  ;;  %v2868_v18 = vcombine.high %v311_v12, %v327_v13  ;;  %v2867_v24 = vcombine.low %v311_v12, %v327_v13 }
  0x91   : > { %v2870_v19 = vcombine.high %v312_v14, %v328_v15  ;;  %v2869_v25 = vcombine.low %v312_v14, %v328_v15  ;;  %v345_v15 = vld [vmem:[%s3041_s19 + $0x560] sm:$0xff] }
  0x92   : > { %1927 = vmatpush1.bf16.msra.mxu0 %v2831_v20  ;;  %1968 = vmatpush1.bf16.msra.mxu1 %v2833_v21  ;;  %v343_v20 = vld [vmem:[%s3041_s19 + $0x550] sm:$0xff] }
  0x93   : > { %1928 = vmatprep.subr.bf16.mxu0 %v2864_v22  ;;  %1969 = vmatprep.subr.bf16.mxu1 %v2866_v23  ;;  %v359_v21 = vld [vmem:[%s3041_s19 + $0x5d0] sm:$0xff]  ;;  %v344_v22 = vld [vmem:[%s3041_s19 + $0x558] sm:$0xff] }
  0x94   : > { %v360_v23 = vld [vmem:[%s3041_s19 + $0x5d8] sm:$0xff]  ;;  %v2900_v26 = vcombine.high %v343_v20, %v359_v21  ;;  %v2899_v32 = vcombine.low %v343_v20, %v359_v21 }
  0x95   : > { %v2902_v27 = vcombine.high %v344_v22, %v360_v23  ;;  %v2901_v33 = vcombine.low %v344_v22, %v360_v23  ;;  %v377_v23 = vld [vmem:[%s3041_s19 + $0x660] sm:$0xff] }
  0x96   : > { %1929 = vmatpush1.bf16.msra.mxu0 %v2863_v28  ;;  %1970 = vmatpush1.bf16.msra.mxu1 %v2865_v29  ;;  %v375_v28 = vld [vmem:[%s3041_s19 + $0x650] sm:$0xff] }
  0x97   : > { %1930 = vmatprep.subr.bf16.mxu0 %v2896_v30  ;;  %1971 = vmatprep.subr.bf16.mxu1 %v2898_v31  ;;  %v391_v29 = vld [vmem:[%s3041_s19 + $0x6d0] sm:$0x33]  ;;  %v376_v30 = vld [vmem:[%s3041_s19 + $0x658] sm:$0xff] }
  0x98   : > { %v392_v31 = vld [vmem:[%s3041_s19 + $0x6d8] sm:$0x33]  ;;  %v2932_v34 = vcombine.high %v375_v28, %v391_v29  ;;  %v2931_v35 = vcombine.low %v375_v28, %v391_v29 }
  0x9a   : > { %1931 = vmatpush1.bf16.msra.mxu0 %v2895_v36  ;;  %1972 = vmatpush1.bf16.msra.mxu1 %v2897_v37  ;;  %v2934_v36 = vcombine.high %v376_v30, %v392_v31  ;;  %v2933_v37 = vcombine.low %v376_v30, %v392_v31  ;;  %v1557_v42 = vsel %vm1495_vm0, %v2931_v35, 0  ;;  %v188_v35 = vld [vmem:[%s3041_s19 + $0x78] sm:$0xff] }
  0x9b   : > { %2959 = vmatprep.subr.msk.bf16.mxu0 %vm1495_vm0, %v2928_v38  ;;  %2961 = vmatprep.subr.msk.bf16.mxu1 %vm1495_vm0, %v2930_v40  ;;  %v185_v38 = vld [vmem:[%s3041_s19 + $0x60] sm:$0xff]  ;;  %v186_v40 = vld [vmem:[%s3041_s19 + $0x68] sm:$0xff] }
  0x9c   : > { %v2744_v43 = vcombine.high %v185_v38, %v201_v39  ;;  %v1563_v44 = vsel %vm1495_vm0, %v2933_v37, 0  ;;  %v2746_v45 = vcombine.high %v186_v40, %v202_v41  ;;  %v2743_v50 = vcombine.low %v185_v38, %v201_v39 }
  0x9d   : > { %v2745_v51 = vcombine.low %v186_v40, %v202_v41  ;;  %v219_v41 = vld [vmem:[%s3041_s19 + $0x170] sm:$0xff] }
  0x9e   : > { %1933 = vmatpush1.bf16.msra.mxu0 %v1545_v46  ;;  %1974 = vmatpush1.bf16.msra.mxu1 %v1551_v48  ;;  %v217_v46 = vld [vmem:[%s3041_s19 + $0x160] sm:$0xff]  ;;  %v218_v48 = vld [vmem:[%s3041_s19 + $0x168] sm:$0xff] }
  0x9f   : > { %2002 = vmatprep.subr.bf16.mxu0 %v2740_v47  ;;  %2043 = vmatprep.subr.bf16.mxu1 %v2742_v49  ;;  %v233_v47 = vld [vmem:[%s3041_s19 + $0x1e0] sm:$0xff]  ;;  %v234_v49 = vld [vmem:[%s3041_s19 + $0x1e8] sm:$0xff] }
  0xa0   : > { %v2776_v52 = vcombine.high %v217_v46, %v233_v47  ;;  %v2778_v53 = vcombine.high %v218_v48, %v234_v49  ;;  %v2775_v58 = vcombine.low %v217_v46, %v233_v47  ;;  %v2777_v59 = vcombine.low %v218_v48, %v234_v49  ;;  %v251_v49 = vld [vmem:[%s3041_s19 + $0x270] sm:$0xff] }
  0xa1   : > { %2960 = vmatmul.mubr.msk.bf16.vlgmr.msra.gmra.mrb[16].mxu0 %vm1491_vm1, %v3086_v7  ;;  %2962 = vmatmul.mubr.msk.bf16.vlgmr.msra.gmra.mrb[16].mxu1 %vm1491_vm1, %v3086_v7 }
  0xa2   : > { %2003 = vmatpush1.bf16.msra.mxu0 %v2739_v54  ;;  %2044 = vmatpush1.bf16.msra.mxu1 %v2741_v55  ;;  %v249_v54 = vld [vmem:[%s3041_s19 + $0x260] sm:$0xff] }
  0xa3   : > { %2004 = vmatprep.subr.bf16.mxu0 %v2772_v56  ;;  %2045 = vmatprep.subr.bf16.mxu1 %v2774_v57  ;;  %v265_v55 = vld [vmem:[%s3041_s19 + $0x2e0] sm:$0xff]  ;;  %v250_v56 = vld [vmem:[%s3041_s19 + $0x268] sm:$0xff] }
  0xa4   : > { %2034 = vmatprep.mubr.bf16.mxu0 %v3000_v0  ;;  %2075 = vmatprep.mubr.bf16.mxu1 %v3000_v0  ;;  %v266_v57 = vld [vmem:[%s3041_s19 + $0x2e8] sm:$0xff]  ;;  %v2808_v60 = vcombine.high %v249_v54, %v265_v55 }
  0xa5   : > { %v2810_v61 = vcombine.high %v250_v56, %v266_v57  ;;  %v2809_v3 = vcombine.low %v250_v56, %v266_v57 }
  0xa6   : > { %2005 = vmatpush1.bf16.msra.mxu0 %v2771_v62  ;;  %2046 = vmatpush1.bf16.msra.mxu1 %v2773_v63  ;;  %v281_v62 = vld [vmem:[%s3041_s19 + $0x360] sm:$0xff] }
  0xa7   : > { %2006 = vmatprep.subr.bf16.mxu0 %v2804_v1  ;;  %2047 = vmatprep.subr.bf16.mxu1 %v2806_v2  ;;  %v297_v63 = vld [vmem:[%s3041_s19 + $0x3e0] sm:$0xff]  ;;  %v282_v1 = vld [vmem:[%s3041_s19 + $0x368] sm:$0xff] }
  0xa8   : > { %v298_v2 = vld [vmem:[%s3041_s19 + $0x3e8] sm:$0xff]  ;;  %v2840_v4 = vcombine.high %v281_v62, %v297_v63 }
  0xa9   : > { %v2842_v5 = vcombine.high %v282_v1, %v298_v2  ;;  %v2841_v12 = vcombine.low %v282_v1, %v298_v2 }
  0xaa   : > { %2007 = vmatpush1.bf16.msra.mxu0 %v2803_v8  ;;  %2048 = vmatpush1.bf16.msra.mxu1 %v2805_v9  ;;  %v329_v8 = vld [vmem:[%s3041_s19 + $0x4e0] sm:$0xff]  ;;  %v314_v9 = vld [vmem:[%s3041_s19 + $0x468] sm:$0xff] }
  0xab   : > { %2008 = vmatprep.subr.bf16.mxu0 %v2836_v10  ;;  %2049 = vmatprep.subr.bf16.mxu1 %v2838_v11  ;;  %v330_v10 = vld [vmem:[%s3041_s19 + $0x4e8] sm:$0xff]  ;;  %v2839_v11 = vcombine.low %v281_v62, %v297_v63  ;;  %v2872_v13 = vcombine.high %v313_v6, %v329_v8 }
  0xac   : > { %v2874_v14 = vcombine.high %v314_v9, %v330_v10  ;;  %v2873_v20 = vcombine.low %v314_v9, %v330_v10  ;;  %v347_v10 = vld [vmem:[%s3041_s19 + $0x570] sm:$0xff] }
  0xae   : > { %2009 = vmatpush1.bf16.msra.mxu0 %v2835_v16  ;;  %2050 = vmatpush1.bf16.msra.mxu1 %v2837_v17  ;;  %v361_v16 = vld [vmem:[%s3041_s19 + $0x5e0] sm:$0xff]  ;;  %v346_v17 = vld [vmem:[%s3041_s19 + $0x568] sm:$0xff] }
  0xaf   : > { %2010 = vmatprep.subr.bf16.mxu0 %v2868_v18  ;;  %2051 = vmatprep.subr.bf16.mxu1 %v2870_v19  ;;  %v362_v18 = vld [vmem:[%s3041_s19 + $0x5e8] sm:$0xff]  ;;  %v2871_v19 = vcombine.low %v313_v6, %v329_v8  ;;  %v2904_v21 = vcombine.high %v345_v15, %v361_v16 }
  0xb0   : > { %v2906_v22 = vcombine.high %v346_v17, %v362_v18  ;;  %v2905_v28 = vcombine.low %v346_v17, %v362_v18  ;;  %v379_v18 = vld [vmem:[%s3041_s19 + $0x670] sm:$0xff] }
  0xb2   : > { %2011 = vmatpush1.bf16.msra.mxu0 %v2867_v24  ;;  %2052 = vmatpush1.bf16.msra.mxu1 %v2869_v25  ;;  %v393_v24 = vld [vmem:[%s3041_s19 + $0x6e0] sm:$0x33]  ;;  %v378_v25 = vld [vmem:[%s3041_s19 + $0x668] sm:$0xff] }
  0xb3   : > { %2012 = vmatprep.subr.bf16.mxu0 %v2900_v26  ;;  %2053 = vmatprep.subr.bf16.mxu1 %v2902_v27  ;;  %v394_v26 = vld [vmem:[%s3041_s19 + $0x6e8] sm:$0x33]  ;;  %v2903_v27 = vcombine.low %v345_v15, %v361_v16  ;;  %v2936_v29 = vcombine.high %v377_v23, %v393_v24  ;;  %v2935_v30 = vcombine.low %v377_v23, %v393_v24 }
  0xb4   : > { %v2938_v31 = vcombine.high %v378_v25, %v394_v26 }
  0xb5   : > { %v1569_v37 = vsel %vm1495_vm0, %v2935_v30, 0 }
  0xb6   : > { %2013 = vmatpush1.bf16.msra.mxu0 %v2899_v32  ;;  %2054 = vmatpush1.bf16.msra.mxu1 %v2901_v33  ;;  %v2937_v32 = vcombine.low %v378_v25, %v394_v26  ;;  %v187_v33 = vld [vmem:[%s3041_s19 + $0x70] sm:$0xff] }
  0xb7   : > { %2963 = vmatprep.subr.msk.bf16.mxu0 %vm1495_vm0, %v2932_v34  ;;  %2965 = vmatprep.subr.msk.bf16.mxu1 %vm1495_vm0, %v2934_v36  ;;  %v203_v34 = vld [vmem:[%s3041_s19 + $0xf0] sm:$0xff]  ;;  %v204_v36 = vld [vmem:[%s3041_s19 + $0xf8] sm:$0xff] }
  0xb8   : > { %v2748_v38 = vcombine.high %v187_v33, %v203_v34  ;;  %v1575_v39 = vsel %vm1495_vm0, %v2937_v32, 0  ;;  %v2750_v40 = vcombine.high %v188_v35, %v204_v36  ;;  %v2749_v46 = vcombine.low %v188_v35, %v204_v36 }
  0xba   : > { %2015 = vmatpush1.bf16.msra.mxu0 %v1557_v42  ;;  %2056 = vmatpush1.bf16.msra.mxu1 %v1563_v44  ;;  %v235_v42 = vld [vmem:[%s3041_s19 + $0x1f0] sm:$0xff]  ;;  %v236_v44 = vld [vmem:[%s3041_s19 + $0x1f8] sm:$0xff] }
  0xbb   : > { %2084 = vmatprep.subr.bf16.mxu0 %v2744_v43  ;;  %2125 = vmatprep.subr.bf16.mxu1 %v2746_v45  ;;  %v220_v43 = vld [vmem:[%s3041_s19 + $0x178] sm:$0xff]  ;;  %v2747_v45 = vcombine.low %v187_v33, %v203_v34  ;;  %v2780_v47 = vcombine.high %v219_v41, %v235_v42 }
  0xbc   : > { %v2782_v48 = vcombine.high %v220_v43, %v236_v44 }
  0xbd   : > { %2964 = vmatmul.mubr.msk.bf16.vlgmr.msra.gmra.mrb[20].mxu0 %vm1491_vm1, %v3086_v7  ;;  %2966 = vmatmul.mubr.msk.bf16.vlgmr.msra.gmra.mrb[20].mxu1 %vm1491_vm1, %v3086_v7  ;;  %v2807_v7 = vcombine.low %v249_v54, %v265_v55  ;;  %v2779_v54 = vcombine.low %v219_v41, %v235_v42  ;;  %v2781_v55 = vcombine.low %v220_v43, %v236_v44 }
  0xbe   : > { %2085 = vmatpush1.bf16.msra.mxu0 %v2743_v50  ;;  %2126 = vmatpush1.bf16.msra.mxu1 %v2745_v51  ;;  %v267_v50 = vld [vmem:[%s3041_s19 + $0x2f0] sm:$0xff]  ;;  %v3321_v51 = vld [vmem:[%s4027_s1] sm:$0x3] }
  0xbf   : > { %2086 = vmatprep.subr.bf16.mxu0 %v2776_v52  ;;  %2127 = vmatprep.subr.bf16.mxu1 %v2778_v53  ;;  %v252_v52 = vld [vmem:[%s3041_s19 + $0x278] sm:$0xff]  ;;  %v2812_v56 = vcombine.high %v251_v49, %v267_v50  ;;  %v2811_v62 = vcombine.low %v251_v49, %v267_v50 }
  0xc0   : > { %2116 = vmatprep.mubr.bf16.mxu0 %v3000_v0  ;;  %2157 = vmatprep.mubr.bf16.mxu1 %v3000_v0  ;;  %v268_v53 = vld [vmem:[%s3041_s19 + $0x2f8] sm:$0xff] }
  0xc1   : > { %v2814_v57 = vcombine.high %v252_v52, %v268_v53  ;;  %v2813_v63 = vcombine.low %v252_v52, %v268_v53 }
  0xc2   : > { %2087 = vmatpush1.bf16.msra.mxu0 %v2775_v58  ;;  %2128 = vmatpush1.bf16.msra.mxu1 %v2777_v59  ;;  %v283_v58 = vld [vmem:[%s3041_s19 + $0x370] sm:$0xff] }
  0xc3   : > { %2088 = vmatprep.subr.bf16.mxu0 %v2808_v60  ;;  %2129 = vmatprep.subr.bf16.mxu1 %v2810_v61  ;;  %v299_v59 = vld [vmem:[%s3041_s19 + $0x3f0] sm:$0xff]  ;;  %v284_v60 = vld [vmem:[%s3041_s19 + $0x378] sm:$0xff] }
  0xc4   : > { %v300_v61 = vld [vmem:[%s3041_s19 + $0x3f8] sm:$0xff]  ;;  %v2844_v1 = vcombine.high %v283_v58, %v299_v59  ;;  %v2843_v6 = vcombine.low %v283_v58, %v299_v59 }
  0xc5   : > { %v2846_v2 = vcombine.high %v284_v60, %v300_v61 }
  0xc6   : > { %2089 = vmatpush1.bf16.msra.mxu0 %v2807_v7  ;;  %2130 = vmatpush1.bf16.msra.mxu1 %v2809_v3  ;;  %v315_v7 = vld [vmem:[%s3041_s19 + $0x470] sm:$0xff] }
  0xc7   : > { %2090 = vmatprep.subr.bf16.mxu0 %v2840_v4  ;;  %2131 = vmatprep.subr.bf16.mxu1 %v2842_v5  ;;  %v331_v3 = vld [vmem:[%s3041_s19 + $0x4f0] sm:$0xff]  ;;  %v316_v4 = vld [vmem:[%s3041_s19 + $0x478] sm:$0xff] }
  0xc8   : > { %v332_v5 = vld [vmem:[%s3041_s19 + $0x4f8] sm:$0xff]  ;;  %v2876_v8 = vcombine.high %v315_v7, %v331_v3 }
  0xc9   : > { %v2878_v9 = vcombine.high %v316_v4, %v332_v5  ;;  %v2877_v15 = vcombine.low %v316_v4, %v332_v5 }
  0xca   : > { %2091 = vmatpush1.bf16.msra.mxu0 %v2839_v11  ;;  %2132 = vmatpush1.bf16.msra.mxu1 %v2841_v12  ;;  %v363_v11 = vld [vmem:[%s3041_s19 + $0x5f0] sm:$0xff]  ;;  %v348_v12 = vld [vmem:[%s3041_s19 + $0x578] sm:$0xff] }
  0xcb   : > { %2092 = vmatprep.subr.bf16.mxu0 %v2872_v13  ;;  %2133 = vmatprep.subr.bf16.mxu1 %v2874_v14  ;;  %v364_v13 = vld [vmem:[%s3041_s19 + $0x5f8] sm:$0xff]  ;;  %v2875_v14 = vcombine.low %v315_v7, %v331_v3  ;;  %v2908_v16 = vcombine.high %v347_v10, %v363_v11 }
  0xcc   : > { %v2910_v17 = vcombine.high %v348_v12, %v364_v13  ;;  %v2909_v23 = vcombine.low %v348_v12, %v364_v13 }
  0xce   : > { %2093 = vmatpush1.bf16.msra.mxu0 %v2871_v19  ;;  %2134 = vmatpush1.bf16.msra.mxu1 %v2873_v20  ;;  %v395_v19 = vld [vmem:[%s3041_s19 + $0x6f0] sm:$0x33]  ;;  %v380_v20 = vld [vmem:[%s3041_s19 + $0x678] sm:$0xff] }
  0xcf   : > { %2094 = vmatprep.subr.bf16.mxu0 %v2904_v21  ;;  %2135 = vmatprep.subr.bf16.mxu1 %v2906_v22  ;;  %v396_v21 = vld [vmem:[%s3041_s19 + $0x6f8] sm:$0x33]  ;;  %v2907_v22 = vcombine.low %v347_v10, %v363_v11  ;;  %v2940_v24 = vcombine.high %v379_v18, %v395_v19  ;;  %v2939_v25 = vcombine.low %v379_v18, %v395_v19 }
  0xd0   : > { %v2942_v26 = vcombine.high %v380_v20, %v396_v21 }
  0xd2   : > { %2095 = vmatpush1.bf16.msra.mxu0 %v2903_v27  ;;  %2136 = vmatpush1.bf16.msra.mxu1 %v2905_v28  ;;  %v2941_v27 = vcombine.low %v380_v20, %v396_v21  ;;  %v1581_v28 = vsel %vm1495_vm0, %v2939_v25, 0 }
  0xd3   : > { %2967 = vmatprep.subr.msk.bf16.mxu0 %vm1495_vm0, %v2936_v29  ;;  %2969 = vmatprep.subr.msk.bf16.mxu1 %vm1495_vm0, %v2938_v31 }
  0xd4   : > { %v1587_v29 = vsel %vm1495_vm0, %v2941_v27, 0 }
  0xd6   : > { %2097 = vmatpush1.bf16.msra.mxu0 %v1569_v37  ;;  %2138 = vmatpush1.bf16.msra.mxu1 %v1575_v39 }
  0xd7   : > { %2166 = vmatprep.subr.bf16.mxu0 %v2748_v38  ;;  %2207 = vmatprep.subr.bf16.mxu1 %v2750_v40 }
  0xd9   : > { %2968 = vmatmul.mubr.msk.bf16.vlgmr.msra.gmra.mrb[24].mxu0 %vm1491_vm1, %v3321_v51  ;;  %2970 = vmatmul.mubr.msk.bf16.vlgmr.msra.gmra.mrb[24].mxu1 %vm1491_vm1, %v3321_v51 }
  0xda   : > { %2167 = vmatpush1.bf16.msra.mxu0 %v2747_v45  ;;  %2208 = vmatpush1.bf16.msra.mxu1 %v2749_v46 }
  0xdb   : > { %2168 = vmatprep.subr.bf16.mxu0 %v2780_v47  ;;  %2209 = vmatprep.subr.bf16.mxu1 %v2782_v48 }
  0xdc   : > { %2198 = vmatprep.mubr.bf16.mxu0 %v3000_v0  ;;  %2239 = vmatprep.mubr.bf16.mxu1 %v3000_v0  ;;  %v2845_v0 = vcombine.low %v284_v60, %v300_v61 }
  0xde   : > { %2169 = vmatpush1.bf16.msra.mxu0 %v2779_v54  ;;  %2210 = vmatpush1.bf16.msra.mxu1 %v2781_v55 }
  0xdf   : > { %2170 = vmatprep.subr.bf16.mxu0 %v2812_v56  ;;  %2211 = vmatprep.subr.bf16.mxu1 %v2814_v57 }
  0xe2   : > { %2171 = vmatpush1.bf16.msra.mxu0 %v2811_v62  ;;  %2212 = vmatpush1.bf16.msra.mxu1 %v2813_v63  ;;  %v3359_v62 = vpop.permute.xlu0 %400 }
  0xe3   : > { %2172 = vmatprep.subr.bf16.mxu0 %v2844_v1  ;;  %2213 = vmatprep.subr.bf16.mxu1 %v2846_v2 }
  0xe6   : > { %2173 = vmatpush1.bf16.msra.mxu0 %v2843_v6  ;;  %2214 = vmatpush1.bf16.msra.mxu1 %v2845_v0 }
  0xe7   : > { %2174 = vmatprep.subr.bf16.mxu0 %v2876_v8  ;;  %2215 = vmatprep.subr.bf16.mxu1 %v2878_v9 }
  0xea   : > { %2175 = vmatpush1.bf16.msra.mxu0 %v2875_v14  ;;  %2216 = vmatpush1.bf16.msra.mxu1 %v2877_v15 }
  0xeb   : > { %2176 = vmatprep.subr.bf16.mxu0 %v2908_v16  ;;  %2217 = vmatprep.subr.bf16.mxu1 %v2910_v17 }
  0xee   : > { %2177 = vmatpush1.bf16.msra.mxu0 %v2907_v22  ;;  %2218 = vmatpush1.bf16.msra.mxu1 %v2909_v23 }
  0xef   : > { %2971 = vmatprep.subr.msk.bf16.mxu0 %vm1495_vm0, %v2940_v24  ;;  %2973 = vmatprep.subr.msk.bf16.mxu1 %vm1495_vm0, %v2942_v26 }
  0xf2   : > { %2179 = vmatpush1.bf16.msra.mxu0 %v1581_v28  ;;  %2220 = vmatpush1.bf16.msra.mxu1 %v1587_v29 }
  0xf5   : > { %2972 = vmatmul.mubr.msk.bf16.vlgmr.msra.gmra.mrb[28].mxu0 %vm1491_vm1, %v3321_v51  ;;  %2974 = vmatmul.mubr.msk.bf16.vlgmr.msra.gmra.mrb[28].mxu1 %vm1491_vm1, %v3321_v51 }
 0x104   : > { %v1626_v30 = vpop.f32.mrb[0].mxu0  ;;  %v1667_v32 = vpop.f32.mrb[0].mxu1 }
 0x105   : > { %v1628_v31 = vpop.f32.mrb[1].mxu0  ;;  %v1669_v34 = vpop.f32.mrb[1].mxu1  ;;  %v3362_v63 = vadd.f32 %v1626_v30, %v3359_v62  ;;  %v3372_v3 = vadd.f32 %v1667_v32, %v3359_v62 }
 0x106   : > { %v1630_v33 = vpop.f32.mrb[2].mxu0  ;;  %v1671_v36 = vpop.f32.mrb[2].mxu1  ;;  %v3365_v1 = vadd.f32 %v1628_v31, %v3359_v62  ;;  %v3377_v6 = vadd.f32 %v1669_v34, %v3359_v62 }
 0x107   : > { %v1631_v35 = vpop.f32.mrb[3].mxu0  ;;  %v1672_v37 = vpop.f32.mrb[3].mxu1  ;;  %v2249_v2 = vsel %vm2248_vm2, %v3362_v63, 0.0  ;;  %v2252_v5 = vsel %vm2248_vm2, %v3372_v3, 0.0 }
 0x108   : > { %v2250_v7 = vsel %vm2248_vm2, %v3365_v1, 0.0  ;;  %v2254_v9 = vsel %vm2248_vm2, %v3377_v6, 0.0 }
 0x109   : > { %v2251_v4 = vadd.f32 %v2250_v7, %v2249_v2 }
 0x10b   : > { %v2253_v8 = vadd.f32 %v2252_v5, %v2251_v4 }
 0x10d   : > { %v2255_v15 = vadd.f32 %v2254_v9, %v2253_v8 }
 0x120   : > { %v1708_v38 = vpop.f32.mrb[4].mxu0  ;;  %v1749_v40 = vpop.f32.mrb[4].mxu1 }
 0x121   : > { %v1710_v39 = vpop.f32.mrb[5].mxu0  ;;  %v1751_v42 = vpop.f32.mrb[5].mxu1  ;;  %v3380_v0 = vadd.f32 %v1708_v38, %v3359_v62  ;;  %v3392_v23 = vadd.f32 %v1749_v40, %v3359_v62 }
 0x122   : > { %v1712_v41 = vpop.f32.mrb[6].mxu0  ;;  %v1753_v44 = vpop.f32.mrb[6].mxu1  ;;  %v3387_v12 = vadd.f32 %v1710_v39, %v3359_v62  ;;  %v3397_v26 = vadd.f32 %v1751_v42, %v3359_v62 }
 0x123   : > { %v1713_v43 = vpop.f32.mrb[7].mxu0  ;;  %v1754_v45 = vpop.f32.mrb[7].mxu1  ;;  %v2256_v11 = vsel %vm2248_vm2, %v3380_v0, 0.0  ;;  %v2260_v25 = vsel %vm2248_vm2, %v3392_v23, 0.0 }
 0x124   : > { %v2257_v20 = vadd.f32 %v2256_v11, %v2255_v15  ;;  %v2258_v22 = vsel %vm2248_vm2, %v3387_v12, 0.0  ;;  %v2262_v29 = vsel %vm2248_vm2, %v3397_v26, 0.0 }
 0x126   : > { %v2259_v24 = vadd.f32 %v2258_v22, %v2257_v20 }
 0x128   : > { %v2261_v28 = vadd.f32 %v2260_v25, %v2259_v24 }
 0x12a   : > { %v2263_v32 = vadd.f32 %v2262_v29, %v2261_v28 }
 0x13c   : > { %v1790_v46 = vpop.f32.mrb[8].mxu0  ;;  %v1831_v48 = vpop.f32.mrb[8].mxu1 }
 0x13d   : > { %v1792_v47 = vpop.f32.mrb[9].mxu0  ;;  %v1833_v50 = vpop.f32.mrb[9].mxu1  ;;  %v3400_v27 = vadd.f32 %v1790_v46, %v3359_v62  ;;  %v3412_v35 = vadd.f32 %v1831_v48, %v3359_v62 }
 0x13e   : > { %v1794_v49 = vpop.f32.mrb[10].mxu0  ;;  %v1835_v52 = vpop.f32.mrb[10].mxu1  ;;  %v3407_v31 = vadd.f32 %v1792_v47, %v3359_v62  ;;  %v3417_v38 = vadd.f32 %v1833_v50, %v3359_v62 }
 0x13f   : > { %v1795_v51 = vpop.f32.mrb[11].mxu0  ;;  %v1836_v53 = vpop.f32.mrb[11].mxu1  ;;  %v2264_v30 = vsel %vm2248_vm2, %v3400_v27, 0.0  ;;  %v2268_v37 = vsel %vm2248_vm2, %v3412_v35, 0.0 }
 0x140   : > { %v2265_v33 = vadd.f32 %v2264_v30, %v2263_v32  ;;  %v2266_v34 = vsel %vm2248_vm2, %v3407_v31, 0.0  ;;  %v2270_v41 = vsel %vm2248_vm2, %v3417_v38, 0.0 }
 0x142   : > { %v2267_v36 = vadd.f32 %v2266_v34, %v2265_v33 }
 0x144   : > { %v2269_v40 = vadd.f32 %v2268_v37, %v2267_v36 }
 0x146   : > { %v2271_v47 = vadd.f32 %v2270_v41, %v2269_v40 }
 0x158   : > { %v1872_v54 = vpop.f32.mrb[12].mxu0  ;;  %v3355_v56 = vpop.f32.mrb[12].mxu1 }
 0x159   : > { %v1874_v55 = vpop.f32.mrb[13].mxu0  ;;  %v3357_v58 = vpop.f32.mrb[13].mxu1  ;;  %v3420_v39 = vadd.f32 %v1872_v54, %v3359_v62 }
 0x15a   : > { %v1876_v57 = vpop.f32.mrb[14].mxu0  ;;  %v1917_v60 = vpop.f32.mrb[14].mxu1  ;;  %v3427_v44 = vadd.f32 %v1874_v55, %v3359_v62 }
 0x15b   : > { %v1877_v59 = vpop.f32.mrb[15].mxu0  ;;  %v1918_v61 = vpop.f32.mrb[15].mxu1  ;;  %v2272_v43 = vsel %vm2248_vm2, %v3420_v39, 0.0  ;;  %v3433_v57 = vadd.f32 %v3355_v56, %v3359_v62  ;;  %v3439_v60 = vadd.f32 %v3357_v58, %v3359_v62 }
 0x15c   : > { %v2273_v52 = vadd.f32 %v2272_v43, %v2271_v47  ;;  %v2274_v54 = vsel %vm2248_vm2, %v3427_v44, 0.0 }
 0x15d   : > { %v2276_v55 = vsel %vm2248_vm2, %v3433_v57, 0.0  ;;  %v2278_v7 = vsel %vm2248_vm2, %v3439_v60, 0.0 }
 0x15e   : > { %v2275_v59 = vadd.f32 %v2274_v54, %v2273_v52 }
 0x160   : > { %v2277_v2 = vadd.f32 %v2276_v55, %v2275_v59 }
 0x162   : > { %v2279_v5 = vadd.f32 %v2278_v7, %v2277_v2 }
 0x174   : > { %v1954_v10 = vpop.f32.mrb[16].mxu0  ;;  %v1995_v14 = vpop.f32.mrb[16].mxu1 }
 0x175   : > { %v1956_v13 = vpop.f32.mrb[17].mxu0  ;;  %v1997_v17 = vpop.f32.mrb[17].mxu1  ;;  %v3442_v61 = vadd.f32 %v1954_v10, %v3359_v62  ;;  %v3454_v58 = vadd.f32 %v1995_v14, %v3359_v62 }
 0x176   : > { %v1958_v16 = vpop.f32.mrb[18].mxu0  ;;  %v1999_v19 = vpop.f32.mrb[18].mxu1  ;;  %v3449_v56 = vadd.f32 %v1956_v13, %v3359_v62  ;;  %v3459_v15 = vadd.f32 %v1997_v17, %v3359_v62 }
 0x177   : > { %v1959_v18 = vpop.f32.mrb[19].mxu0  ;;  %v2000_v21 = vpop.f32.mrb[19].mxu1  ;;  %v2280_v4 = vsel %vm2248_vm2, %v3442_v61, 0.0  ;;  %v2284_v11 = vsel %vm2248_vm2, %v3454_v58, 0.0 }
 0x178   : > { %v2281_v8 = vadd.f32 %v2280_v4, %v2279_v5  ;;  %v2282_v9 = vsel %vm2248_vm2, %v3449_v56, 0.0  ;;  %v2286_v18 = vsel %vm2248_vm2, %v3459_v15, 0.0 }
 0x17a   : > { %v2283_v10 = vadd.f32 %v2282_v9, %v2281_v8 }
 0x17c   : > { %v2285_v13 = vadd.f32 %v2284_v11, %v2283_v10 }
 0x17e   : > { %v2287_v24 = vadd.f32 %v2286_v18, %v2285_v13 }
 0x190   : > { %v2036_v42 = vpop.f32.mrb[20].mxu0  ;;  %v2077_v46 = vpop.f32.mrb[20].mxu1 }
 0x191   : > { %v2038_v45 = vpop.f32.mrb[21].mxu0  ;;  %v2079_v49 = vpop.f32.mrb[21].mxu1  ;;  %v3462_v16 = vadd.f32 %v2036_v42, %v3359_v62  ;;  %v3474_v34 = vadd.f32 %v2077_v46, %v3359_v62 }
 0x192   : > { %v2040_v48 = vpop.f32.mrb[22].mxu0  ;;  %v2081_v51 = vpop.f32.mrb[22].mxu1  ;;  %v3469_v14 = vadd.f32 %v2038_v45, %v3359_v62  ;;  %v3479_v40 = vadd.f32 %v2079_v49, %v3359_v62 }
 0x193   : > { %v2041_v50 = vpop.f32.mrb[23].mxu0  ;;  %v2082_v53 = vpop.f32.mrb[23].mxu1  ;;  %v2288_v20 = vsel %vm2248_vm2, %v3462_v16, 0.0  ;;  %v2292_v37 = vsel %vm2248_vm2, %v3474_v34, 0.0 }
 0x194   : > { %v2289_v30 = vadd.f32 %v2288_v20, %v2287_v24  ;;  %v2290_v33 = vsel %vm2248_vm2, %v3469_v14, 0.0  ;;  %v2294_v43 = vsel %vm2248_vm2, %v3479_v40, 0.0 }
 0x196   : > { %v2291_v36 = vadd.f32 %v2290_v33, %v2289_v30 }
 0x198   : > { %v2293_v42 = vadd.f32 %v2292_v37, %v2291_v36 }
 0x19a   : > { %v2295_v47 = vadd.f32 %v2294_v43, %v2293_v42 }
 0x1ac   : > { %v2118_v19 = vpop.f32.mrb[24].mxu0  ;;  %v2159_v21 = vpop.f32.mrb[24].mxu1 }
 0x1ad   : > { %v2120_v22 = vpop.f32.mrb[25].mxu0  ;;  %v2161_v25 = vpop.f32.mrb[25].mxu1  ;;  %v3482_v41 = vadd.f32 %v2118_v19, %v3359_v62  ;;  %v3494_v49 = vadd.f32 %v2159_v21, %v3359_v62 }
 0x1ae   : > { %v2122_v17 = vpop.f32.mrb[26].mxu0  ;;  %v2163_v29 = vpop.f32.mrb[26].mxu1  ;;  %v3489_v46 = vadd.f32 %v2120_v22, %v3359_v62  ;;  %v3499_v53 = vadd.f32 %v2161_v25, %v3359_v62 }
 0x1af   : > { %v2123_v28 = vpop.f32.mrb[27].mxu0  ;;  %v2164_v32 = vpop.f32.mrb[27].mxu1  ;;  %v2296_v45 = vsel %vm2248_vm2, %v3482_v41, 0.0  ;;  %v2300_v52 = vsel %vm2248_vm2, %v3494_v49, 0.0 }
 0x1b0   : > { %v2297_v48 = vadd.f32 %v2296_v45, %v2295_v47  ;;  %v2298_v50 = vsel %vm2248_vm2, %v3489_v46, 0.0  ;;  %v2302_v55 = vsel %vm2248_vm2, %v3499_v53, 0.0 }
 0x1b2   : > { %v2299_v51 = vadd.f32 %v2298_v50, %v2297_v48 }
 0x1b4   : > { %v2301_v54 = vadd.f32 %v2300_v52, %v2299_v51 }
 0x1b6   : > { %v2303_v5 = vadd.f32 %v2302_v55, %v2301_v54 }
 0x1c8   : > { %v2200_v59 = vpop.f32.mrb[28].mxu0  ;;  %v2241_v7 = vpop.f32.mrb[28].mxu1 }
 0x1c9   : > { %v3504_v2 = vadd.f32 %v2200_v59, %v3359_v62  ;;  %v2202_v4 = vpop.f32.mrb[29].mxu0  ;;  %v2243_v9 = vpop.f32.mrb[29].mxu1  ;;  %v3512_v13 = vadd.f32 %v2241_v7, %v3359_v62 }
 0x1ca   : > { %v3507_v8 = vadd.f32 %v2202_v4, %v3359_v62  ;;  %v2204_v10 = vpop.f32.mrb[30].mxu0  ;;  %v2245_v19 = vpop.f32.mrb[30].mxu1  ;;  %v3517_v24 = vadd.f32 %v2243_v9, %v3359_v62 }
 0x1cb   : > { %v2304_v11 = vsel %vm2248_vm2, %v3504_v2, 0.0  ;;  %v2205_v18 = vpop.f32.mrb[31].mxu0  ;;  %v2246_v22 = vpop.f32.mrb[31].mxu1  ;;  %v2308_v17 = vsel %vm2248_vm2, %v3512_v13, 0.0 }
 0x1cc   : > { %v2305_v20 = vadd.f32 %v2304_v11, %v2303_v5  ;;  %v2306_v21 = vsel %vm2248_vm2, %v3507_v8, 0.0  ;;  %v2310_v29 = vsel %vm2248_vm2, %v3517_v24, 0.0 }
 0x1ce   : > { %v2307_v25 = vadd.f32 %v2306_v21, %v2305_v20 }
 0x1d0   : > { %v2309_v28 = vadd.f32 %v2308_v17, %v2307_v25 }
 0x1d2   : > { %v2311_v30 = vadd.f32 %v2310_v29, %v2309_v28 }
 0x1d4   : > { %2312 = vadd.xlane.f32.xlu0 %v2311_v30 }
 0x261   : > { %v2313_v32 = vpop.xlane.xlu0 %2312 }
 0x262   : > { %v3523_v33 = vmul.f32 0.00024414063, %v2313_v32 }
 0x264   : > { %v3527_v36 = vsub.f32 %v3362_v63, %v3523_v33  ;;  %v3531_v62 = vsub.f32 %v3365_v1, %v3523_v33  ;;  %v3535_v37 = vsub.f32 %v3372_v3, %v3523_v33  ;;  %v3539_v42 = vsub.f32 %v3377_v6, %v3523_v33 }
 0x265   : > { %v3547_v63 = vsub.f32 %v3380_v0, %v3523_v33  ;;  %v3553_v3 = vsub.f32 %v3387_v12, %v3523_v33  ;;  %v3561_v51 = vsub.f32 %v3392_v23, %v3523_v33  ;;  %v3568_v12 = vsub.f32 %v3397_v26, %v3523_v33 }
 0x266   : > { %v2348_v43 = vmul.f32 %v3527_v36, %v3527_v36  ;;  %v2349_v45 = vmul.f32 %v3531_v62, %v3531_v62  ;;  %v2350_v1 = vmul.f32 %v3535_v37, %v3535_v37  ;;  %v2351_v6 = vmul.f32 %v3539_v42, %v3539_v42 }
 0x267   : > { %v2352_v0 = vmul.f32 %v3547_v63, %v3547_v63  ;;  %v2353_v59 = vmul.f32 %v3553_v3, %v3553_v3  ;;  %v3575_v23 = vsub.f32 %v3400_v27, %v3523_v33  ;;  %v2354_v4 = vmul.f32 %v3561_v51, %v3561_v51 }
 0x268   : > { %v2380_v47 = vsel %vm2248_vm2, %v2348_v43, 0.0  ;;  %v2381_v48 = vsel %vm2248_vm2, %v2349_v45, 0.0  ;;  %v2383_v52 = vsel %vm2248_vm2, %v2350_v1, 0.0  ;;  %v2385_v55 = vsel %vm2248_vm2, %v2351_v6, 0.0 }
 0x269   : > { %v2382_v50 = vadd.f32 %v2381_v48, %v2380_v47  ;;  %v2387_v5 = vsel %vm2248_vm2, %v2352_v0, 0.0  ;;  %v3582_v26 = vsub.f32 %v3407_v31, %v3523_v33  ;;  %v2355_v10 = vmul.f32 %v3568_v12, %v3568_v12 }
 0x26a   : > { %v2389_v11 = vsel %vm2248_vm2, %v2353_v59, 0.0  ;;  %v3589_v27 = vsub.f32 %v3412_v35, %v3523_v33  ;;  %v2356_v19 = vmul.f32 %v3575_v23, %v3575_v23  ;;  %v2391_v20 = vsel %vm2248_vm2, %v2354_v4, 0.0 }
 0x26b   : > { %v2384_v54 = vadd.f32 %v2383_v52, %v2382_v50  ;;  %v3596_v31 = vsub.f32 %v3417_v38, %v3523_v33  ;;  %v2357_v22 = vmul.f32 %v3582_v26, %v3582_v26  ;;  %v2393_v25 = vsel %vm2248_vm2, %v2355_v10, 0.0 }
 0x26c   : > { %v3603_v35 = vsub.f32 %v3420_v39, %v3523_v33  ;;  %v2358_v28 = vmul.f32 %v3589_v27, %v3589_v27  ;;  %v2395_v29 = vsel %vm2248_vm2, %v2356_v19, 0.0  ;;  %v3610_v38 = vsub.f32 %v3427_v44, %v3523_v33 }
 0x26d   : > { %v2386_v7 = vadd.f32 %v2385_v55, %v2384_v54  ;;  %v2359_v32 = vmul.f32 %v3596_v31, %v3596_v31  ;;  %v2397_v43 = vsel %vm2248_vm2, %v2357_v22, 0.0  ;;  %v3617_v39 = vsub.f32 %v3433_v57, %v3523_v33 }
 0x26e   : > { %v2360_v1 = vmul.f32 %v3603_v35, %v3603_v35  ;;  %v2399_v6 = vsel %vm2248_vm2, %v2358_v28, 0.0  ;;  %v3624_v44 = vsub.f32 %v3439_v60, %v3523_v33  ;;  %v2361_v48 = vmul.f32 %v3610_v38, %v3610_v38 }
 0x26f   : > { %v2388_v9 = vadd.f32 %v2387_v5, %v2386_v7  ;;  %v2401_v50 = vsel %vm2248_vm2, %v2359_v32, 0.0  ;;  %v3631_v57 = vsub.f32 %v3442_v61, %v3523_v33  ;;  %v2362_v52 = vmul.f32 %v3617_v39, %v3617_v39 }
 0x270   : > { %v2403_v54 = vsel %vm2248_vm2, %v2360_v1, 0.0  ;;  %v3638_v60 = vsub.f32 %v3449_v56, %v3523_v33  ;;  %v2363_v55 = vmul.f32 %v3624_v44, %v3624_v44  ;;  %v2405_v7 = vsel %vm2248_vm2, %v2361_v48, 0.0 }
 0x271   : > { %v2390_v18 = vadd.f32 %v2389_v11, %v2388_v9  ;;  %v3645_v61 = vsub.f32 %v3454_v58, %v3523_v33  ;;  %v2364_v5 = vmul.f32 %v3631_v57, %v3631_v57  ;;  %v2407_v9 = vsel %vm2248_vm2, %v2362_v52, 0.0 }
 0x272   : > { %v3652_v56 = vsub.f32 %v3459_v15, %v3523_v33  ;;  %v2365_v11 = vmul.f32 %v3638_v60, %v3638_v60  ;;  %v3659_v58 = vsub.f32 %v3462_v16, %v3523_v33  ;;  %v3666_v15 = vsub.f32 %v3469_v14, %v3523_v33 }
 0x273   : > { %v2392_v21 = vadd.f32 %v2391_v20, %v2390_v18  ;;  %v2409_v18 = vsel %vm2248_vm2, %v2363_v55, 0.0  ;;  %v2366_v20 = vmul.f32 %v3645_v61, %v3645_v61  ;;  %v3673_v16 = vsub.f32 %v3474_v34, %v3523_v33 }
 0x274   : > { %v3680_v14 = vsub.f32 %v3479_v40, %v3523_v33  ;;  %v3687_v34 = vsub.f32 %v3482_v41, %v3523_v33  ;;  %v3694_v40 = vsub.f32 %v3489_v46, %v3523_v33  ;;  %v3701_v41 = vsub.f32 %v3494_v49, %v3523_v33 }
 0x275   : > { %v2394_v17 = vadd.f32 %v2393_v25, %v2392_v21  ;;  %v2411_v21 = vsel %vm2248_vm2, %v2364_v5, 0.0  ;;  %v2367_v25 = vmul.f32 %v3652_v56, %v3652_v56  ;;  %v3708_v46 = vsub.f32 %v3499_v53, %v3523_v33 }
 0x276   : > { %v2344_v49 = vsub.f32 %v3504_v2, %v3523_v33 }
 0x277   : > { %v2396_v30 = vadd.f32 %v2395_v29, %v2394_v17  ;;  %v2413_v17 = vsel %vm2248_vm2, %v2365_v11, 0.0  ;;  %v2368_v29 = vmul.f32 %v3659_v58, %v3659_v58  ;;  %v2375_v53 = vmul.f32 %v3708_v46, %v3708_v46 }
 0x278   : > { %v2376_v2 = vmul.f32 %v2344_v49, %v2344_v49 }
 0x279   : > { %v2398_v45 = vadd.f32 %v2397_v43, %v2396_v30  ;;  %v2415_v30 = vsel %vm2248_vm2, %v2366_v20, 0.0  ;;  %v2369_v43 = vmul.f32 %v3666_v15, %v3666_v15 }
 0x27b   : > { %v2400_v47 = vadd.f32 %v2399_v6, %v2398_v45  ;;  %v2417_v45 = vsel %vm2248_vm2, %v2367_v25, 0.0  ;;  %v2370_v6 = vmul.f32 %v3673_v16, %v3673_v16 }
 0x27d   : > { %v2402_v0 = vadd.f32 %v2401_v50, %v2400_v47  ;;  %v2419_v47 = vsel %vm2248_vm2, %v2368_v29, 0.0  ;;  %v2371_v50 = vmul.f32 %v3680_v14, %v3680_v14 }
 0x27f   : > { %v2404_v59 = vadd.f32 %v2403_v54, %v2402_v0  ;;  %v2421_v0 = vsel %vm2248_vm2, %v2369_v43, 0.0  ;;  %v2372_v54 = vmul.f32 %v3687_v34, %v3687_v34 }
 0x281   : > { %v2406_v4 = vadd.f32 %v2405_v7, %v2404_v59  ;;  %v2423_v59 = vsel %vm2248_vm2, %v2370_v6, 0.0  ;;  %v2373_v7 = vmul.f32 %v3694_v40, %v3694_v40 }
 0x283   : > { %v2408_v10 = vadd.f32 %v2407_v9, %v2406_v4  ;;  %v2425_v4 = vsel %vm2248_vm2, %v2371_v50, 0.0  ;;  %v2374_v9 = vmul.f32 %v3701_v41, %v3701_v41 }
 0x285   : > { %v2410_v19 = vadd.f32 %v2409_v18, %v2408_v10  ;;  %v2427_v10 = vsel %vm2248_vm2, %v2372_v54, 0.0  ;;  %v2345_v18 = vsub.f32 %v3507_v8, %v3523_v33  ;;  %v2433_v8 = vsel %vm2248_vm2, %v2375_v53, 0.0 }
 0x287   : > { %v2412_v22 = vadd.f32 %v2411_v21, %v2410_v19  ;;  %v2429_v19 = vsel %vm2248_vm2, %v2373_v7, 0.0  ;;  %v3725_v21 = vsub.f32 %v3512_v13, %v3523_v33 }
 0x289   : > { %v2414_v28 = vadd.f32 %v2413_v17, %v2412_v22  ;;  %v2431_v22 = vsel %vm2248_vm2, %v2374_v9, 0.0  ;;  %v3730_v17 = vsub.f32 %v3517_v24, %v3523_v33 }
 0x28b   : > { %v2416_v32 = vadd.f32 %v2415_v30, %v2414_v28  ;;  %v2377_v28 = vmul.f32 %v2345_v18, %v2345_v18  ;;  %v2378_v30 = vmul.f32 %v3725_v21, %v3725_v21  ;;  %v2379_v13 = vmul.f32 %v3730_v17, %v3730_v17 }
 0x28d   : > { %v2418_v1 = vadd.f32 %v2417_v45, %v2416_v32  ;;  %v2435_v32 = vsel %vm2248_vm2, %v2376_v2, 0.0  ;;  %v2437_v45 = vsel %vm2248_vm2, %v2377_v28, 0.0  ;;  %v2439_v6 = vsel %vm2248_vm2, %v2378_v30, 0.0 }
 0x28e   : > { %v2441_v33 = vsel %vm2248_vm2, %v2379_v13, 0.0 }
 0x28f   : > { %v2420_v48 = vadd.f32 %v2419_v47, %v2418_v1 }
 0x291   : > { %v2422_v52 = vadd.f32 %v2421_v0, %v2420_v48 }
 0x293   : > { %v2424_v55 = vadd.f32 %v2423_v59, %v2422_v52 }
 0x295   : > { %v2426_v5 = vadd.f32 %v2425_v4, %v2424_v55 }
 0x297   : > { %v2428_v11 = vadd.f32 %v2427_v10, %v2426_v5 }
 0x299   : > { %v2430_v20 = vadd.f32 %v2429_v19, %v2428_v11 }
 0x29b   : > { %v2432_v25 = vadd.f32 %v2431_v22, %v2430_v20 }
 0x29d   : > { %v2434_v29 = vadd.f32 %v2433_v8, %v2432_v25 }
 0x29f   : > { %v2436_v43 = vadd.f32 %v2435_v32, %v2434_v29 }
 0x2a1   : > { %v2438_v1 = vadd.f32 %v2437_v45, %v2436_v43 }
 0x2a3   : > { %v2440_v24 = vadd.f32 %v2439_v6, %v2438_v1 }
 0x2a5   : > { %v2442_v47 = vadd.f32 %v2441_v33, %v2440_v24 }
 0x2a7   : > { %2443 = vadd.xlane.f32.xlu1 %v2442_v47 }
 0x334   : > { %v2444_v48 = vpop.xlane.xlu1 %2443 }
 0x335   : > { %v2445_v50 = vmul.f32 0.00024414063, %v2444_v48 }
 0x337   : > { %v2446_v0 = vadd.f32 1e-05, %v2445_v50 }
 0x339   : > { %2989 = vrsqrt.f32 %v2446_v0 }
 0x343   : > { %v2990_v52 = vpop.eup %2989 }
 0x344   : > { %v3742_v54 = vmul.f32 %v2990_v52, %v3527_v36  ;;  %v3745_v59 = vmul.f32 %v2990_v52, %v3531_v62  ;;  %v3748_v55 = vmul.f32 %v2990_v52, %v3535_v37  ;;  %v3751_v7 = vmul.f32 %v2990_v52, %v3539_v42 }
 0x345   : > { %v3754_v4 = vmul.f32 %v2990_v52, %v3547_v63  ;;  %v3757_v5 = vmul.f32 %v2990_v52, %v3553_v3  ;;  %v3760_v9 = vmul.f32 %v2990_v52, %v3561_v51  ;;  %v3763_v36 = vmul.f32 %v2990_v52, %v3568_v12 }
 0x346   : > { %v3766_v62 = vmul.f32 %v2990_v52, %v3575_v23  ;;  %v3769_v37 = vmul.f32 %v2990_v52, %v3582_v26  ;;  %v3772_v42 = vmul.f32 %v2990_v52, %v3589_v27  ;;  %v3775_v63 = vmul.f32 %v2990_v52, %v3596_v31 }
 0x347   : > { %v3778_v3 = vmul.f32 %v2990_v52, %v3603_v35  ;;  %v3781_v51 = vmul.f32 %v2990_v52, %v3610_v38  ;;  %v3784_v12 = vmul.f32 %v2990_v52, %v3617_v39  ;;  %v3787_v23 = vmul.f32 %v2990_v52, %v3624_v44 }
 0x348   : > { %v3790_v26 = vmul.f32 %v2990_v52, %v3631_v57  ;;  %v3793_v27 = vmul.f32 %v2990_v52, %v3638_v60  ;;  %v3796_v31 = vmul.f32 %v2990_v52, %v3645_v61  ;;  %v3799_v35 = vmul.f32 %v2990_v52, %v3652_v56 }
 0x349   : > { %v3802_v38 = vmul.f32 %v2990_v52, %v3659_v58  ;;  %v3805_v39 = vmul.f32 %v2990_v52, %v3666_v15  ;;  %v3808_v44 = vmul.f32 %v2990_v52, %v3673_v16  ;;  %v3811_v57 = vmul.f32 %v2990_v52, %v3680_v14 }
 0x34a   : > { %v3814_v60 = vmul.f32 %v2990_v52, %v3687_v34  ;;  %v3817_v61 = vmul.f32 %v2990_v52, %v3694_v40  ;;  %v3820_v56 = vmul.f32 %v2990_v52, %v3701_v41  ;;  %v3823_v58 = vmul.f32 %v2990_v52, %v3708_v46 }
 0x34b   : > { %v3825_v15 = vmul.f32 %v2990_v52, %v2344_v49  ;;  %v3827_v10 = vmul.f32 %v2990_v52, %v2345_v18  ;;  %vm2480_vm3 = vcmp.ge.f32.partialorder %v3742_v54, 0.0  ;;  %vm2481_vm4 = vcmp.ge.f32.partialorder %v3745_v59, 0.0 }
 0x34c   : > { %vm2482_vm5 = vcmp.ge.f32.partialorder %v3748_v55, 0.0  ;;  %vm2483_vm6 = vcmp.ge.f32.partialorder %v3751_v7, 0.0  ;;  %vm2484_vm7 = vcmp.ge.f32.partialorder %v3754_v4, 0.0  ;;  %vm2485_vm8 = vcmp.ge.f32.partialorder %v3757_v5, 0.0 }
 0x34d   : > { %vm2486_vm9 = vcmp.ge.f32.partialorder %v3760_v9, 0.0  ;;  %vm2487_vm10 = vcmp.ge.f32.partialorder %v3763_v36, 0.0  ;;  %vm2488_vm11 = vcmp.ge.f32.partialorder %v3766_v62, 0.0  ;;  %v3840_v16 = vmul.f32 %v2990_v52, %v3725_v21 }
 0x34e   : > { %v2512_v14 = vmul.f32 0.01, %v3742_v54  ;;  %v2513_v34 = vmul.f32 0.01, %v3745_v59  ;;  %v2514_v40 = vmul.f32 0.01, %v3748_v55  ;;  %v3850_v41 = vmul.f32 %v2990_v52, %v3730_v17 }
 0x34f   : > { %vm2495_vm2 = vcmp.ge.f32.partialorder %v3787_v23, 0.0  ;;  %vm2496_vm13 = vcmp.ge.f32.partialorder %v3790_v26, 0.0  ;;  %v2515_v46 = vmul.f32 0.01, %v3751_v7  ;;  %v2516_v49 = vmul.f32 0.01, %v3754_v4 }
 0x350   : > { %v2517_v11 = vmul.f32 0.01, %v3757_v5  ;;  %vm2501_vm1 = vcmp.ge.f32.partialorder %v3805_v39, 0.0  ;;  %v2518_v18 = vmul.f32 0.01, %v3760_v9  ;;  %v3869_v20 = vsel %vm2480_vm3, %v3742_v54, %v2512_v14 }
 0x351   : > { %v2519_v53 = vmul.f32 0.01, %v3763_v36  ;;  %v2520_v19 = vmul.f32 0.01, %v3766_v62  ;;  %vm2505_vm12 = vcmp.ge.f32.partialorder %v3817_v61, 0.0  ;;  %v3881_v25 = vsel %vm2481_vm4, %v3745_v59, %v2513_v34 }
 0x352   : > { %v2521_v21 = vmul.f32 0.01, %v3769_v37  ;;  %v2522_v2 = vmul.f32 0.01, %v3772_v42  ;;  %v2523_v22 = vmul.f32 0.01, %v3775_v63  ;;  %v2546_v29 = vsel %vm2482_vm5, %v3748_v55, %v2514_v40 }
 0x353   : > { %vm2507_vm14 = vcmp.ge.f32.partialorder %v3823_v58, 0.0  ;;  %vm2508_vm0 = vcmp.ge.f32.partialorder %v3825_v15, 0.0  ;;  %vm2509_vm15 = vcmp.ge.f32.partialorder %v3827_v10, 0.0  ;;  %v2524_v17 = vmul.f32 0.01, %v3778_v3 }
 0x354   : > { %v2525_v28 = vmul.f32 0.01, %v3781_v51  ;;  %v2526_v8 = vmul.f32 0.01, %v3784_v12  ;;  %vm2510_vm4 = vcmp.ge.f32.partialorder %v3840_v16, 0.0  ;;  %vm2511_vm3 = vcmp.ge.f32.partialorder %v3850_v41, 0.0 }
 0x355   : > { %v2527_v30 = vmul.f32 0.01, %v3787_v23  ;;  %v2528_v32 = vmul.f32 0.01, %v3790_v26  ;;  %v2529_v43 = vmul.f32 0.01, %v3793_v27  ;;  %v2547_v13 = vsel %vm2483_vm6, %v3751_v7, %v2515_v46 }
 0x356   : > { %v2530_v45 = vmul.f32 0.01, %v3796_v31  ;;  %v2531_v1 = vmul.f32 0.01, %v3799_v35  ;;  %v2532_v6 = vmul.f32 0.01, %v3802_v38  ;;  %v2548_v24 = vsel %vm2484_vm7, %v3754_v4, %v2516_v49 }
 0x357   : > { %v2533_v33 = vmul.f32 0.01, %v3805_v39  ;;  %v2534_v47 = vmul.f32 0.01, %v3808_v44  ;;  %v2535_v48 = vmul.f32 0.01, %v3811_v57  ;;  %v2549_v50 = vsel %vm2485_vm8, %v3757_v5, %v2517_v11 }
 0x358   : > { %v2536_v0 = vmul.f32 0.01, %v3814_v60  ;;  %v2537_v52 = vmul.f32 0.01, %v3817_v61  ;;  %v2538_v54 = vmul.f32 0.01, %v3820_v56  ;;  %v2550_v59 = vsel %vm2486_vm9, %v3760_v9, %v2518_v18 }
 0x359   : > { %v2539_v55 = vmul.f32 0.01, %v3823_v58  ;;  %v2540_v7 = vmul.f32 0.01, %v3825_v15  ;;  %v2541_v4 = vmul.f32 0.01, %v3827_v10  ;;  %v2551_v5 = vsel %vm2487_vm10, %v3763_v36, %v2519_v53 }
 0x35a   : > { %v2542_v14 = vmul.f32 0.01, %v3840_v16  ;;  %v2543_v34 = vmul.f32 0.01, %v3850_v41  ;;  %v2552_v40 = vsel %vm2488_vm11, %v3766_v62, %v2520_v19  ;;  %vm4030_vm5 = vcmp.ge.f32.partialorder %v3769_v37, 0.0 }
 0x35b   : > { %v2553_v9 = vsel %vm4030_vm5, %v3769_v37, %v2521_v21  ;;  %vm4031_vm6 = vcmp.ge.f32.partialorder %v3772_v42, 0.0  ;;  %vm4032_vm7 = vcmp.ge.f32.partialorder %v3775_v63, 0.0  ;;  %vm4033_vm8 = vcmp.ge.f32.partialorder %v3778_v3, 0.0 }
 0x35c   : > { %v2554_v46 = vsel %vm4031_vm6, %v3772_v42, %v2522_v2  ;;  %v2555_v36 = vsel %vm4032_vm7, %v3775_v63, %v2523_v22  ;;  %v2556_v49 = vsel %vm4033_vm8, %v3778_v3, %v2524_v17  ;;  %vm4034_vm9 = vcmp.ge.f32.partialorder %v3781_v51, 0.0 }
 0x35d   : > { %v2557_v62 = vsel %vm4034_vm9, %v3781_v51, %v2525_v28  ;;  %vm4035_vm10 = vcmp.ge.f32.partialorder %v3784_v12, 0.0  ;;  %v2559_v42 = vsel %vm2495_vm2, %v3787_v23, %v2527_v30  ;;  %v2560_v63 = vsel %vm2496_vm13, %v3790_v26, %v2528_v32 }
 0x35e   : > { %v2558_v37 = vsel %vm4035_vm10, %v3784_v12, %v2526_v8  ;;  %vm4036_vm11 = vcmp.ge.f32.partialorder %v3793_v27, 0.0  ;;  %vm4037_vm5 = vcmp.ge.f32.partialorder %v3796_v31, 0.0  ;;  %vm4038_vm6 = vcmp.ge.f32.partialorder %v3799_v35, 0.0 }
 0x35f   : > { %v2561_v3 = vsel %vm4036_vm11, %v3793_v27, %v2529_v43  ;;  %v2562_v51 = vsel %vm4037_vm5, %v3796_v31, %v2530_v45  ;;  %v2563_v12 = vsel %vm4038_vm6, %v3799_v35, %v2531_v1  ;;  %vm4039_vm7 = vcmp.ge.f32.partialorder %v3802_v38, 0.0 }
 0x360   : > { %v2564_v23 = vsel %vm4039_vm7, %v3802_v38, %v2532_v6  ;;  %v2565_v26 = vsel %vm2501_vm1, %v3805_v39, %v2533_v33  ;;  %vm4040_vm13 = vcmp.ge.f32.partialorder %v3808_v44, 0.0  ;;  %vm4041_vm2 = vcmp.ge.f32.partialorder %v3811_v57, 0.0 }
 0x361   : > { %v2566_v27 = vsel %vm4040_vm13, %v3808_v44, %v2534_v47  ;;  %v2567_v31 = vsel %vm4041_vm2, %v3811_v57, %v2535_v48  ;;  %vm4042_vm8 = vcmp.ge.f32.partialorder %v3814_v60, 0.0  ;;  %v2569_v38 = vsel %vm2505_vm12, %v3817_v61, %v2537_v52 }
 0x362   : > { %v2568_v35 = vsel %vm4042_vm8, %v3814_v60, %v2536_v0  ;;  %vm4043_vm1 = vcmp.ge.f32.partialorder %v3820_v56, 0.0  ;;  %v2571_v44 = vsel %vm2507_vm14, %v3823_v58, %v2539_v55  ;;  %v2572_v57 = vsel %vm2508_vm0, %v3825_v15, %v2540_v7 }
 0x363   : > { %v2570_v39 = vsel %vm4043_vm1, %v3820_v56, %v2538_v54  ;;  %v2573_v60 = vsel %vm2509_vm15, %v3827_v10, %v2541_v4  ;;  %v2574_v61 = vsel %vm2510_vm4, %v3840_v16, %v2542_v14  ;;  %v2575_v56 = vsel %vm2511_vm3, %v3850_v41, %v2543_v34 }
 0x364   : > { %v2608_v58 = vcombine.low %v3869_v20, %v3881_v25  ;;  %v2609_v11 = vcombine.low %v2546_v29, %v2547_v13  ;;  %v2610_v18 = vcombine.low %v2548_v24, %v2549_v50  ;;  %v2611_v15 = vcombine.low %v2550_v59, %v2551_v5 }
 0x365   : > { %v2612_v53 = vcombine.low %v2552_v40, %v2553_v9  ;;  %v2613_v10 = vcombine.low %v2554_v46, %v2555_v36  ;;  %v2614_v19 = vcombine.low %v2556_v49, %v2557_v62  ;;  %v2615_v21 = vcombine.low %v2558_v37, %v2559_v42 }
 0x366   : > { %v2616_v16 = vcombine.low %v2560_v63, %v2561_v3  ;;  %v2617_v2 = vcombine.low %v2562_v51, %v2563_v12  ;;  %2640 = vst [vmem:[%s3985_s27] sm:$0xff] %v2608_v58  ;;  %2641 = vst [vmem:[%s3985_s27 + $0x8] sm:$0xff] %v2609_v11  ;;  %v2618_v41 = vcombine.low %v2564_v23, %v2565_v26 }
 0x367   : > { %v2619_v20 = vcombine.low %v2566_v27, %v2567_v31  ;;  %v2620_v22 = vcombine.low %v2568_v35, %v2569_v38  ;;  %v2621_v25 = vcombine.low %v2570_v39, %v2571_v44  ;;  %2642 = vst [vmem:[%s3985_s27 + $0x10] sm:$0xff] %v2610_v18  ;;  %2643 = vst [vmem:[%s3985_s27 + $0x18] sm:$0xff] %v2611_v15 }
 0x368   : > { %2644 = vst [vmem:[%s3985_s27 + $0x20] sm:$0xff] %v2612_v53  ;;  %2645 = vst [vmem:[%s3985_s27 + $0x28] sm:$0xff] %v2613_v10  ;;  %v2622_v17 = vcombine.low %v2572_v57, %v2573_v60  ;;  %v2623_v28 = vcombine.low %v2574_v61, %v2575_v56 }
 0x369   : > { %2646 = vst [vmem:[%s3985_s27 + $0x30] sm:$0xff] %v2614_v19  ;;  %2647 = vst [vmem:[%s3985_s27 + $0x38] sm:$0xff] %v2615_v21 }
 0x36a   : > { %2648 = vst [vmem:[%s3985_s27 + $0x40] sm:$0xff] %v2616_v16  ;;  %2649 = vst [vmem:[%s3985_s27 + $0x48] sm:$0xff] %v2617_v2 }
 0x36b   : > { %2650 = vst [vmem:[%s3985_s27 + $0x50] sm:$0xff] %v2618_v41  ;;  %2651 = vst [vmem:[%s3985_s27 + $0x58] sm:$0xff] %v2619_v20 }
 0x36c   : > { %2652 = vst [vmem:[%s3985_s27 + $0x60] sm:$0xff] %v2620_v22  ;;  %2653 = vst [vmem:[%s3985_s27 + $0x68] sm:$0xff] %v2621_v25 }
 0x36d   : > { %2654 = vst [vmem:[%s3985_s27 + $0x70] sm:$0xff] %v2622_v17  ;;  %2655 = vst [vmem:[%s3985_s27 + $0x78] sm:$0xff] %v2623_v28 }
 0x36e PF: > { %s13_s12 = sadd.s32 1, %s2998_s12  }
 0x36f   : > { %p10_p4 = scmp.ge.s32.totalorder %s13_s12, 4  }
 0x371   :  { %12 = sbr.rel (!%p10_p4) target bundleno = 1 (0x1), region = 62 }

// kernel: embeddings_forward.11
= control target key start
LH: loop header
LB: loop body
LE: loop exit
PB: predicated region body
PF: predicated region fallthrough
CT: control target
= control target key end

     0   :  { %s626_s12 = smov 0   ;;  %s683_s0 = inlined_call_operand.vmem [shape: bf16[2,108,512], index: 0, kind: input, shape index: {}]   ;;  %s684_s1 = inlined_call_operand.vmem [shape: bf16[8,108], index: 1, kind: input, shape index: {}]   ;;  %s685_s2 = inlined_call_operand.vmem [shape: f32[8,1], index: 2, kind: input, shape index: {}]   ;;  %s686_s3 = inlined_call_operand.vmem [shape: f32[2,8,512], index: 3, kind: output, shape index: {}]  }
   0x1 LB: > { %s501_s13 = sadd.s32 4294967295, %s603_s12   ;;  %p505_p0 = scmp.ge.s32.totalorder %s603_s12, 1  ;;  %s603_s12 = sphi %s626_s12, %s13_s12  }
   0x2   : > { %p137_p1 = scmp.lt.s32.totalorder %s603_s12, 3 }
   0x4   : > { %p138_p2 = pnand %p505_p0, %p137_p1 }
   0x5   : > { %p161_p3 = scmp.lt.s32.totalorder (!%p138_p2), %s501_s13, 1  ;;  %v605_v0 = vmov (!%p138_p2), 0   ;;  %v201_v1 = vld [vmem:[%s685_s2] sm:$0xff] (!%p138_p2)  ;;  %vm347_vm0 = vcmask (!%p138_p2), 1045504   ;;  %vm343_vm1 = vcmask (!%p138_p2), 883712  }
   0x6   : > { %141 = sbr.rel (%p138_p2) target bundleno = 262 (0x106), region = 32  ;;  %392 = vmatprep.mubr.bf16.mxu0 (!%p138_p2), %v605_v0  ;;  %433 = vmatprep.mubr.bf16.mxu1 (!%p138_p2), %v605_v0  ;;  %v172_v32 = vld [vmem:[%s684_s1] sm:$0xf] (!%p138_p2) }
   0x7   : > { %554 = vset.pattern.permute.xlu0 (!%p138_p2), %v605_v0 }
   0x8   : > { %204 = vperm.xlu0 (!%p138_p2), %554, %v201_v1  }
   0xd   : > { %s688_s13 = smov (!%p161_p3, %s501_s13), 1 }
   0xe   : > { %s544_s16 = smul.u32 224, %s688_s13  ;;  %s543_s22 = sshll.u32 %s688_s13, 5 }
   0xf   : > { %s170_s25 = scalar_lea.vmem %s686_s3, %s543_s22 }
  0x10   : > { %s643_s19 = scalar_lea.vmem %s683_s0, %s544_s16 }
  0x11   : > { %v555_v2 = vld [vmem:[%s643_s19 + $0x4] ss:$16 sps:$4 sm:$0xff]   ;;  %v557_v3 = vld [vmem:[%s643_s19 + $0xc] ss:$16 sps:$4 sm:$0xff]   ;;  %v559_v4 = vld [vmem:[%s643_s19] ss:$16 sps:$4 sm:$0xff]  }
  0x12   : > { %360 = vmatprep.subr.bf16.mxu0 %v555_v2  ;;  %v560_v5 = vld [vmem:[%s643_s19 + $0x8] ss:$16 sps:$4 sm:$0xff]   ;;  %401 = vmatprep.subr.bf16.mxu1 %v557_v3  ;;  %v561_v6 = vld [vmem:[%s643_s19 + $0x24] ss:$16 sps:$4 sm:$0xff]   ;;  %v563_v7 = vld [vmem:[%s643_s19 + $0x2c] ss:$16 sps:$4 sm:$0xff]  }
  0x13   : > { %361 = vmatpush1.bf16.msra.mxu0 %v559_v4  ;;  %402 = vmatpush1.bf16.msra.mxu1 %v560_v5  ;;  %v565_v8 = vld [vmem:[%s643_s19 + $0x20] ss:$16 sps:$4 sm:$0xff]   ;;  %v566_v9 = vld [vmem:[%s643_s19 + $0x28] ss:$16 sps:$4 sm:$0xff]   ;;  %v567_v10 = vld [vmem:[%s643_s19 + $0x44] ss:$16 sps:$4 sm:$0xff]  }
  0x14   : > { %362 = vmatprep.subr.bf16.mxu0 %v561_v6  ;;  %403 = vmatprep.subr.bf16.mxu1 %v563_v7  ;;  %v569_v11 = vld [vmem:[%s643_s19 + $0x4c] ss:$16 sps:$4 sm:$0xff]   ;;  %v571_v12 = vld [vmem:[%s643_s19 + $0x40] ss:$16 sps:$4 sm:$0xff]   ;;  %v572_v13 = vld [vmem:[%s643_s19 + $0x48] ss:$16 sps:$4 sm:$0xff]  }
  0x15   : > { %v573_v14 = vld [vmem:[%s643_s19 + $0x64] ss:$16 sps:$4 sm:$0xff]   ;;  %v575_v15 = vld [vmem:[%s643_s19 + $0x6c] ss:$16 sps:$4 sm:$0xff]   ;;  %v577_v16 = vld [vmem:[%s643_s19 + $0x60] ss:$16 sps:$4 sm:$0xff]  }
  0x16   : > { %v578_v17 = vld [vmem:[%s643_s19 + $0x68] ss:$16 sps:$4 sm:$0xff]   ;;  %v579_v18 = vld [vmem:[%s643_s19 + $0x84] ss:$16 sps:$4 sm:$0xff]   ;;  %v581_v19 = vld [vmem:[%s643_s19 + $0x8c] ss:$16 sps:$4 sm:$0xff]  }
  0x17   : > { %363 = vmatpush1.bf16.msra.mxu0 %v565_v8  ;;  %404 = vmatpush1.bf16.msra.mxu1 %v566_v9  ;;  %v583_v20 = vld [vmem:[%s643_s19 + $0x80] ss:$16 sps:$4 sm:$0xff]   ;;  %v584_v21 = vld [vmem:[%s643_s19 + $0x88] ss:$16 sps:$4 sm:$0xff]   ;;  %v585_v22 = vld [vmem:[%s643_s19 + $0xa4] ss:$16 sps:$4 sm:$0xff]  }
  0x18   : > { %364 = vmatprep.subr.bf16.mxu0 %v567_v10  ;;  %405 = vmatprep.subr.bf16.mxu1 %v569_v11  ;;  %v587_v23 = vld [vmem:[%s643_s19 + $0xac] ss:$16 sps:$4 sm:$0xff]   ;;  %v589_v24 = vld [vmem:[%s643_s19 + $0xa0] ss:$16 sps:$4 sm:$0xff]   ;;  %v590_v25 = vld [vmem:[%s643_s19 + $0xa8] ss:$16 sps:$4 sm:$0xff]  }
  0x19   : > { %v591_v26 = vld [vmem:[%s643_s19 + $0xc4] ss:$16 sps:$4 sm:$0x3f]   ;;  %v593_v27 = vld [vmem:[%s643_s19 + $0xcc] ss:$16 sps:$4 sm:$0x3f]  }
  0x1a   : > { %v595_v28 = vld [vmem:[%s643_s19 + $0xc0] ss:$16 sps:$4 sm:$0x3f]   ;;  %v596_v29 = vld [vmem:[%s643_s19 + $0xc8] ss:$16 sps:$4 sm:$0x3f]  }
  0x1b   : > { %365 = vmatpush1.bf16.msra.mxu0 %v571_v12  ;;  %406 = vmatpush1.bf16.msra.mxu1 %v572_v13  ;;  %v349_v30 = vsel %vm347_vm0, %v595_v28, 0  ;;  %v355_v31 = vsel %vm347_vm0, %v596_v29, 0 }
  0x1c   : > { %366 = vmatprep.subr.bf16.mxu0 %v573_v14  ;;  %407 = vmatprep.subr.bf16.mxu1 %v575_v15 }
  0x1f   : > { %367 = vmatpush1.bf16.msra.mxu0 %v577_v16  ;;  %408 = vmatpush1.bf16.msra.mxu1 %v578_v17 }
  0x20   : > { %368 = vmatprep.subr.bf16.mxu0 %v579_v18  ;;  %409 = vmatprep.subr.bf16.mxu1 %v581_v19 }
  0x23   : > { %369 = vmatpush1.bf16.msra.mxu0 %v583_v20  ;;  %410 = vmatpush1.bf16.msra.mxu1 %v584_v21 }
  0x24   : > { %370 = vmatprep.subr.bf16.mxu0 %v585_v22  ;;  %411 = vmatprep.subr.bf16.mxu1 %v587_v23 }
  0x27   : > { %371 = vmatpush1.bf16.msra.mxu0 %v589_v24  ;;  %412 = vmatpush1.bf16.msra.mxu1 %v590_v25 }
  0x28   : > { %537 = vmatprep.subr.msk.bf16.mxu0 %vm347_vm0, %v591_v26  ;;  %539 = vmatprep.subr.msk.bf16.mxu1 %vm347_vm0, %v593_v27 }
  0x2b   : > { %373 = vmatpush1.bf16.msra.mxu0 %v349_v30  ;;  %414 = vmatpush1.bf16.msra.mxu1 %v355_v31 }
  0x2e   : > { %538 = vmatmul.mubr.msk.bf16.vlgmr.msra.gmra.mrb[0].mxu0 %vm343_vm1, %v172_v32  ;;  %540 = vmatmul.mubr.msk.bf16.vlgmr.msra.gmra.mrb[0].mxu1 %vm343_vm1, %v172_v32 }
  0x87   : > { %v205_v33 = vpop.permute.xlu0 %204 }
 0x101   : > { %v394_v34 = vpop.f32.mrb[0].mxu0  ;;  %v435_v35 = vpop.f32.mrb[0].mxu1 }
 0x102   : > { %v395_v36 = vadd.f32 %v394_v34, %v205_v33  ;;  %v436_v37 = vadd.f32 %v435_v35, %v205_v33  ;;  %v396_v38 = vpop.f32.mrb[1].mxu0  ;;  %v437_v39 = vpop.f32.mrb[1].mxu1 }
 0x103   : > { %v397_v40 = vadd.f32 %v396_v38, %v205_v33  ;;  %v438_v41 = vadd.f32 %v437_v39, %v205_v33  ;;  %v398_v42 = vpop.f32.mrb[2].mxu0  ;;  %v439_v43 = vpop.f32.mrb[2].mxu1 }
 0x104   : > { %442 = vst [vmem:[%s170_s25] sm:$0xff] %v395_v36  ;;  %444 = vst [vmem:[%s170_s25 + $0x10] sm:$0xff] %v436_v37  ;;  %v399_v44 = vpop.f32.mrb[3].mxu0  ;;  %v440_v45 = vpop.f32.mrb[3].mxu1 }
 0x105   : > { %443 = vst [vmem:[%s170_s25 + $0x8] sm:$0xff] %v397_v40  ;;  %445 = vst [vmem:[%s170_s25 + $0x18] sm:$0xff] %v438_v41 }
 0x106 PF: > { %s13_s12 = sadd.s32 1, %s603_s12  }
 0x107   : > { %p10_p4 = scmp.ge.s32.totalorder %s13_s12, 4  }
 0x109   :  { %12 = sbr.rel (!%p10_p4) target bundleno = 1 (0x1), region = 62 }

// kernel: embeddings_forward.12
= control target key start
LH: loop header
LB: loop body
LE: loop exit
PB: predicated region body
PF: predicated region fallthrough
CT: control target
= control target key end

     0   :  { %s905_s12 = smov 0   ;;  %s994_s0 = inlined_call_operand.vmem [shape: bf16[2,216,512], index: 0, kind: input, shape index: {}]   ;;  %s995_s1 = inlined_call_operand.vmem [shape: bf16[8,216], index: 1, kind: input, shape index: {}]   ;;  %s996_s2 = inlined_call_operand.vmem [shape: f32[8,1], index: 2, kind: input, shape index: {}]   ;;  %s997_s3 = inlined_call_operand.vmem [shape: f32[2,8,512], index: 3, kind: output, shape index: {}]  }
   0x1 LB: > { %s706_s13 = sadd.s32 4294967295, %s882_s12   ;;  %p710_p0 = scmp.ge.s32.totalorder %s882_s12, 1  ;;  %s882_s12 = sphi %s905_s12, %s13_s12  }
   0x2   : > { %p137_p1 = scmp.lt.s32.totalorder %s882_s12, 3 }
   0x4   : > { %p138_p2 = pnand %p710_p0, %p137_p1 }
   0x5   : > { %p161_p3 = scmp.lt.s32.totalorder (!%p138_p2), %s706_s13, 1  ;;  %v916_v0 = vld [vmem:[%s995_s1] sm:$0xff] (!%p138_p2)  ;;  %vm509_vm0 = vcmask (!%p138_p2), 719872   ;;  %v884_v3 = vmov (!%p138_p2), 0   ;;  %vm513_vm1 = vcmask (!%p138_p2), 1043456  }
   0x6   : > { %141 = sbr.rel (%p138_p2) target bundleno = 614 (0x266), region = 32  ;;  %v227_v1 = vld [vmem:[%s996_s2] sm:$0xff] (!%p138_p2)  ;;  %v715_v2 = vcombine.high (!%p138_p2), %v916_v0, %v916_v0  ;;  %789 = vset.pattern.permute.xlu0 (!%p138_p2), %v884_v3 }
   0x7   : > { %230 = vperm.xlu0 (!%p138_p2), %789, %v227_v1   ;;  %v714_v1 = vcombine.low (!%p138_p2), %v916_v0, %v916_v0 }
   0x8   : > { %773 = vmatprep.mubr.msk.bf16.mxu0 (!%p138_p2), %vm509_vm0, %v715_v2  ;;  %775 = vmatprep.mubr.msk.bf16.mxu1 (!%p138_p2), %vm509_vm0, %v715_v2 }
   0xd   : > { %s999_s13 = smov (!%p161_p3, %s706_s13), 1 }
   0xe   : > { %s779_s18 = smul.u32 432, %s999_s13  ;;  %s778_s22 = sshll.u32 %s999_s13, 5 }
   0xf   : > { %s170_s25 = scalar_lea.vmem %s997_s3, %s778_s22 }
  0x10   : > { %s929_s21 = scalar_lea.vmem %s994_s0, %s779_s18 }
  0x11   : > { %v790_v4 = vld [vmem:[%s929_s21 + $0x4] ss:$16 sps:$4 sm:$0xff]   ;;  %v792_v5 = vld [vmem:[%s929_s21 + $0xc] ss:$16 sps:$4 sm:$0xff]   ;;  %v794_v6 = vld [vmem:[%s929_s21] ss:$16 sps:$4 sm:$0xff]  }
  0x12   : > { %526 = vmatprep.subr.bf16.mxu0 %v790_v4  ;;  %v795_v7 = vld [vmem:[%s929_s21 + $0x8] ss:$16 sps:$4 sm:$0xff]   ;;  %567 = vmatprep.subr.bf16.mxu1 %v792_v5  ;;  %v796_v8 = vld [vmem:[%s929_s21 + $0x24] ss:$16 sps:$4 sm:$0xff]   ;;  %v798_v9 = vld [vmem:[%s929_s21 + $0x2c] ss:$16 sps:$4 sm:$0xff]  }
  0x13   : > { %527 = vmatpush1.bf16.msra.mxu0 %v794_v6  ;;  %568 = vmatpush1.bf16.msra.mxu1 %v795_v7  ;;  %v800_v10 = vld [vmem:[%s929_s21 + $0x20] ss:$16 sps:$4 sm:$0xff]   ;;  %v801_v11 = vld [vmem:[%s929_s21 + $0x28] ss:$16 sps:$4 sm:$0xff]   ;;  %v802_v12 = vld [vmem:[%s929_s21 + $0x44] ss:$16 sps:$4 sm:$0xff]  }
  0x14   : > { %528 = vmatprep.subr.bf16.mxu0 %v796_v8  ;;  %569 = vmatprep.subr.bf16.mxu1 %v798_v9  ;;  %v804_v13 = vld [vmem:[%s929_s21 + $0x4c] ss:$16 sps:$4 sm:$0xff]   ;;  %v806_v14 = vld [vmem:[%s929_s21 + $0x40] ss:$16 sps:$4 sm:$0xff]   ;;  %v807_v15 = vld [vmem:[%s929_s21 + $0x48] ss:$16 sps:$4 sm:$0xff]  }
  0x15   : > { %v808_v16 = vld [vmem:[%s929_s21 + $0x64] ss:$16 sps:$4 sm:$0xff]   ;;  %v810_v17 = vld [vmem:[%s929_s21 + $0x6c] ss:$16 sps:$4 sm:$0xff]   ;;  %v812_v18 = vld [vmem:[%s929_s21 + $0x60] ss:$16 sps:$4 sm:$0xff]  }
  0x16   : > { %v813_v19 = vld [vmem:[%s929_s21 + $0x68] ss:$16 sps:$4 sm:$0xff]   ;;  %v814_v20 = vld [vmem:[%s929_s21 + $0x84] ss:$16 sps:$4 sm:$0xff]   ;;  %v816_v21 = vld [vmem:[%s929_s21 + $0x8c] ss:$16 sps:$4 sm:$0xff]  }
  0x17   : > { %529 = vmatpush1.bf16.msra.mxu0 %v800_v10  ;;  %570 = vmatpush1.bf16.msra.mxu1 %v801_v11  ;;  %v818_v22 = vld [vmem:[%s929_s21 + $0x80] ss:$16 sps:$4 sm:$0xff]   ;;  %v819_v23 = vld [vmem:[%s929_s21 + $0x88] ss:$16 sps:$4 sm:$0xff]   ;;  %v820_v24 = vld [vmem:[%s929_s21 + $0xa4] ss:$16 sps:$4 sm:$0xff]  }
  0x18   : > { %530 = vmatprep.subr.bf16.mxu0 %v802_v12  ;;  %571 = vmatprep.subr.bf16.mxu1 %v804_v13  ;;  %v822_v25 = vld [vmem:[%s929_s21 + $0xac] ss:$16 sps:$4 sm:$0xff]   ;;  %v824_v26 = vld [vmem:[%s929_s21 + $0xa0] ss:$16 sps:$4 sm:$0xff]   ;;  %v825_v27 = vld [vmem:[%s929_s21 + $0xa8] ss:$16 sps:$4 sm:$0xff]  }
  0x19   : > { %v826_v28 = vld [vmem:[%s929_s21 + $0xc4] ss:$16 sps:$4 sm:$0xff]   ;;  %v828_v29 = vld [vmem:[%s929_s21 + $0xcc] ss:$16 sps:$4 sm:$0xff]   ;;  %v830_v30 = vld [vmem:[%s929_s21 + $0xc0] ss:$16 sps:$4 sm:$0xff]  }
  0x1a   : > { %v831_v31 = vld [vmem:[%s929_s21 + $0xc8] ss:$16 sps:$4 sm:$0xff]   ;;  %v832_v32 = vld [vmem:[%s929_s21 + $0xe4] ss:$16 sps:$4 sm:$0xff]   ;;  %v834_v33 = vld [vmem:[%s929_s21 + $0xec] ss:$16 sps:$4 sm:$0xff]  }
  0x1b   : > { %531 = vmatpush1.bf16.msra.mxu0 %v806_v14  ;;  %572 = vmatpush1.bf16.msra.mxu1 %v807_v15  ;;  %v836_v34 = vld [vmem:[%s929_s21 + $0xe0] ss:$16 sps:$4 sm:$0xff]   ;;  %v837_v35 = vld [vmem:[%s929_s21 + $0xe8] ss:$16 sps:$4 sm:$0xff]   ;;  %v838_v36 = vld [vmem:[%s929_s21 + $0x104] ss:$16 sps:$4 sm:$0xff]  }
  0x1c   : > { %532 = vmatprep.subr.bf16.mxu0 %v808_v16  ;;  %573 = vmatprep.subr.bf16.mxu1 %v810_v17  ;;  %v840_v37 = vld [vmem:[%s929_s21 + $0x10c] ss:$16 sps:$4 sm:$0xff]   ;;  %v842_v38 = vld [vmem:[%s929_s21 + $0x100] ss:$16 sps:$4 sm:$0xff]   ;;  %v843_v39 = vld [vmem:[%s929_s21 + $0x108] ss:$16 sps:$4 sm:$0xff]  }
  0x1d   : > { %v844_v40 = vld [vmem:[%s929_s21 + $0x124] ss:$16 sps:$4 sm:$0xff]   ;;  %v846_v41 = vld [vmem:[%s929_s21 + $0x12c] ss:$16 sps:$4 sm:$0xff]   ;;  %v848_v42 = vld [vmem:[%s929_s21 + $0x120] ss:$16 sps:$4 sm:$0xff]  }
  0x1e   : > { %v849_v43 = vld [vmem:[%s929_s21 + $0x128] ss:$16 sps:$4 sm:$0xff]   ;;  %v850_v44 = vld [vmem:[%s929_s21 + $0x144] ss:$16 sps:$4 sm:$0xff]   ;;  %v852_v45 = vld [vmem:[%s929_s21 + $0x14c] ss:$16 sps:$4 sm:$0xff]  }
  0x1f   : > { %533 = vmatpush1.bf16.msra.mxu0 %v812_v18  ;;  %574 = vmatpush1.bf16.msra.mxu1 %v813_v19  ;;  %v854_v46 = vld [vmem:[%s929_s21 + $0x140] ss:$16 sps:$4 sm:$0xff]   ;;  %v855_v47 = vld [vmem:[%s929_s21 + $0x148] ss:$16 sps:$4 sm:$0xff]   ;;  %v856_v48 = vld [vmem:[%s929_s21 + $0x164] ss:$16 sps:$4 sm:$0xff]  }
  0x20   : > { %534 = vmatprep.subr.bf16.mxu0 %v814_v20  ;;  %575 = vmatprep.subr.bf16.mxu1 %v816_v21  ;;  %v858_v49 = vld [vmem:[%s929_s21 + $0x16c] ss:$16 sps:$4 sm:$0xff]   ;;  %v860_v50 = vld [vmem:[%s929_s21 + $0x160] ss:$16 sps:$4 sm:$0xff]   ;;  %v861_v51 = vld [vmem:[%s929_s21 + $0x168] ss:$16 sps:$4 sm:$0xff]  }
  0x21   : > { %v862_v52 = vld [vmem:[%s929_s21 + $0x184] ss:$16 sps:$4 sm:$0xff]   ;;  %v864_v53 = vld [vmem:[%s929_s21 + $0x18c] ss:$16 sps:$4 sm:$0xff]   ;;  %v866_v56 = vld [vmem:[%s929_s21 + $0x180] ss:$16 sps:$4 sm:$0xff]  }
  0x22   : > { %v225_v54 = vld [vmem:[%s929_s21 + $0x1a0] sm:$0xff]  ;;  %v226_v55 = vld [vmem:[%s929_s21 + $0x1a8] sm:$0xff] }
  0x23   : > { %535 = vmatpush1.bf16.msra.mxu0 %v818_v22  ;;  %576 = vmatpush1.bf16.msra.mxu1 %v819_v23  ;;  %v867_v57 = vld [vmem:[%s929_s21 + $0x188] ss:$16 sps:$4 sm:$0xff]   ;;  %v769_v58 = vcombine.high %v225_v54, %v225_v54  ;;  %v771_v59 = vcombine.high %v226_v55, %v226_v55  ;;  %v768_v60 = vcombine.low %v225_v54, %v225_v54 }
  0x24   : > { %536 = vmatprep.subr.bf16.mxu0 %v820_v24  ;;  %577 = vmatprep.subr.bf16.mxu1 %v822_v25  ;;  %v770_v61 = vcombine.low %v226_v55, %v226_v55 }
  0x25   : > { %v515_v62 = vsel %vm513_vm1, %v768_v60, 0 }
  0x26   : > { %v521_v63 = vsel %vm513_vm1, %v770_v61, 0 }
  0x27   : > { %537 = vmatpush1.bf16.msra.mxu0 %v824_v26  ;;  %578 = vmatpush1.bf16.msra.mxu1 %v825_v27 }
  0x28   : > { %538 = vmatprep.subr.bf16.mxu0 %v826_v28  ;;  %579 = vmatprep.subr.bf16.mxu1 %v828_v29 }
  0x2b   : > { %539 = vmatpush1.bf16.msra.mxu0 %v830_v30  ;;  %580 = vmatpush1.bf16.msra.mxu1 %v831_v31 }
  0x2c   : > { %540 = vmatprep.subr.bf16.mxu0 %v832_v32  ;;  %581 = vmatprep.subr.bf16.mxu1 %v834_v33 }
  0x2f   : > { %541 = vmatpush1.bf16.msra.mxu0 %v836_v34  ;;  %582 = vmatpush1.bf16.msra.mxu1 %v837_v35 }
  0x30   : > { %542 = vmatprep.subr.bf16.mxu0 %v838_v36  ;;  %583 = vmatprep.subr.bf16.mxu1 %v840_v37 }
  0x33   : > { %543 = vmatpush1.bf16.msra.mxu0 %v842_v38  ;;  %584 = vmatpush1.bf16.msra.mxu1 %v843_v39 }
  0x34   : > { %544 = vmatprep.subr.bf16.mxu0 %v844_v40  ;;  %585 = vmatprep.subr.bf16.mxu1 %v846_v41 }
  0x37   : > { %545 = vmatpush1.bf16.msra.mxu0 %v848_v42  ;;  %586 = vmatpush1.bf16.msra.mxu1 %v849_v43 }
  0x38   : > { %546 = vmatprep.subr.bf16.mxu0 %v850_v44  ;;  %587 = vmatprep.subr.bf16.mxu1 %v852_v45 }
  0x3b   : > { %547 = vmatpush1.bf16.msra.mxu0 %v854_v46  ;;  %588 = vmatpush1.bf16.msra.mxu1 %v855_v47 }
  0x3c   : > { %548 = vmatprep.subr.bf16.mxu0 %v856_v48  ;;  %589 = vmatprep.subr.bf16.mxu1 %v858_v49 }
  0x3f   : > { %549 = vmatpush1.bf16.msra.mxu0 %v860_v50  ;;  %590 = vmatpush1.bf16.msra.mxu1 %v861_v51 }
  0x40   : > { %550 = vmatprep.subr.bf16.mxu0 %v862_v52  ;;  %591 = vmatprep.subr.bf16.mxu1 %v864_v53 }
  0x43   : > { %551 = vmatpush1.bf16.msra.mxu0 %v866_v56  ;;  %592 = vmatpush1.bf16.msra.mxu1 %v867_v57 }
  0x44   : > { %772 = vmatprep.subr.msk.bf16.mxu0 %vm513_vm1, %v769_v58  ;;  %774 = vmatprep.subr.msk.bf16.mxu1 %vm513_vm1, %v771_v59 }
  0x47   : > { %553 = vmatpush1.bf16.msra.mxu0 %v515_v62  ;;  %594 = vmatpush1.bf16.msra.mxu1 %v521_v63 }
  0x4a   : > { %559 = vmatmul.mubr.bf16.vlgmr.msra.gmra.mrb[0].mxu0 %v714_v1  ;;  %600 = vmatmul.mubr.bf16.vlgmr.msra.gmra.mrb[0].mxu1 %v714_v1 }
  0x86   : > { %v231_v2 = vpop.permute.xlu0 %230 }
 0x11d   : > { %v560_v3 = vpop.f32.mrb[0].mxu0  ;;  %v601_v4 = vpop.f32.mrb[0].mxu1 }
 0x11e   : > { %v561_v5 = vadd.f32 %v560_v3, %v231_v2  ;;  %v562_v6 = vpop.f32.mrb[1].mxu0  ;;  %v603_v7 = vpop.f32.mrb[1].mxu1  ;;  %v602_v13 = vadd.f32 %v601_v4, %v231_v2 }
 0x11f   : > { %v563_v8 = vadd.f32 %v562_v6, %v231_v2  ;;  %v564_v9 = vpop.f32.mrb[2].mxu0  ;;  %v605_v10 = vpop.f32.mrb[2].mxu1  ;;  %v604_v15 = vadd.f32 %v603_v7, %v231_v2 }
 0x120   : > { %v565_v11 = vpop.f32.mrb[3].mxu0  ;;  %v606_v12 = vpop.f32.mrb[3].mxu1 }
 0x121   : > { %v608_v14 = vadd.f32 %v563_v8, %v561_v5 }
 0x123   : > { %v609_v16 = vadd.f32 %v608_v14, %v602_v13 }
 0x125   : > { %v610_v0 = vadd.f32 %v609_v16, %v604_v15 }
 0x127   : > { %611 = vadd.xlane.f32.xlu0 %v610_v0 }
 0x1b4   : > { %v612_v17 = vpop.xlane.xlu0 %611 }
 0x1b5   : > { %v614_v18 = vmul.f32 0.001953125, %v612_v17 }
 0x1b7   : > { %v615_v19 = vsub.f32 %v561_v5, %v614_v18  ;;  %v616_v20 = vsub.f32 %v563_v8, %v614_v18  ;;  %v617_v21 = vsub.f32 %v602_v13, %v614_v18  ;;  %v618_v22 = vsub.f32 %v604_v15, %v614_v18 }
 0x1b9   : > { %v619_v23 = vmul.f32 %v615_v19, %v615_v19  ;;  %v620_v24 = vmul.f32 %v616_v20, %v616_v20  ;;  %v621_v25 = vmul.f32 %v617_v21, %v617_v21  ;;  %v622_v27 = vmul.f32 %v618_v22, %v618_v22 }
 0x1bb   : > { %v623_v26 = vadd.f32 %v620_v24, %v619_v23 }
 0x1bd   : > { %v624_v28 = vadd.f32 %v623_v26, %v621_v25 }
 0x1bf   : > { %v625_v29 = vadd.f32 %v624_v28, %v622_v27 }
 0x1c1   : > { %626 = vadd.xlane.f32.xlu1 %v625_v29 }
 0x24e   : > { %v627_v30 = vpop.xlane.xlu1 %626 }
 0x24f   : > { %v628_v31 = vmul.f32 0.001953125, %v627_v30 }
 0x251   : > { %v629_v32 = vadd.f32 1e-05, %v628_v31 }
 0x253   : > { %874 = vrsqrt.f32 %v629_v32 }
 0x25d   : > { %v875_v33 = vpop.eup %874 }
 0x25e   : > { %v631_v34 = vmul.f32 %v875_v33, %v615_v19  ;;  %v632_v35 = vmul.f32 %v875_v33, %v616_v20  ;;  %v633_v36 = vmul.f32 %v875_v33, %v617_v21  ;;  %v634_v37 = vmul.f32 %v875_v33, %v618_v22 }
 0x260   : > { %vm635_vm2 = vcmp.ge.f32.partialorder %v631_v34, 0.0  ;;  %vm636_vm3 = vcmp.ge.f32.partialorder %v632_v35, 0.0  ;;  %vm637_vm4 = vcmp.ge.f32.partialorder %v633_v36, 0.0  ;;  %vm638_vm5 = vcmp.ge.f32.partialorder %v634_v37, 0.0 }
 0x261   : > { %v639_v38 = vmul.f32 0.01, %v631_v34  ;;  %v640_v39 = vmul.f32 0.01, %v632_v35  ;;  %v641_v40 = vmul.f32 0.01, %v633_v36 }
 0x262   : > { %v642_v41 = vmul.f32 0.01, %v634_v37 }
 0x263   : > { %v643_v42 = vsel %vm635_vm2, %v631_v34, %v639_v38  ;;  %v644_v43 = vsel %vm636_vm3, %v632_v35, %v640_v39  ;;  %v645_v44 = vsel %vm637_vm4, %v633_v36, %v641_v40 }
 0x264   : > { %v646_v45 = vsel %vm638_vm5, %v634_v37, %v642_v41  ;;  %647 = vst [vmem:[%s170_s25] sm:$0xff] %v643_v42  ;;  %648 = vst [vmem:[%s170_s25 + $0x8] sm:$0xff] %v644_v43 }
 0x265   : > { %649 = vst [vmem:[%s170_s25 + $0x10] sm:$0xff] %v645_v44  ;;  %650 = vst [vmem:[%s170_s25 + $0x18] sm:$0xff] %v646_v45 }
 0x266 PF: > { %s13_s12 = sadd.s32 1, %s882_s12  }
 0x267   : > { %p10_p4 = scmp.ge.s32.totalorder %s13_s12, 4  }
 0x269   :  { %12 = sbr.rel (!%p10_p4) target bundleno = 1 (0x1), region = 62 }

// kernel: embeddings_forward.13
= control target key start
LH: loop header
LB: loop body
LE: loop exit
PB: predicated region body
PF: predicated region fallthrough
CT: control target
= control target key end

     0   :  { %s980_s15 = smov 0   ;;  %s1072_s0 = inlined_call_operand.vmem [shape: bf16[2,216,512], index: 0, kind: input, shape index: {}]   ;;  %s1073_s1 = inlined_call_operand.vmem [shape: bf16[8,216], index: 1, kind: input, shape index: {}]   ;;  %s1074_s2 = inlined_call_operand.vmem [shape: f32[8,1], index: 2, kind: input, shape index: {}]   ;;  %s1075_s3 = inlined_call_operand.vmem [shape: f32[2,8,512], index: 3, kind: input, shape index: {}]   ;;  %s1076_s4 = inlined_call_operand.vmem [shape: f32[2,8,512], index: 4, kind: output, shape index: {}]  }
   0x1 LB: > { %s773_s16 = sadd.s32 4294967295, %s952_s15   ;;  %p777_p0 = scmp.ge.s32.totalorder %s952_s15, 1  ;;  %s952_s15 = sphi %s980_s15, %s14_s15  }
   0x2   : > { %p172_p1 = scmp.lt.s32.totalorder %s952_s15, 3 }
   0x4   : > { %p173_p2 = pnand %p777_p0, %p172_p1 }
   0x5   : > { %p203_p3 = scmp.lt.s32.totalorder (!%p173_p2), %s773_s16, 1  ;;  %v991_v0 = vld [vmem:[%s1073_s1] sm:$0xff] (!%p173_p2)  ;;  %vm556_vm0 = vcmask (!%p173_p2), 719872   ;;  %v954_v3 = vmov (!%p173_p2), 0   ;;  %vm560_vm1 = vcmask (!%p173_p2), 1043456  }
   0x6   : > { %176 = sbr.rel (%p173_p2) target bundleno = 616 (0x268), region = 36  ;;  %v274_v1 = vld [vmem:[%s1074_s2] sm:$0xff] (!%p173_p2)  ;;  %v784_v2 = vcombine.high (!%p173_p2), %v991_v0, %v991_v0  ;;  %859 = vset.pattern.permute.xlu0 (!%p173_p2), %v954_v3 }
   0x7   : > { %277 = vperm.xlu0 (!%p173_p2), %859, %v274_v1   ;;  %v783_v1 = vcombine.low (!%p173_p2), %v991_v0, %v991_v0 }
   0x8   : > { %842 = vmatprep.mubr.msk.bf16.mxu0 (!%p173_p2), %vm556_vm0, %v784_v2  ;;  %844 = vmatprep.mubr.msk.bf16.mxu1 (!%p173_p2), %vm556_vm0, %v784_v2 }
   0xd   : > { %s1078_s16 = smov (!%p203_p3, %s773_s16), 1 }
   0xe   : > { %s849_s21 = smul.u32 432, %s1078_s16  ;;  %s847_s25 = sshll.u32 %s1078_s16, 5 }
   0xf   : > { %s212_s28 = scalar_lea.vmem %s1075_s3, %s847_s25  ;;  %s217_s5 = scalar_lea.vmem %s1076_s4, %s847_s25 }
  0x10   : > { %s1004_s24 = scalar_lea.vmem %s1072_s0, %s849_s21 }
  0x11   : > { %v860_v4 = vld [vmem:[%s1004_s24 + $0x4] ss:$16 sps:$4 sm:$0xff]   ;;  %v862_v5 = vld [vmem:[%s1004_s24 + $0xc] ss:$16 sps:$4 sm:$0xff]   ;;  %v864_v6 = vld [vmem:[%s1004_s24] ss:$16 sps:$4 sm:$0xff]  }
  0x12   : > { %573 = vmatprep.subr.bf16.mxu0 %v860_v4  ;;  %v865_v7 = vld [vmem:[%s1004_s24 + $0x8] ss:$16 sps:$4 sm:$0xff]   ;;  %614 = vmatprep.subr.bf16.mxu1 %v862_v5  ;;  %v866_v8 = vld [vmem:[%s1004_s24 + $0x24] ss:$16 sps:$4 sm:$0xff]   ;;  %v868_v9 = vld [vmem:[%s1004_s24 + $0x2c] ss:$16 sps:$4 sm:$0xff]  }
  0x13   : > { %574 = vmatpush1.bf16.msra.mxu0 %v864_v6  ;;  %615 = vmatpush1.bf16.msra.mxu1 %v865_v7  ;;  %v870_v10 = vld [vmem:[%s1004_s24 + $0x20] ss:$16 sps:$4 sm:$0xff]   ;;  %v871_v11 = vld [vmem:[%s1004_s24 + $0x28] ss:$16 sps:$4 sm:$0xff]   ;;  %v872_v12 = vld [vmem:[%s1004_s24 + $0x44] ss:$16 sps:$4 sm:$0xff]  }
  0x14   : > { %575 = vmatprep.subr.bf16.mxu0 %v866_v8  ;;  %616 = vmatprep.subr.bf16.mxu1 %v868_v9  ;;  %v874_v13 = vld [vmem:[%s1004_s24 + $0x4c] ss:$16 sps:$4 sm:$0xff]   ;;  %v876_v14 = vld [vmem:[%s1004_s24 + $0x40] ss:$16 sps:$4 sm:$0xff]   ;;  %v877_v15 = vld [vmem:[%s1004_s24 + $0x48] ss:$16 sps:$4 sm:$0xff]  }
  0x15   : > { %v878_v16 = vld [vmem:[%s1004_s24 + $0x64] ss:$16 sps:$4 sm:$0xff]   ;;  %v880_v17 = vld [vmem:[%s1004_s24 + $0x6c] ss:$16 sps:$4 sm:$0xff]   ;;  %v882_v18 = vld [vmem:[%s1004_s24 + $0x60] ss:$16 sps:$4 sm:$0xff]  }
  0x16   : > { %v883_v19 = vld [vmem:[%s1004_s24 + $0x68] ss:$16 sps:$4 sm:$0xff]   ;;  %v884_v20 = vld [vmem:[%s1004_s24 + $0x84] ss:$16 sps:$4 sm:$0xff]   ;;  %v886_v21 = vld [vmem:[%s1004_s24 + $0x8c] ss:$16 sps:$4 sm:$0xff]  }
  0x17   : > { %576 = vmatpush1.bf16.msra.mxu0 %v870_v10  ;;  %617 = vmatpush1.bf16.msra.mxu1 %v871_v11  ;;  %v888_v22 = vld [vmem:[%s1004_s24 + $0x80] ss:$16 sps:$4 sm:$0xff]   ;;  %v889_v23 = vld [vmem:[%s1004_s24 + $0x88] ss:$16 sps:$4 sm:$0xff]   ;;  %v890_v24 = vld [vmem:[%s1004_s24 + $0xa4] ss:$16 sps:$4 sm:$0xff]  }
  0x18   : > { %577 = vmatprep.subr.bf16.mxu0 %v872_v12  ;;  %618 = vmatprep.subr.bf16.mxu1 %v874_v13  ;;  %v892_v25 = vld [vmem:[%s1004_s24 + $0xac] ss:$16 sps:$4 sm:$0xff]   ;;  %v894_v26 = vld [vmem:[%s1004_s24 + $0xa0] ss:$16 sps:$4 sm:$0xff]   ;;  %v895_v27 = vld [vmem:[%s1004_s24 + $0xa8] ss:$16 sps:$4 sm:$0xff]  }
  0x19   : > { %v896_v28 = vld [vmem:[%s1004_s24 + $0xc4] ss:$16 sps:$4 sm:$0xff]   ;;  %v898_v29 = vld [vmem:[%s1004_s24 + $0xcc] ss:$16 sps:$4 sm:$0xff]   ;;  %v900_v30 = vld [vmem:[%s1004_s24 + $0xc0] ss:$16 sps:$4 sm:$0xff]  }
  0x1a   : > { %v901_v31 = vld [vmem:[%s1004_s24 + $0xc8] ss:$16 sps:$4 sm:$0xff]   ;;  %v902_v32 = vld [vmem:[%s1004_s24 + $0xe4] ss:$16 sps:$4 sm:$0xff]   ;;  %v904_v33 = vld [vmem:[%s1004_s24 + $0xec] ss:$16 sps:$4 sm:$0xff]  }
  0x1b   : > { %578 = vmatpush1.bf16.msra.mxu0 %v876_v14  ;;  %619 = vmatpush1.bf16.msra.mxu1 %v877_v15  ;;  %v906_v34 = vld [vmem:[%s1004_s24 + $0xe0] ss:$16 sps:$4 sm:$0xff]   ;;  %v907_v35 = vld [vmem:[%s1004_s24 + $0xe8] ss:$16 sps:$4 sm:$0xff]   ;;  %v908_v36 = vld [vmem:[%s1004_s24 + $0x104] ss:$16 sps:$4 sm:$0xff]  }
  0x1c   : > { %579 = vmatprep.subr.bf16.mxu0 %v878_v16  ;;  %620 = vmatprep.subr.bf16.mxu1 %v880_v17  ;;  %v910_v37 = vld [vmem:[%s1004_s24 + $0x10c] ss:$16 sps:$4 sm:$0xff]   ;;  %v912_v38 = vld [vmem:[%s1004_s24 + $0x100] ss:$16 sps:$4 sm:$0xff]   ;;  %v913_v39 = vld [vmem:[%s1004_s24 + $0x108] ss:$16 sps:$4 sm:$0xff]  }
  0x1d   : > { %v914_v40 = vld [vmem:[%s1004_s24 + $0x124] ss:$16 sps:$4 sm:$0xff]   ;;  %v916_v41 = vld [vmem:[%s1004_s24 + $0x12c] ss:$16 sps:$4 sm:$0xff]   ;;  %v918_v42 = vld [vmem:[%s1004_s24 + $0x120] ss:$16 sps:$4 sm:$0xff]  }
  0x1e   : > { %v919_v43 = vld [vmem:[%s1004_s24 + $0x128] ss:$16 sps:$4 sm:$0xff]   ;;  %v920_v44 = vld [vmem:[%s1004_s24 + $0x144] ss:$16 sps:$4 sm:$0xff]   ;;  %v922_v45 = vld [vmem:[%s1004_s24 + $0x14c] ss:$16 sps:$4 sm:$0xff]  }
  0x1f   : > { %580 = vmatpush1.bf16.msra.mxu0 %v882_v18  ;;  %621 = vmatpush1.bf16.msra.mxu1 %v883_v19  ;;  %v924_v46 = vld [vmem:[%s1004_s24 + $0x140] ss:$16 sps:$4 sm:$0xff]   ;;  %v925_v47 = vld [vmem:[%s1004_s24 + $0x148] ss:$16 sps:$4 sm:$0xff]   ;;  %v926_v48 = vld [vmem:[%s1004_s24 + $0x164] ss:$16 sps:$4 sm:$0xff]  }
  0x20   : > { %581 = vmatprep.subr.bf16.mxu0 %v884_v20  ;;  %622 = vmatprep.subr.bf16.mxu1 %v886_v21  ;;  %v928_v49 = vld [vmem:[%s1004_s24 + $0x16c] ss:$16 sps:$4 sm:$0xff]   ;;  %v930_v50 = vld [vmem:[%s1004_s24 + $0x160] ss:$16 sps:$4 sm:$0xff]   ;;  %v931_v51 = vld [vmem:[%s1004_s24 + $0x168] ss:$16 sps:$4 sm:$0xff]  }
  0x21   : > { %v932_v52 = vld [vmem:[%s1004_s24 + $0x184] ss:$16 sps:$4 sm:$0xff]   ;;  %v934_v53 = vld [vmem:[%s1004_s24 + $0x18c] ss:$16 sps:$4 sm:$0xff]   ;;  %v936_v56 = vld [vmem:[%s1004_s24 + $0x180] ss:$16 sps:$4 sm:$0xff]  }
  0x22   : > { %v272_v54 = vld [vmem:[%s1004_s24 + $0x1a0] sm:$0xff]  ;;  %v273_v55 = vld [vmem:[%s1004_s24 + $0x1a8] sm:$0xff] }
  0x23   : > { %582 = vmatpush1.bf16.msra.mxu0 %v888_v22  ;;  %623 = vmatpush1.bf16.msra.mxu1 %v889_v23  ;;  %v937_v57 = vld [vmem:[%s1004_s24 + $0x188] ss:$16 sps:$4 sm:$0xff]   ;;  %v838_v58 = vcombine.high %v272_v54, %v272_v54  ;;  %v840_v59 = vcombine.high %v273_v55, %v273_v55  ;;  %v837_v60 = vcombine.low %v272_v54, %v272_v54 }
  0x24   : > { %583 = vmatprep.subr.bf16.mxu0 %v890_v24  ;;  %624 = vmatprep.subr.bf16.mxu1 %v892_v25  ;;  %v839_v61 = vcombine.low %v273_v55, %v273_v55 }
  0x25   : > { %v562_v62 = vsel %vm560_vm1, %v837_v60, 0 }
  0x26   : > { %v568_v63 = vsel %vm560_vm1, %v839_v61, 0 }
  0x27   : > { %584 = vmatpush1.bf16.msra.mxu0 %v894_v26  ;;  %625 = vmatpush1.bf16.msra.mxu1 %v895_v27 }
  0x28   : > { %585 = vmatprep.subr.bf16.mxu0 %v896_v28  ;;  %626 = vmatprep.subr.bf16.mxu1 %v898_v29 }
  0x2b   : > { %586 = vmatpush1.bf16.msra.mxu0 %v900_v30  ;;  %627 = vmatpush1.bf16.msra.mxu1 %v901_v31 }
  0x2c   : > { %587 = vmatprep.subr.bf16.mxu0 %v902_v32  ;;  %628 = vmatprep.subr.bf16.mxu1 %v904_v33 }
  0x2f   : > { %588 = vmatpush1.bf16.msra.mxu0 %v906_v34  ;;  %629 = vmatpush1.bf16.msra.mxu1 %v907_v35 }
  0x30   : > { %589 = vmatprep.subr.bf16.mxu0 %v908_v36  ;;  %630 = vmatprep.subr.bf16.mxu1 %v910_v37 }
  0x33   : > { %590 = vmatpush1.bf16.msra.mxu0 %v912_v38  ;;  %631 = vmatpush1.bf16.msra.mxu1 %v913_v39  ;;  %v694_v38 = vld [vmem:[%s212_s28] sm:$0xff]  ;;  %v695_v39 = vld [vmem:[%s212_s28 + $0x8] sm:$0xff] }
  0x34   : > { %591 = vmatprep.subr.bf16.mxu0 %v914_v40  ;;  %632 = vmatprep.subr.bf16.mxu1 %v916_v41  ;;  %v696_v40 = vld [vmem:[%s212_s28 + $0x10] sm:$0xff] }
  0x37   : > { %592 = vmatpush1.bf16.msra.mxu0 %v918_v42  ;;  %633 = vmatpush1.bf16.msra.mxu1 %v919_v43 }
  0x38   : > { %593 = vmatprep.subr.bf16.mxu0 %v920_v44  ;;  %634 = vmatprep.subr.bf16.mxu1 %v922_v45  ;;  %v697_v44 = vld [vmem:[%s212_s28 + $0x18] sm:$0xff] }
  0x3b   : > { %594 = vmatpush1.bf16.msra.mxu0 %v924_v46  ;;  %635 = vmatpush1.bf16.msra.mxu1 %v925_v47 }
  0x3c   : > { %595 = vmatprep.subr.bf16.mxu0 %v926_v48  ;;  %636 = vmatprep.subr.bf16.mxu1 %v928_v49 }
  0x3f   : > { %596 = vmatpush1.bf16.msra.mxu0 %v930_v50  ;;  %637 = vmatpush1.bf16.msra.mxu1 %v931_v51 }
  0x40   : > { %597 = vmatprep.subr.bf16.mxu0 %v932_v52  ;;  %638 = vmatprep.subr.bf16.mxu1 %v934_v53 }
  0x43   : > { %598 = vmatpush1.bf16.msra.mxu0 %v936_v56  ;;  %639 = vmatpush1.bf16.msra.mxu1 %v937_v57 }
  0x44   : > { %841 = vmatprep.subr.msk.bf16.mxu0 %vm560_vm1, %v838_v58  ;;  %843 = vmatprep.subr.msk.bf16.mxu1 %vm560_vm1, %v840_v59 }
  0x47   : > { %600 = vmatpush1.bf16.msra.mxu0 %v562_v62  ;;  %641 = vmatpush1.bf16.msra.mxu1 %v568_v63 }
  0x4a   : > { %606 = vmatmul.mubr.bf16.vlgmr.msra.gmra.mrb[0].mxu0 %v783_v1  ;;  %647 = vmatmul.mubr.bf16.vlgmr.msra.gmra.mrb[0].mxu1 %v783_v1 }
  0x86   : > { %v278_v2 = vpop.permute.xlu0 %277 }
 0x11d   : > { %v607_v3 = vpop.f32.mrb[0].mxu0  ;;  %v648_v4 = vpop.f32.mrb[0].mxu1 }
 0x11e   : > { %v608_v5 = vadd.f32 %v607_v3, %v278_v2  ;;  %v609_v6 = vpop.f32.mrb[1].mxu0  ;;  %v650_v7 = vpop.f32.mrb[1].mxu1  ;;  %v649_v13 = vadd.f32 %v648_v4, %v278_v2 }
 0x11f   : > { %v610_v8 = vadd.f32 %v609_v6, %v278_v2  ;;  %v611_v9 = vpop.f32.mrb[2].mxu0  ;;  %v652_v10 = vpop.f32.mrb[2].mxu1  ;;  %v651_v15 = vadd.f32 %v650_v7, %v278_v2 }
 0x120   : > { %v612_v11 = vpop.f32.mrb[3].mxu0  ;;  %v653_v12 = vpop.f32.mrb[3].mxu1 }
 0x121   : > { %v655_v14 = vadd.f32 %v610_v8, %v608_v5 }
 0x123   : > { %v656_v16 = vadd.f32 %v655_v14, %v649_v13 }
 0x125   : > { %v657_v0 = vadd.f32 %v656_v16, %v651_v15 }
 0x127   : > { %658 = vadd.xlane.f32.xlu0 %v657_v0 }
 0x1b4   : > { %v659_v17 = vpop.xlane.xlu0 %658 }
 0x1b5   : > { %v661_v18 = vmul.f32 0.001953125, %v659_v17 }
 0x1b7   : > { %v662_v19 = vsub.f32 %v608_v5, %v661_v18  ;;  %v663_v20 = vsub.f32 %v610_v8, %v661_v18  ;;  %v664_v21 = vsub.f32 %v649_v13, %v661_v18  ;;  %v665_v22 = vsub.f32 %v651_v15, %v661_v18 }
 0x1b9   : > { %v666_v23 = vmul.f32 %v662_v19, %v662_v19  ;;  %v667_v24 = vmul.f32 %v663_v20, %v663_v20  ;;  %v668_v25 = vmul.f32 %v664_v21, %v664_v21  ;;  %v669_v27 = vmul.f32 %v665_v22, %v665_v22 }
 0x1bb   : > { %v670_v26 = vadd.f32 %v667_v24, %v666_v23 }
 0x1bd   : > { %v671_v28 = vadd.f32 %v670_v26, %v668_v25 }
 0x1bf   : > { %v672_v29 = vadd.f32 %v671_v28, %v669_v27 }
 0x1c1   : > { %673 = vadd.xlane.f32.xlu1 %v672_v29 }
 0x24e   : > { %v674_v30 = vpop.xlane.xlu1 %673 }
 0x24f   : > { %v675_v31 = vmul.f32 0.001953125, %v674_v30 }
 0x251   : > { %v676_v32 = vadd.f32 1e-05, %v675_v31 }
 0x253   : > { %944 = vrsqrt.f32 %v676_v32 }
 0x25d   : > { %v945_v33 = vpop.eup %944 }
 0x25e   : > { %v678_v34 = vmul.f32 %v945_v33, %v662_v19  ;;  %v679_v35 = vmul.f32 %v945_v33, %v663_v20  ;;  %v680_v36 = vmul.f32 %v945_v33, %v664_v21  ;;  %v681_v37 = vmul.f32 %v945_v33, %v665_v22 }
 0x260   : > { %vm682_vm2 = vcmp.ge.f32.partialorder %v678_v34, 0.0  ;;  %vm683_vm3 = vcmp.ge.f32.partialorder %v679_v35, 0.0  ;;  %vm684_vm4 = vcmp.ge.f32.partialorder %v680_v36, 0.0  ;;  %vm685_vm5 = vcmp.ge.f32.partialorder %v681_v37, 0.0 }
 0x261   : > { %v686_v41 = vmul.f32 0.01, %v678_v34  ;;  %v687_v42 = vmul.f32 0.01, %v679_v35  ;;  %v688_v43 = vmul.f32 0.01, %v680_v36 }
 0x262   : > { %v689_v45 = vmul.f32 0.01, %v681_v37 }
 0x263   : > { %v690_v46 = vsel %vm682_vm2, %v678_v34, %v686_v41  ;;  %v691_v47 = vsel %vm683_vm3, %v679_v35, %v687_v42  ;;  %v692_v48 = vsel %vm684_vm4, %v680_v36, %v688_v43 }
 0x264   : > { %v693_v49 = vsel %vm685_vm5, %v681_v37, %v689_v45  ;;  %v698_v50 = vadd.f32 %v694_v38, %v690_v46  ;;  %v699_v51 = vadd.f32 %v695_v39, %v691_v47  ;;  %v700_v52 = vadd.f32 %v696_v40, %v692_v48 }
 0x265   : > { %v701_v53 = vadd.f32 %v697_v44, %v693_v49 }
 0x266   : > { %702 = vst [vmem:[%s217_s5] sm:$0xff] %v698_v50  ;;  %703 = vst [vmem:[%s217_s5 + $0x8] sm:$0xff] %v699_v51 }
 0x267   : > { %704 = vst [vmem:[%s217_s5 + $0x10] sm:$0xff] %v700_v52  ;;  %705 = vst [vmem:[%s217_s5 + $0x18] sm:$0xff] %v701_v53 }
 0x268 PF: > { %s14_s15 = sadd.s32 1, %s952_s15  }
 0x269   : > { %p11_p4 = scmp.ge.s32.totalorder %s14_s15, 4  }
 0x26b   :  { %13 = sbr.rel (!%p11_p4) target bundleno = 1 (0x1), region = 69 }

// kernel: embeddings_forward.14
= control target key start
LH: loop header
LB: loop body
LE: loop exit
PB: predicated region body
PF: predicated region fallthrough
CT: control target
= control target key end

     0   :  { %s495_s12 = smov 0   ;;  %s544_s0 = inlined_call_operand.vmem [shape: bf16[2,216,64], index: 0, kind: input, shape index: {}]   ;;  %s545_s1 = inlined_call_operand.vmem [shape: bf16[16,216], index: 1, kind: input, shape index: {}]   ;;  %s546_s2 = inlined_call_operand.vmem [shape: f32[16,1], index: 2, kind: input, shape index: {}]   ;;  %s547_s3 = inlined_call_operand.vmem [shape: f32[2,16,64], index: 3, kind: output, shape index: {}]  }
   0x1 LB: > { %s410_s13 = sadd.s32 4294967295, %s472_s12   ;;  %p414_p0 = scmp.ge.s32.totalorder %s472_s12, 1  ;;  %s472_s12 = sphi %s495_s12, %s13_s12  }
   0x2   : > { %p137_p1 = scmp.lt.s32.totalorder %s472_s12, 3 }
   0x4   : > { %p138_p2 = pnand %p414_p0, %p137_p1 }
   0x5   : > { %p161_p3 = scmp.lt.s32.totalorder (!%p138_p2), %s410_s13, 1  ;;  %vm303_vm0 = vcmask (!%p138_p2), 719872   ;;  %v474_v0 = vmov (!%p138_p2), 0   ;;  %v465_v1 = vld [vmem:[%s545_s1 + $0x4] ss:$8 sps:$4 sm:$0xff] (!%p138_p2)   ;;  %vm307_vm1 = vcmask (!%p138_p2), 1043456  }
   0x6   : > { %141 = sbr.rel (%p138_p2) target bundleno = 290 (0x122), region = 32  ;;  %311 = vmatprep.subr.bf16.mxu0 (!%p138_p2), %v474_v0  ;;  %448 = vset.pattern.permute.xlu0 (!%p138_p2), %v474_v0  ;;  %v201_v2 = vld [vmem:[%s546_s2] sm:$0xff] (!%p138_p2)  ;;  %v202_v3 = vld [vmem:[%s546_s2 + $0x8] sm:$0xff] (!%p138_p2)  ;;  %vm352_vm2 = vcmask (!%p138_p2), 523264  }
   0x7   : > { %205 = vperm.xlu0 (!%p138_p2), %448, %v201_v2   ;;  %434 = vmatprep.mubr.msk.bf16.mxu0 (!%p138_p2), %vm303_vm0, %v465_v1  ;;  %v463_v19 = vld [vmem:[%s545_s1] ss:$8 sps:$4 sm:$0xff] (!%p138_p2)  }
   0xb   : > { %210 = vperm.xlu0 (!%p138_p2), %448, %v202_v3  }
   0xd   : > { %s549_s13 = smov (!%p161_p3, %s410_s13), 1 }
   0xe   : > { %s438_s20 = smul.u32 108, %s549_s13  ;;  %s437_s26 = sshll.u32 %s549_s13, 4 }
   0xf   : > { %s170_s29 = scalar_lea.vmem %s547_s3, %s437_s26 }
  0x10   : > { %s518_s23 = scalar_lea.vmem %s544_s0, %s438_s20 }
  0x11   : > { %v449_v4 = vld [vmem:[%s518_s23] sm:$0xff]   ;;  %v450_v5 = vld [vmem:[%s518_s23 + $0x8] sm:$0xff]   ;;  %v451_v6 = vld [vmem:[%s518_s23 + $0x10] sm:$0xff]  }
  0x12   : > { %312 = vmatpush1.bf16.msra.mxu0 %v449_v4  ;;  %v452_v7 = vld [vmem:[%s518_s23 + $0x18] sm:$0xff]   ;;  %v453_v8 = vld [vmem:[%s518_s23 + $0x20] sm:$0xff]   ;;  %v454_v9 = vld [vmem:[%s518_s23 + $0x28] sm:$0xff]  }
  0x13   : > { %313 = vmatprep.subr.bf16.mxu0 %v474_v0  ;;  %v455_v10 = vld [vmem:[%s518_s23 + $0x30] sm:$0xff]   ;;  %v456_v11 = vld [vmem:[%s518_s23 + $0x38] sm:$0xff]   ;;  %v457_v12 = vld [vmem:[%s518_s23 + $0x40] sm:$0xff]  }
  0x14   : > { %v458_v13 = vld [vmem:[%s518_s23 + $0x48] sm:$0xff]   ;;  %v459_v14 = vld [vmem:[%s518_s23 + $0x50] sm:$0xff]   ;;  %v460_v15 = vld [vmem:[%s518_s23 + $0x58] sm:$0xff]  }
  0x15   : > { %v461_v16 = vld [vmem:[%s518_s23 + $0x60] sm:$0xff]   ;;  %v462_v17 = vld [vmem:[%s518_s23 + $0x68] ss:$0 sps:$4 sm:$0xff]  }
  0x16   : > { %314 = vmatpush1.bf16.msra.mxu0 %v450_v5  ;;  %v309_v18 = vsel %vm307_vm1, %v462_v17, 0 }
  0x17   : > { %315 = vmatprep.subr.bf16.mxu0 %v474_v0 }
  0x1a   : > { %316 = vmatpush1.bf16.msra.mxu0 %v451_v6 }
  0x1b   : > { %317 = vmatprep.subr.bf16.mxu0 %v474_v0 }
  0x1e   : > { %318 = vmatpush1.bf16.msra.mxu0 %v452_v7 }
  0x1f   : > { %319 = vmatprep.subr.bf16.mxu0 %v474_v0 }
  0x22   : > { %320 = vmatpush1.bf16.msra.mxu0 %v453_v8 }
  0x23   : > { %321 = vmatprep.subr.bf16.mxu0 %v474_v0 }
  0x26   : > { %322 = vmatpush1.bf16.msra.mxu0 %v454_v9 }
  0x27   : > { %323 = vmatprep.subr.bf16.mxu0 %v474_v0 }
  0x2a   : > { %324 = vmatpush1.bf16.msra.mxu0 %v455_v10 }
  0x2b   : > { %325 = vmatprep.subr.bf16.mxu0 %v474_v0 }
  0x2e   : > { %326 = vmatpush1.bf16.msra.mxu0 %v456_v11 }
  0x2f   : > { %327 = vmatprep.subr.bf16.mxu0 %v474_v0 }
  0x32   : > { %328 = vmatpush1.bf16.msra.mxu0 %v457_v12 }
  0x33   : > { %329 = vmatprep.subr.bf16.mxu0 %v474_v0 }
  0x36   : > { %330 = vmatpush1.bf16.msra.mxu0 %v458_v13 }
  0x37   : > { %331 = vmatprep.subr.bf16.mxu0 %v474_v0 }
  0x3a   : > { %332 = vmatpush1.bf16.msra.mxu0 %v459_v14 }
  0x3b   : > { %333 = vmatprep.subr.bf16.mxu0 %v474_v0 }
  0x3e   : > { %334 = vmatpush1.bf16.msra.mxu0 %v460_v15 }
  0x3f   : > { %335 = vmatprep.subr.bf16.mxu0 %v474_v0 }
  0x42   : > { %336 = vmatpush1.bf16.msra.mxu0 %v461_v16 }
  0x43   : > { %337 = vmatprep.subr.bf16.mxu0 %v474_v0 }
  0x46   : > { %338 = vmatpush1.bf16.msra.mxu0 %v309_v18 }
  0x49   : > { %344 = vmatmul.mubr.bf16.vlgmr.msra.gmra.mrb[0].mxu0 %v463_v19 }
  0x86   : > { %v206_v20 = vpop.permute.xlu0 %205 }
  0x8a   : > { %v211_v24 = vpop.permute.xlu0 %210 }
 0x11c   : > { %v345_v21 = vpop.f32.mrb[0].mxu0 }
 0x11d   : > { %v346_v22 = vadd.f32 %v345_v21, %v206_v20  ;;  %v347_v23 = vpop.f32.mrb[1].mxu0 }
 0x11e   : > { %v348_v25 = vpop.f32.mrb[2].mxu0 }
 0x11f   : > { %353 = vst.msk [vmem:[%s170_s29] sm:$0xff] %vm352_vm2, %v346_v22  ;;  %v349_v26 = vadd.f32 %v348_v25, %v211_v24  ;;  %v350_v27 = vpop.f32.mrb[3].mxu0 }
 0x121   : > { %354 = vst.msk [vmem:[%s170_s29 + $0x8] sm:$0xff] %vm352_vm2, %v349_v26 }
 0x122 PF: > { %s13_s12 = sadd.s32 1, %s472_s12  }
 0x123   : > { %p10_p4 = scmp.ge.s32.totalorder %s13_s12, 4  }
 0x125   :  { %12 = sbr.rel (!%p10_p4) target bundleno = 1 (0x1), region = 62 }

// kernel: embeddings_forward.15
= control target key start
LH: loop header
LB: loop body
LE: loop exit
PB: predicated region body
PF: predicated region fallthrough
CT: control target
= control target key end

     0   :  { %s742_s12 = smov 0   ;;  %s828_s0 = inlined_call_operand.vmem [shape: bf16[2,432,64], index: 0, kind: input, shape index: {}]   ;;  %s829_s1 = inlined_call_operand.vmem [shape: bf16[16,432], index: 1, kind: input, shape index: {}]   ;;  %s830_s2 = inlined_call_operand.vmem [shape: f32[16,1], index: 2, kind: input, shape index: {}]   ;;  %s831_s3 = inlined_call_operand.vmem [shape: f32[2,16,64], index: 3, kind: output, shape index: {}]  }
   0x1 LB: > { %s600_s13 = sadd.s32 4294967295, %s719_s12   ;;  %p604_p0 = scmp.ge.s32.totalorder %s719_s12, 1  ;;  %s719_s12 = sphi %s742_s12, %s13_s12  }
   0x2   : > { %p137_p1 = scmp.lt.s32.totalorder %s719_s12, 3 }
   0x4   : > { %p138_p2 = pnand %p604_p0, %p137_p1 }
   0x5   : > { %p161_p3 = scmp.lt.s32.totalorder (!%p138_p2), %s600_s13, 1  ;;  %v721_v0 = vmov (!%p138_p2), 0   ;;  %v703_v1 = vld [vmem:[%s829_s1 + $0x4] ss:$16 sps:$4 sm:$0xff] (!%p138_p2)   ;;  %vm423_vm0 = vcmask (!%p138_p2), 392192   ;;  %v231_v4 = vld [vmem:[%s830_s2 + $0x8] sm:$0xff] (!%p138_p2) }
   0x6   : > { %141 = sbr.rel (%p138_p2) target bundleno = 592 (0x250), region = 32  ;;  %468 = vmatprep.subr.bf16.mxu1 (!%p138_p2), %v721_v0  ;;  %675 = vset.pattern.permute.xlu0 (!%p138_p2), %v721_v0  ;;  %v708_v2 = vld [vmem:[%s829_s1 + $0xc] ss:$16 sps:$4 sm:$0xff] (!%p138_p2)   ;;  %v230_v3 = vld [vmem:[%s830_s2] sm:$0xff] (!%p138_p2)  ;;  %v706_v33 = vld [vmem:[%s829_s1 + $0x8] ss:$16 sps:$4 sm:$0xff] (!%p138_p2)  }
   0x7   : > { %459 = vmatprep.mubr.bf16.mxu0 (!%p138_p2), %v703_v1  ;;  %234 = vperm.xlu0 (!%p138_p2), %675, %v230_v3   ;;  %v701_v30 = vld [vmem:[%s829_s1] ss:$16 sps:$4 sm:$0xff] (!%p138_p2)   ;;  %vm509_vm1 = vcmask (!%p138_p2), 523264  }
   0x8   : > { %639 = vmatprep.mubr.msk.bf16.mxu1 (!%p138_p2), %vm423_vm0, %v708_v2 }
   0xb   : > { %239 = vperm.xlu0 (!%p138_p2), %675, %v231_v4  }
   0xd   : > { %s833_s13 = smov (!%p161_p3, %s600_s13), 1 }
   0xe   : > { %s665_s20 = smul.u32 216, %s833_s13  ;;  %s642_s30 = sshll.u32 %s833_s13, 4 }
   0xf   : > { %s170_s6 = scalar_lea.vmem %s831_s3, %s642_s30 }
  0x10   : > { %s770_s25 = scalar_lea.vmem %s828_s0, %s665_s20 }
  0x11   : > { %v676_v5 = vld [vmem:[%s770_s25 + $0x80] sm:$0xff]   ;;  %v679_v8 = vld [vmem:[%s770_s25 + $0x88] sm:$0xff]   ;;  %v682_v11 = vld [vmem:[%s770_s25 + $0x90] sm:$0xff]  }
  0x12   : > { %v677_v6 = vld [vmem:[%s770_s25 + $0x40] sm:$0xff]   ;;  %469 = vmatpush1.bf16.msra.mxu1 %v676_v5  ;;  %v680_v9 = vld [vmem:[%s770_s25 + $0x48] sm:$0xff]   ;;  %v683_v12 = vld [vmem:[%s770_s25 + $0x50] sm:$0xff]  }
  0x13   : > { %v678_v7 = vld [vmem:[%s770_s25] sm:$0xff]   ;;  %643 = vmatprep.subr.bf16.mxu0 %v677_v6  ;;  %470 = vmatprep.subr.bf16.mxu1 %v721_v0  ;;  %v681_v10 = vld [vmem:[%s770_s25 + $0x8] sm:$0xff]   ;;  %v684_v13 = vld [vmem:[%s770_s25 + $0x10] sm:$0xff]  }
  0x14   : > { %644 = vmatpush3.bf16.msra.mxu0 %v678_v7  ;;  %v685_v14 = vld [vmem:[%s770_s25 + $0x98] sm:$0xff]   ;;  %v689_v17 = vld [vmem:[%s770_s25 + $0x60] sm:$0xff]   ;;  %v692_v20 = vld [vmem:[%s770_s25 + $0x68] sm:$0xff]  }
  0x15   : > { %645 = vmatprep.subr.bf16.mxu0 %v680_v9  ;;  %v686_v15 = vld [vmem:[%s770_s25 + $0x58] sm:$0xff]   ;;  %v688_v18 = vld [vmem:[%s770_s25 + $0xa0] sm:$0xff]   ;;  %v691_v21 = vld [vmem:[%s770_s25 + $0xa8] sm:$0xff]  }
  0x16   : > { %471 = vmatpush1.bf16.msra.mxu1 %v679_v8  ;;  %v687_v16 = vld [vmem:[%s770_s25 + $0x18] sm:$0xff]   ;;  %v690_v19 = vld [vmem:[%s770_s25 + $0x20] sm:$0xff]   ;;  %v693_v22 = vld [vmem:[%s770_s25 + $0x28] sm:$0xff]  }
  0x17   : > { %472 = vmatprep.subr.bf16.mxu1 %v721_v0  ;;  %v695_v23 = vld [vmem:[%s770_s25 + $0x70] sm:$0xff]   ;;  %v698_v26 = vld [vmem:[%s770_s25 + $0x78] sm:$0xff]   ;;  %v700_v29 = vld [vmem:[%s770_s25 + $0xc0] sm:$0xff]  }
  0x18   : > { %646 = vmatpush3.bf16.msra.mxu0 %v681_v10  ;;  %v694_v24 = vld [vmem:[%s770_s25 + $0xb0] sm:$0xff]   ;;  %v697_v27 = vld [vmem:[%s770_s25 + $0xb8] sm:$0xff]   ;;  %v704_v31 = vld [vmem:[%s770_s25 + $0xc8] sm:$0xff]  }
  0x19   : > { %647 = vmatprep.subr.bf16.mxu0 %v683_v12  ;;  %v696_v25 = vld [vmem:[%s770_s25 + $0x30] sm:$0xff]   ;;  %v699_v28 = vld [vmem:[%s770_s25 + $0x38] sm:$0xff]  }
  0x1a   : > { %473 = vmatpush1.bf16.msra.mxu1 %v682_v11  ;;  %v705_v32 = vld [vmem:[%s770_s25 + $0xd0] sm:$0xff]  }
  0x1b   : > { %474 = vmatprep.subr.bf16.mxu1 %v721_v0 }
  0x1c   : > { %648 = vmatpush3.bf16.msra.mxu0 %v684_v13 }
  0x1d   : > { %649 = vmatprep.subr.bf16.mxu0 %v686_v15 }
  0x1e   : > { %475 = vmatpush1.bf16.msra.mxu1 %v685_v14 }
  0x1f   : > { %476 = vmatprep.subr.bf16.mxu1 %v721_v0 }
  0x20   : > { %650 = vmatpush3.bf16.msra.mxu0 %v687_v16 }
  0x21   : > { %651 = vmatprep.subr.bf16.mxu0 %v689_v17 }
  0x22   : > { %477 = vmatpush1.bf16.msra.mxu1 %v688_v18 }
  0x23   : > { %478 = vmatprep.subr.bf16.mxu1 %v721_v0 }
  0x24   : > { %652 = vmatpush3.bf16.msra.mxu0 %v690_v19 }
  0x25   : > { %653 = vmatprep.subr.bf16.mxu0 %v692_v20 }
  0x26   : > { %479 = vmatpush1.bf16.msra.mxu1 %v691_v21 }
  0x27   : > { %480 = vmatprep.subr.bf16.mxu1 %v721_v0 }
  0x28   : > { %654 = vmatpush3.bf16.msra.mxu0 %v693_v22 }
  0x29   : > { %655 = vmatprep.subr.bf16.mxu0 %v695_v23 }
  0x2a   : > { %481 = vmatpush1.bf16.msra.mxu1 %v694_v24 }
  0x2b   : > { %482 = vmatprep.subr.bf16.mxu1 %v721_v0 }
  0x2c   : > { %656 = vmatpush3.bf16.msra.mxu0 %v696_v25 }
  0x2d   : > { %657 = vmatprep.subr.bf16.mxu0 %v698_v26 }
  0x2e   : > { %483 = vmatpush1.bf16.msra.mxu1 %v697_v27 }
  0x2f   : > { %484 = vmatprep.subr.bf16.mxu1 %v721_v0 }
  0x30   : > { %658 = vmatpush3.bf16.msra.mxu0 %v699_v28 }
  0x32   : > { %485 = vmatpush1.bf16.msra.mxu1 %v700_v29 }
  0x33   : > { %460 = vmatmul.mubr.bf16.vlgmr.msra.gmra.mrb[0].mxu0 %v701_v30  ;;  %486 = vmatprep.subr.bf16.mxu1 %v721_v0 }
  0x36   : > { %487 = vmatpush1.bf16.msra.mxu1 %v704_v31 }
  0x37   : > { %488 = vmatprep.subr.bf16.mxu1 %v721_v0 }
  0x3a   : > { %489 = vmatpush1.bf16.msra.mxu1 %v705_v32 }
  0x3d   : > { %501 = vmatmul.mubr.bf16.vlgmr.msra.gmra.mrb[0].mxu1 %v706_v33 }
  0x86   : > { %v235_v36 = vpop.permute.xlu0 %234 }
  0x8a   : > { %v240_v42 = vpop.permute.xlu0 %239 }
 0x106   : > { %v659_v34 = vpop.f32.mrb[0].mxu0 }
 0x107   : > { %v660_v35 = vpop.f32.mrb[1].mxu0 }
 0x108   : > { %v661_v37 = vadd.f32 %v660_v35, %v659_v34  ;;  %v662_v38 = vpop.f32.mrb[2].mxu0 }
 0x109   : > { %v663_v39 = vpop.f32.mrb[3].mxu0 }
 0x10a   : > { %v664_v40 = vadd.f32 %v663_v39, %v662_v38  ;;  %v462_v41 = vadd.f32 %v661_v37, %v235_v36 }
 0x10c   : > { %v465_v44 = vadd.f32 %v664_v40, %v240_v42 }
 0x110   : > { %v502_v43 = vpop.f32.mrb[0].mxu1 }
 0x111   : > { %v503_v45 = vadd.f32 %v502_v43, %v462_v41  ;;  %v504_v46 = vpop.f32.mrb[1].mxu1 }
 0x112   : > { %v505_v47 = vpop.f32.mrb[2].mxu1 }
 0x113   : > { %v506_v48 = vadd.f32 %v505_v47, %v465_v44  ;;  %v507_v49 = vpop.f32.mrb[3].mxu1  ;;  %v510_v50 = vsel %vm509_vm1, %v503_v45, 0.0 }
 0x114   : > { %511 = vadd.xlane.f32.xlu1 %v510_v50 }
 0x115   : > { %v513_v51 = vsel %vm509_vm1, %v506_v48, 0.0 }
 0x118   : > { %514 = vadd.xlane.f32.xlu1 %v513_v51 }
 0x1a1   : > { %v512_v52 = vpop.xlane.xlu1 %511 }
 0x1a2   : > { %v517_v53 = vmul.f32 0.015625, %v512_v52 }
 0x1a4   : > { %v519_v54 = vsub.f32 %v503_v45, %v517_v53 }
 0x1a5   : > { %v515_v55 = vpop.xlane.xlu1 %514 }
 0x1a6   : > { %v518_v56 = vmul.f32 0.015625, %v515_v55  ;;  %v521_v57 = vmul.f32 %v519_v54, %v519_v54 }
 0x1a8   : > { %v520_v58 = vsub.f32 %v506_v48, %v518_v56  ;;  %v523_v59 = vsel %vm509_vm1, %v521_v57, 0.0 }
 0x1a9   : > { %524 = vadd.xlane.f32.xlu0 %v523_v59 }
 0x1aa   : > { %v522_v60 = vmul.f32 %v520_v58, %v520_v58 }
 0x1ac   : > { %v526_v61 = vsel %vm509_vm1, %v522_v60, 0.0 }
 0x1ad   : > { %527 = vadd.xlane.f32.xlu1 %v526_v61 }
 0x236   : > { %v525_v62 = vpop.xlane.xlu0 %524 }
 0x237   : > { %v529_v63 = vmul.f32 0.015625, %v525_v62 }
 0x239   : > { %v531_v0 = vadd.f32 1e-05, %v529_v63 }
 0x23a   : > { %v528_v1 = vpop.xlane.xlu1 %527 }
 0x23b   : > { %709 = vrsqrt.f32 %v531_v0  ;;  %v530_v2 = vmul.f32 0.015625, %v528_v1 }
 0x23d   : > { %v532_v3 = vadd.f32 1e-05, %v530_v2 }
 0x23f   : > { %711 = vrsqrt.f32 %v532_v3 }
 0x245   : > { %v710_v4 = vpop.eup %709 }
 0x246   : > { %v535_v5 = vmul.f32 %v710_v4, %v519_v54 }
 0x248   : > { %vm537_vm2 = vcmp.ge.f32.partialorder %v535_v5, 0.0  ;;  %v539_v6 = vmul.f32 0.01, %v535_v5 }
 0x249   : > { %v712_v7 = vpop.eup %711 }
 0x24a   : > { %v541_v8 = vsel %vm537_vm2, %v535_v5, %v539_v6  ;;  %v536_v9 = vmul.f32 %v712_v7, %v520_v58 }
 0x24b   : > { %543 = vst.msk [vmem:[%s170_s6] sm:$0xff] %vm509_vm1, %v541_v8 }
 0x24c   : > { %vm538_vm3 = vcmp.ge.f32.partialorder %v536_v9, 0.0  ;;  %v540_v10 = vmul.f32 0.01, %v536_v9 }
 0x24e   : > { %v542_v11 = vsel %vm538_vm3, %v536_v9, %v540_v10 }
 0x24f   : > { %544 = vst.msk [vmem:[%s170_s6 + $0x8] sm:$0xff] %vm509_vm1, %v542_v11 }
 0x250 PF: > { %s13_s12 = sadd.s32 1, %s719_s12  }
 0x251   : > { %p10_p4 = scmp.ge.s32.totalorder %s13_s12, 4  }
 0x253   :  { %12 = sbr.rel (!%p10_p4) target bundleno = 1 (0x1), region = 62 }

// kernel: embeddings_forward.16
= control target key start
LH: loop header
LB: loop body
LE: loop exit
PB: predicated region body
PF: predicated region fallthrough
CT: control target
= control target key end

     0   :  { %s813_s15 = smov 0   ;;  %s902_s0 = inlined_call_operand.vmem [shape: bf16[2,432,64], index: 0, kind: input, shape index: {}]   ;;  %s903_s1 = inlined_call_operand.vmem [shape: bf16[16,432], index: 1, kind: input, shape index: {}]   ;;  %s904_s2 = inlined_call_operand.vmem [shape: f32[16,1], index: 2, kind: input, shape index: {}]   ;;  %s905_s3 = inlined_call_operand.vmem [shape: f32[2,16,64], index: 3, kind: input, shape index: {}]   ;;  %s906_s4 = inlined_call_operand.vmem [shape: f32[2,16,64], index: 4, kind: output, shape index: {}]  }
   0x1 LB: > { %s663_s16 = sadd.s32 4294967295, %s785_s15   ;;  %p667_p0 = scmp.ge.s32.totalorder %s785_s15, 1  ;;  %s785_s15 = sphi %s813_s15, %s14_s15  }
   0x2   : > { %p172_p1 = scmp.lt.s32.totalorder %s785_s15, 3 }
   0x4   : > { %p173_p2 = pnand %p667_p0, %p172_p1 }
   0x5   : > { %p203_p3 = scmp.lt.s32.totalorder (!%p173_p2), %s663_s16, 1  ;;  %v787_v0 = vmov (!%p173_p2), 0   ;;  %v769_v1 = vld [vmem:[%s903_s1 + $0x4] ss:$16 sps:$4 sm:$0xff] (!%p173_p2)   ;;  %vm470_vm0 = vcmask (!%p173_p2), 392192   ;;  %v278_v4 = vld [vmem:[%s904_s2 + $0x8] sm:$0xff] (!%p173_p2) }
   0x6   : > { %176 = sbr.rel (%p173_p2) target bundleno = 594 (0x252), region = 36  ;;  %515 = vmatprep.subr.bf16.mxu1 (!%p173_p2), %v787_v0  ;;  %741 = vset.pattern.permute.xlu0 (!%p173_p2), %v787_v0  ;;  %v774_v2 = vld [vmem:[%s903_s1 + $0xc] ss:$16 sps:$4 sm:$0xff] (!%p173_p2)   ;;  %v277_v3 = vld [vmem:[%s904_s2] sm:$0xff] (!%p173_p2)  ;;  %v772_v33 = vld [vmem:[%s903_s1 + $0x8] ss:$16 sps:$4 sm:$0xff] (!%p173_p2)  }
   0x7   : > { %506 = vmatprep.mubr.bf16.mxu0 (!%p173_p2), %v769_v1  ;;  %281 = vperm.xlu0 (!%p173_p2), %741, %v277_v3   ;;  %v767_v30 = vld [vmem:[%s903_s1] ss:$16 sps:$4 sm:$0xff] (!%p173_p2)   ;;  %vm556_vm1 = vcmask (!%p173_p2), 523264  }
   0x8   : > { %704 = vmatprep.mubr.msk.bf16.mxu1 (!%p173_p2), %vm470_vm0, %v774_v2 }
   0xb   : > { %286 = vperm.xlu0 (!%p173_p2), %741, %v278_v4  }
   0xd   : > { %s908_s16 = smov (!%p203_p3, %s663_s16), 1 }
   0xe   : > { %s731_s23 = smul.u32 216, %s908_s16  ;;  %s707_s7 = sshll.u32 %s908_s16, 4 }
   0xf   : > { %s212_s10 = scalar_lea.vmem %s905_s3, %s707_s7  ;;  %s217_s13 = scalar_lea.vmem %s906_s4, %s707_s7 }
  0x10   : > { %s841_s28 = scalar_lea.vmem %s902_s0, %s731_s23 }
  0x11   : > { %v742_v5 = vld [vmem:[%s841_s28 + $0x80] sm:$0xff]   ;;  %v745_v8 = vld [vmem:[%s841_s28 + $0x88] sm:$0xff]   ;;  %v748_v11 = vld [vmem:[%s841_s28 + $0x90] sm:$0xff]  }
  0x12   : > { %v743_v6 = vld [vmem:[%s841_s28 + $0x40] sm:$0xff]   ;;  %516 = vmatpush1.bf16.msra.mxu1 %v742_v5  ;;  %v746_v9 = vld [vmem:[%s841_s28 + $0x48] sm:$0xff]   ;;  %v749_v12 = vld [vmem:[%s841_s28 + $0x50] sm:$0xff]  }
  0x13   : > { %v744_v7 = vld [vmem:[%s841_s28] sm:$0xff]   ;;  %709 = vmatprep.subr.bf16.mxu0 %v743_v6  ;;  %517 = vmatprep.subr.bf16.mxu1 %v787_v0  ;;  %v747_v10 = vld [vmem:[%s841_s28 + $0x8] sm:$0xff]   ;;  %v750_v13 = vld [vmem:[%s841_s28 + $0x10] sm:$0xff]  }
  0x14   : > { %710 = vmatpush3.bf16.msra.mxu0 %v744_v7  ;;  %v751_v14 = vld [vmem:[%s841_s28 + $0x98] sm:$0xff]   ;;  %v755_v17 = vld [vmem:[%s841_s28 + $0x60] sm:$0xff]   ;;  %v758_v20 = vld [vmem:[%s841_s28 + $0x68] sm:$0xff]  }
  0x15   : > { %711 = vmatprep.subr.bf16.mxu0 %v746_v9  ;;  %v752_v15 = vld [vmem:[%s841_s28 + $0x58] sm:$0xff]   ;;  %v754_v18 = vld [vmem:[%s841_s28 + $0xa0] sm:$0xff]   ;;  %v757_v21 = vld [vmem:[%s841_s28 + $0xa8] sm:$0xff]  }
  0x16   : > { %518 = vmatpush1.bf16.msra.mxu1 %v745_v8  ;;  %v753_v16 = vld [vmem:[%s841_s28 + $0x18] sm:$0xff]   ;;  %v756_v19 = vld [vmem:[%s841_s28 + $0x20] sm:$0xff]   ;;  %v759_v22 = vld [vmem:[%s841_s28 + $0x28] sm:$0xff]  }
  0x17   : > { %519 = vmatprep.subr.bf16.mxu1 %v787_v0  ;;  %v761_v23 = vld [vmem:[%s841_s28 + $0x70] sm:$0xff]   ;;  %v764_v26 = vld [vmem:[%s841_s28 + $0x78] sm:$0xff]   ;;  %v766_v29 = vld [vmem:[%s841_s28 + $0xc0] sm:$0xff]  }
  0x18   : > { %712 = vmatpush3.bf16.msra.mxu0 %v747_v10  ;;  %v760_v24 = vld [vmem:[%s841_s28 + $0xb0] sm:$0xff]   ;;  %v763_v27 = vld [vmem:[%s841_s28 + $0xb8] sm:$0xff]   ;;  %v770_v31 = vld [vmem:[%s841_s28 + $0xc8] sm:$0xff]  }
  0x19   : > { %713 = vmatprep.subr.bf16.mxu0 %v749_v12  ;;  %v762_v25 = vld [vmem:[%s841_s28 + $0x30] sm:$0xff]   ;;  %v765_v28 = vld [vmem:[%s841_s28 + $0x38] sm:$0xff]   ;;  %v590_v6 = vld [vmem:[%s212_s10] sm:$0xff] }
  0x1a   : > { %520 = vmatpush1.bf16.msra.mxu1 %v748_v11  ;;  %v771_v32 = vld [vmem:[%s841_s28 + $0xd0] sm:$0xff]   ;;  %v591_v12 = vld [vmem:[%s212_s10 + $0x8] sm:$0xff] }
  0x1b   : > { %521 = vmatprep.subr.bf16.mxu1 %v787_v0 }
  0x1c   : > { %714 = vmatpush3.bf16.msra.mxu0 %v750_v13 }
  0x1d   : > { %715 = vmatprep.subr.bf16.mxu0 %v752_v15 }
  0x1e   : > { %522 = vmatpush1.bf16.msra.mxu1 %v751_v14 }
  0x1f   : > { %523 = vmatprep.subr.bf16.mxu1 %v787_v0 }
  0x20   : > { %716 = vmatpush3.bf16.msra.mxu0 %v753_v16 }
  0x21   : > { %717 = vmatprep.subr.bf16.mxu0 %v755_v17 }
  0x22   : > { %524 = vmatpush1.bf16.msra.mxu1 %v754_v18 }
  0x23   : > { %525 = vmatprep.subr.bf16.mxu1 %v787_v0 }
  0x24   : > { %718 = vmatpush3.bf16.msra.mxu0 %v756_v19 }
  0x25   : > { %719 = vmatprep.subr.bf16.mxu0 %v758_v20 }
  0x26   : > { %526 = vmatpush1.bf16.msra.mxu1 %v757_v21 }
  0x27   : > { %527 = vmatprep.subr.bf16.mxu1 %v787_v0 }
  0x28   : > { %720 = vmatpush3.bf16.msra.mxu0 %v759_v22 }
  0x29   : > { %721 = vmatprep.subr.bf16.mxu0 %v761_v23 }
  0x2a   : > { %528 = vmatpush1.bf16.msra.mxu1 %v760_v24 }
  0x2b   : > { %529 = vmatprep.subr.bf16.mxu1 %v787_v0 }
  0x2c   : > { %722 = vmatpush3.bf16.msra.mxu0 %v762_v25 }
  0x2d   : > { %723 = vmatprep.subr.bf16.mxu0 %v764_v26 }
  0x2e   : > { %530 = vmatpush1.bf16.msra.mxu1 %v763_v27 }
  0x2f   : > { %531 = vmatprep.subr.bf16.mxu1 %v787_v0 }
  0x30   : > { %724 = vmatpush3.bf16.msra.mxu0 %v765_v28 }
  0x32   : > { %532 = vmatpush1.bf16.msra.mxu1 %v766_v29 }
  0x33   : > { %507 = vmatmul.mubr.bf16.vlgmr.msra.gmra.mrb[0].mxu0 %v767_v30  ;;  %533 = vmatprep.subr.bf16.mxu1 %v787_v0 }
  0x36   : > { %534 = vmatpush1.bf16.msra.mxu1 %v770_v31 }
  0x37   : > { %535 = vmatprep.subr.bf16.mxu1 %v787_v0 }
  0x3a   : > { %536 = vmatpush1.bf16.msra.mxu1 %v771_v32 }
  0x3d   : > { %548 = vmatmul.mubr.bf16.vlgmr.msra.gmra.mrb[0].mxu1 %v772_v33 }
  0x86   : > { %v282_v36 = vpop.permute.xlu0 %281 }
  0x8a   : > { %v287_v42 = vpop.permute.xlu0 %286 }
 0x106   : > { %v725_v34 = vpop.f32.mrb[0].mxu0 }
 0x107   : > { %v726_v35 = vpop.f32.mrb[1].mxu0 }
 0x108   : > { %v727_v37 = vadd.f32 %v726_v35, %v725_v34  ;;  %v728_v38 = vpop.f32.mrb[2].mxu0 }
 0x109   : > { %v729_v39 = vpop.f32.mrb[3].mxu0 }
 0x10a   : > { %v730_v40 = vadd.f32 %v729_v39, %v728_v38  ;;  %v509_v41 = vadd.f32 %v727_v37, %v282_v36 }
 0x10c   : > { %v512_v44 = vadd.f32 %v730_v40, %v287_v42 }
 0x110   : > { %v549_v43 = vpop.f32.mrb[0].mxu1 }
 0x111   : > { %v550_v45 = vadd.f32 %v549_v43, %v509_v41  ;;  %v551_v46 = vpop.f32.mrb[1].mxu1 }
 0x112   : > { %v552_v47 = vpop.f32.mrb[2].mxu1 }
 0x113   : > { %v553_v48 = vadd.f32 %v552_v47, %v512_v44  ;;  %v554_v49 = vpop.f32.mrb[3].mxu1  ;;  %v557_v50 = vsel %vm556_vm1, %v550_v45, 0.0 }
 0x114   : > { %558 = vadd.xlane.f32.xlu1 %v557_v50 }
 0x115   : > { %v560_v51 = vsel %vm556_vm1, %v553_v48, 0.0 }
 0x118   : > { %561 = vadd.xlane.f32.xlu1 %v560_v51 }
 0x1a1   : > { %v559_v52 = vpop.xlane.xlu1 %558 }
 0x1a2   : > { %v564_v53 = vmul.f32 0.015625, %v559_v52 }
 0x1a4   : > { %v566_v54 = vsub.f32 %v550_v45, %v564_v53 }
 0x1a5   : > { %v562_v55 = vpop.xlane.xlu1 %561 }
 0x1a6   : > { %v565_v56 = vmul.f32 0.015625, %v562_v55  ;;  %v568_v57 = vmul.f32 %v566_v54, %v566_v54 }
 0x1a8   : > { %v567_v58 = vsub.f32 %v553_v48, %v565_v56  ;;  %v570_v59 = vsel %vm556_vm1, %v568_v57, 0.0 }
 0x1a9   : > { %571 = vadd.xlane.f32.xlu0 %v570_v59 }
 0x1aa   : > { %v569_v60 = vmul.f32 %v567_v58, %v567_v58 }
 0x1ac   : > { %v573_v61 = vsel %vm556_vm1, %v569_v60, 0.0 }
 0x1ad   : > { %574 = vadd.xlane.f32.xlu1 %v573_v61 }
 0x236   : > { %v572_v62 = vpop.xlane.xlu0 %571 }
 0x237   : > { %v576_v63 = vmul.f32 0.015625, %v572_v62 }
 0x239   : > { %v578_v0 = vadd.f32 1e-05, %v576_v63 }
 0x23a   : > { %v575_v1 = vpop.xlane.xlu1 %574 }
 0x23b   : > { %775 = vrsqrt.f32 %v578_v0  ;;  %v577_v2 = vmul.f32 0.015625, %v575_v1 }
 0x23d   : > { %v579_v3 = vadd.f32 1e-05, %v577_v2 }
 0x23f   : > { %777 = vrsqrt.f32 %v579_v3 }
 0x245   : > { %v776_v4 = vpop.eup %775 }
 0x246   : > { %v582_v5 = vmul.f32 %v776_v4, %v566_v54 }
 0x248   : > { %vm584_vm2 = vcmp.ge.f32.partialorder %v582_v5, 0.0  ;;  %v586_v7 = vmul.f32 0.01, %v582_v5 }
 0x249   : > { %v778_v8 = vpop.eup %777 }
 0x24a   : > { %v588_v9 = vsel %vm584_vm2, %v582_v5, %v586_v7  ;;  %v583_v10 = vmul.f32 %v778_v8, %v567_v58 }
 0x24b   : > { %v592_v11 = vadd.f32 %v590_v6, %v588_v9 }
 0x24c   : > { %vm585_vm3 = vcmp.ge.f32.partialorder %v583_v10, 0.0  ;;  %v587_v13 = vmul.f32 0.01, %v583_v10 }
 0x24d   : > { %594 = vst.msk [vmem:[%s217_s13] sm:$0xff] %vm556_vm1, %v592_v11 }
 0x24e   : > { %v589_v14 = vsel %vm585_vm3, %v583_v10, %v587_v13 }
 0x24f   : > { %v593_v15 = vadd.f32 %v591_v12, %v589_v14 }
 0x251   : > { %595 = vst.msk [vmem:[%s217_s13 + $0x8] sm:$0xff] %vm556_vm1, %v593_v15 }
 0x252 PF: > { %s14_s15 = sadd.s32 1, %s785_s15  }
 0x253   : > { %p11_p4 = scmp.ge.s32.totalorder %s14_s15, 4  }
 0x255   :  { %13 = sbr.rel (!%p11_p4) target bundleno = 1 (0x1), region = 69 }

// kernel: embeddings_forward.17
= control target key start
LH: loop header
LB: loop body
LE: loop exit
PB: predicated region body
PF: predicated region fallthrough
CT: control target
= control target key end

     0   :  { %v238_v1 = vmov 0.0   ;;  %vm239_vm0 = vmmov 0   ;;  %s313_s0 = inlined_call_operand.vmem [shape: bf16[16,128], index: 0, kind: input, shape index: {}]   ;;  %s314_s1 = inlined_call_operand.vmem [shape: bf16[128,32], index: 1, kind: input, shape index: {}]   ;;  %s315_s2 = inlined_call_operand.vmem [shape: f32[1,32], index: 2, kind: input, shape index: {}]   ;;  %s316_s3 = inlined_call_operand.vmem [shape: f32[8,32], index: 3, kind: input, shape index: {}]   ;;  %s317_s4 = inlined_call_operand.hbm [shape: f32[16,32], index: 4, kind: output, shape index: {}]  }
   0x1   :  { %v205_v0 = vld [vmem:[%s314_s1] sm:$0xff]   ;;  %180 = vmatprep.subr.bf16.mxu0 %v238_v1  ;;  %v206_v2 = vld [vmem:[%s314_s1 + $0x8] sm:$0xff]   ;;  %196 = vmatprep.mubr.msk.bf16.mxu0 %vm239_vm0, %v238_v1  ;;  %v207_v3 = vld [vmem:[%s314_s1 + $0x10] sm:$0xff]  }
   0x2   :  { %181 = vmatpush3.bf16.msra.mxu0 %v205_v0 }
   0x3   :  { %182 = vmatprep.subr.bf16.mxu0 %v238_v1 }
   0x6   :  { %183 = vmatpush3.bf16.msra.mxu0 %v206_v2 }
   0x7   :  { %184 = vmatprep.subr.bf16.mxu0 %v238_v1 }
   0x8   :  { %9 = vsyncpa [#allocation3], 0  ;;  %v208_v4 = vld [vmem:[%s314_s1 + $0x18] sm:$0xff]   ;;  %v209_v5 = vld [vmem:[%s314_s1 + $0x20] sm:$0xff]   ;;  %s240_s11 = smov [#allocation2]   ;;  %vm142_vm1 = vcmask 261120  }
   0x9   :  { %v210_v6 = vld [vmem:[%s314_s1 + $0x28] sm:$0xff]   ;;  %v211_v7 = vld [vmem:[%s314_s1 + $0x30] sm:$0xff]   ;;  %v212_v8 = vld [vmem:[%s314_s1 + $0x38] sm:$0xff]   ;;  %s150_s1 = sshll.u32 %s240_s11, 4  ;;  %s151_s1 = int_to_ptr.vmem [resolvable:$true] %s150_s1 }
   0xa   :  { %185 = vmatpush3.bf16.msra.mxu0 %v207_v3  ;;  %v213_v9 = vld [vmem:[%s313_s0] sm:$0xff]   ;;  %s214_s0 = scalar_lea.vmem %s151_s1, 256  ;;  %p219_p1 = scmp.lt.s32.totalorder %s151_s1, %s151_s1 }
   0xb   :  { %186 = vmatprep.subr.bf16.mxu0 %v238_v1  ;;  %v161_v10 = vld [vmem:[%s315_s2] ss:$0 sm:$0xff]  ;;  %p215_p0 = scmp.ne.s32.totalorder %s151_s1, %s214_s0  ;;  %p220_p2 = scmp.lt.s32.totalorder %s214_s0, %s214_s0 }
   0xc   :  { %v37_v11 = vld [vmem:[%s316_s3] sm:$0xff] }
   0xd   :  { %p221_p3 = por %p220_p2, %p219_p1 }
   0xe   :  { %187 = vmatpush3.bf16.msra.mxu0 %v208_v4 }
   0xf   :  { %188 = vmatprep.subr.bf16.mxu0 %v238_v1  ;;  %p222_p4 = pnand %p221_p3, %p215_p0 }
  0x12   :  { %189 = vmatpush3.bf16.msra.mxu0 %v209_v5 }
  0x13   :  { %190 = vmatprep.subr.bf16.mxu0 %v238_v1 }
  0x16   :  { %191 = vmatpush3.bf16.msra.mxu0 %v210_v6 }
  0x17   :  { %192 = vmatprep.subr.bf16.mxu0 %v238_v1 }
  0x1a   :  { %193 = vmatpush3.bf16.msra.mxu0 %v211_v7 }
  0x1b   :  { %194 = vmatprep.subr.bf16.mxu0 %v238_v1 }
  0x1e   :  { %195 = vmatpush3.bf16.msra.mxu0 %v212_v8 }
  0x21   :  { %197 = vmatmul.mubr.bf16.vlgmr.msra.gmra.mrb[0].mxu0 %v213_v9 }
  0xf4   :  { %v133_v12 = vpop.f32.mrb[0].mxu0 }
  0xf5   :  { %v134_v13 = vadd.f32 %v161_v10, %v133_v12  ;;  %v198_v14 = vpop.f32.mrb[1].mxu0 }
  0xf6   :  { %v136_v15 = vpop.f32.mrb[2].mxu0 }
  0xf7   :  { %v140_v16 = vadd.f32 %v134_v13, %v37_v11  ;;  %v137_v17 = vadd.f32 %v161_v10, %v136_v15  ;;  %v199_v18 = vpop.f32.mrb[3].mxu0 }
  0xf9   :  { %143 = vst.msk [vmem:[#allocation2] sm:$0xff] %vm142_vm1, %v140_v16  ;;  %v141_v19 = vadd.f32 %v137_v17, %v37_v11 }
  0xfb   :  { %144 = vst.msk [vmem:[#allocation2 + $0x8] sm:$0xff] %vm142_vm1, %v141_v19 }
  0xfc   :  { %225 = shalt.err (!%p222_p4)
}
  0xfd   :  { %s226_s12 = scalar_lea.hbm %s317_s4, 256 }
  0xfe   :  { %p227_p5 = scmp.ne.s32.totalorder %s317_s4, %s226_s12  ;;  %p230_p6 = scmp.lt.u32.totalorder %s226_s12, %s317_s4 }
 0x100   :  { %p232_p7 = pnand %p230_p6, %p227_p5 }
 0x102   :  { %235 = shalt.err (!%p232_p7)
}
 0x103   :  { %s241_s17 = smov 128   ;;  %s242_s18 = smov 8  }
 0x104   :  { %156 = dma.vmem_to_hbm [thread:$0]  %s151_s1, 256, %s317_s4, [#allocation3], %s241_s17, %s241_s17, %s242_s18  }
 0x105   :  { %236 = dma.done.wait [#allocation3], 256  }
 0x106   :  { %237 = vsyncadd [#allocation3], 4294967040 }
 0x107   :  { %160 = vsyncpa [#allocation3], 1 }

</bundles_post_ra>
